<compile_context>
chip_gen: v7x
topology: tpu7x:2x2x1
jax: 0.10.0
libtpu: 0.0.40
codegen_flags: <defaults>
</compile_context>

<pallas_src>
import jax
import jax.numpy as jnp
from jax.experimental import pallas as pl
from jax.experimental.pallas import tpu as pltpu

EPS = 1e-5


def basic_conv_block_kernel(x_ref, w1_ref, w2_ref, b1_ref, b2_ref,
                            out_ref, xpad_ref, h1pad_ref):
    # x_ref     : (H, W, Cp)       one batch element (N dim squeezed), f32
    # w1_ref    : (3, 3, Cp, Cp)   BN1-folded weights (ky, kx, cin, cout)
    # w2_ref    : (3, 3, Cp, Cp)   BN2-folded weights
    # b1_ref    : (1, Cp)          folded BN1 bias
    # b2_ref    : (1, Cp)          folded BN2 bias
    # out_ref   : (H, W, Cp)
    # xpad_ref  : (H+2, W+2, Cp)   VMEM scratch (spatially padded input)
    # h1pad_ref : (H+2, W+2, Cp)   VMEM scratch (spatially padded stage-1 out)
    H, W, Cp = x_ref.shape

    def zero_halo(ref):
        # Only the 1-pixel border is zeroed; the interior is written once with data.
        ref[0:1, :, :] = jnp.zeros((1, W + 2, Cp), ref.dtype)
        ref[H + 1:H + 2, :, :] = jnp.zeros((1, W + 2, Cp), ref.dtype)
        ref[:, 0:1, :] = jnp.zeros((H + 2, 1, Cp), ref.dtype)
        ref[:, W + 1:W + 2, :] = jnp.zeros((H + 2, 1, Cp), ref.dtype)

    def conv3x3(src_ref, w_ref):
        # 9 shifted MXU matmuls: M = H*W pixels, K = N = Cp = 128 (lane-dense).
        acc = jnp.zeros((H * W, Cp), jnp.float32)
        for dy in range(3):
            for dx in range(3):
                patch = src_ref[dy:dy + H, dx:dx + W, :].reshape(H * W, Cp)
                acc = acc + jnp.dot(patch, w_ref[dy, dx],
                                    preferred_element_type=jnp.float32)
        return acc.reshape(H, W, Cp)

    x = x_ref[...]                                     # read once: conv input + residual

    # ---- stage 1: pad -> conv3x3 -> (+ folded BN1 bias) -> ReLU ----
    zero_halo(xpad_ref)
    xpad_ref[1:H + 1, 1:W + 1, :] = x
    h1 = jnp.maximum(conv3x3(xpad_ref, w1_ref) + b1_ref[...], 0.0)

    # ---- stage 2: pad -> conv3x3 -> (+ folded BN2 bias) ----
    zero_halo(h1pad_ref)
    h1pad_ref[1:H + 1, 1:W + 1, :] = h1
    h2 = conv3x3(h1pad_ref, w2_ref) + b2_ref[...]

    # ---- residual add + final ReLU (lane-dense store: last dim = 128) ----
    out_ref[...] = jnp.maximum(h2 + x, 0.0)


def _fold_bn(w_oihw, bn, eps=EPS):
    """Fold eval-mode BN into conv weight (scale on out-channel) + bias."""
    gamma, beta, mean, var = bn[0], bn[1], bn[2], bn[3]
    scale = gamma * jax.lax.rsqrt(var + eps)
    return w_oihw * scale[:, None, None, None], beta - mean * scale


def basic_conv_block(x_nchw, w1, w2, bn1, bn2):
    """x_nchw: (N,C,H,W); w1/w2: (Cout,Cin,3,3) PyTorch OIHW; bn*: (4,C)."""
    N, C, H, W = x_nchw.shape
    Cout = w1.shape[0]
    assert C == Cout, "residual add requires inplanes == planes (downsample=None)"

    # Lane-dense channel dim: pad channels to a multiple of 128 (>= 128).
    Cp = max(128, ((Cout + 127) // 128) * 128)

    w1f, b1 = _fold_bn(w1, bn1)
    w2f, b2 = _fold_bn(w2, bn2)

    # NHWC activations; channel padding only (spatial padding happens in-kernel).
    x = jnp.transpose(x_nchw, (0, 2, 3, 1)).astype(jnp.float32)
    x = jnp.pad(x, ((0, 0), (0, 0), (0, 0), (0, Cp - C)))

    def prep_w(wf):
        wk = jnp.transpose(wf, (2, 3, 1, 0)).astype(jnp.float32)     # (3,3,Cin,Cout)
        return jnp.pad(wk, ((0, 0), (0, 0),
                            (0, Cp - wk.shape[2]), (0, Cp - wk.shape[3])))

    def prep_b(b):
        return jnp.pad(b.astype(jnp.float32), (0, Cp - b.shape[0])).reshape(1, Cp)

    w1k, w2k = prep_w(w1f), prep_w(w2f)
    b1k, b2k = prep_b(b1), prep_b(b2)

    out_nhwc = pl.pallas_call(
        basic_conv_block_kernel,
        out_shape=jax.ShapeDtypeStruct((N, H, W, Cp), jnp.float32),
        grid=(N,),
        in_specs=[
            pl.BlockSpec((None, H, W, Cp), lambda n: (n, 0, 0, 0)),   # x (per image)
            pl.BlockSpec((3, 3, Cp, Cp), lambda n: (0, 0, 0, 0)),     # w1 (resident)
            pl.BlockSpec((3, 3, Cp, Cp), lambda n: (0, 0, 0, 0)),     # w2 (resident)
            pl.BlockSpec((1, Cp), lambda n: (0, 0)),                  # b1
            pl.BlockSpec((1, Cp), lambda n: (0, 0)),                  # b2
        ],
        out_specs=pl.BlockSpec((None, H, W, Cp), lambda n: (n, 0, 0, 0)),
        scratch_shapes=[pltpu.VMEM((H + 2, W + 2, Cp), jnp.float32),
                        pltpu.VMEM((H + 2, W + 2, Cp), jnp.float32)],
        compiler_params=pltpu.CompilerParams(
            dimension_semantics=("parallel",)),
    )(x, w1k, w2k, b1k, b2k)

    out_nhwc = out_nhwc[..., :Cout]                       # drop channel padding
    return jnp.transpose(out_nhwc, (0, 3, 1, 2))          # back to NCHW


def reference(x_nchw, w1, w2, bn1, bn2):
    """Plain-JAX reference (NCHW, eval-mode BN, high-precision conv)."""
    dn = jax.lax.conv_dimension_numbers(x_nchw.shape, w1.shape,
                                        ("NCHW", "OIHW", "NCHW"))

    def conv(x, w):
        return jax.lax.conv_general_dilated(
            x, w, (1, 1), ((1, 1), (1, 1)), dimension_numbers=dn,
            precision=jax.lax.Precision.HIGHEST)

    def bn(x, p):
        g, b, m, v = p[0], p[1], p[2], p[3]
        scale = g * jax.lax.rsqrt(v + EPS)
        bias = b - m * scale
        return x * scale[None, :, None, None] + bias[None, :, None, None]

    h = jax.nn.relu(bn(conv(x_nchw, w1), bn1))
    h = bn(conv(h, w2), bn2)
    return jax.nn.relu(h + x_nchw)


if __name__ == "__main__":
    # Small shapes consistent with the module: batch=2, inplanes=planes=4, 16x16.
    N, C, H, W = 2, 4, 16, 16
    planes = C

    keys = jax.random.split(jax.random.PRNGKey(0), 11)
    x = jax.random.normal(keys[0], (N, C, H, W), jnp.float32)

    w1 = jax.random.normal(keys[1], (planes, C, 3, 3), jnp.float32) * 0.1
    w2 = jax.random.normal(keys[2], (planes, planes, 3, 3), jnp.float32) * 0.1

    def make_bn(kg, kb, km, kv):
        gamma = 1.0 + 0.1 * jax.random.normal(kg, (planes,), jnp.float32)
        beta = 0.1 * jax.random.normal(kb, (planes,), jnp.float32)
        mean = 0.1 * jax.random.normal(km, (planes,), jnp.float32)
        var = 0.5 + jnp.abs(jax.random.normal(kv, (planes,), jnp.float32)) * 0.5
        return jnp.stack([gamma, beta, mean, var])                     # (4, C)

    bn1 = make_bn(keys[3], keys[4], keys[5], keys[6])
    bn2 = make_bn(keys[7], keys[8], keys[9], keys[10])

    out = basic_conv_block(x, w1, w2, bn1, bn2)
    out = jax.block_until_ready(out)

    ref = jax.block_until_ready(reference(x, w1, w2, bn1, bn2))
    assert out.shape == (N, C, H, W)
    # Kernel matmuls run at default (bf16-pass) MXU precision vs. HIGHEST reference.
    assert jnp.allclose(out, ref, atol=2e-2, rtol=2e-2), \
        f"max abs err = {jnp.max(jnp.abs(out - ref))}"

    print("KERNEL_OK")
</pallas_src>

<mosaic_0001>
module attributes {stable_mosaic.version = 11 : i64} {
  func.func @basic_conv_block_kernel(%arg0: i32, %arg1: memref<1x16x16x128xf32, #tpu.memory_space<vmem>>, %arg2: memref<3x3x128x128xf32, #tpu.memory_space<vmem>>, %arg3: memref<3x3x128x128xf32, #tpu.memory_space<vmem>>, %arg4: memref<1x128xf32, #tpu.memory_space<vmem>>, %arg5: memref<1x128xf32, #tpu.memory_space<vmem>>, %arg6: memref<1x16x16x128xf32, #tpu.memory_space<vmem>>, %arg7: memref<18x18x128xf32, #tpu.memory_space<vmem>>, %arg8: memref<18x18x128xf32, #tpu.memory_space<vmem>>) attributes {dimension_semantics = [#tpu.dimension_semantics<parallel>], iteration_bounds = array<i64: 2>, scalar_prefetch = 0 : i64, scratch_operands = 2 : i64, tpu.core_type = #tpu.core_type<tc>, window_params = [{transform_indices = @transform_0, window_bounds = array<i64: 1, 16, 16, 128>}, {pipeline_mode = #tpu.pipeline_mode<synchronous>, transform_indices = @transform_1, window_bounds = array<i64: 3, 3, 128, 128>}, {pipeline_mode = #tpu.pipeline_mode<synchronous>, transform_indices = @transform_2, window_bounds = array<i64: 3, 3, 128, 128>}, {pipeline_mode = #tpu.pipeline_mode<synchronous>, transform_indices = @transform_3, window_bounds = array<i64: 1, 128>}, {pipeline_mode = #tpu.pipeline_mode<synchronous>, transform_indices = @transform_4, window_bounds = array<i64: 1, 128>}, {transform_indices = @transform_5, window_bounds = array<i64: 1, 16, 16, 128>}]} {
    %c0 = arith.constant 0 : index
    %c0_0 = arith.constant 0 : index
    %c0_1 = arith.constant 0 : index
    %c0_2 = arith.constant 0 : index
    %0 = vector.load %arg1[%c0, %c0_0, %c0_1, %c0_2] : memref<1x16x16x128xf32, #tpu.memory_space<vmem>>, vector<1x16x16x128xf32>
    %1 = vector.shape_cast %0 : vector<1x16x16x128xf32> to vector<16x16x128xf32>
    %cst = arith.constant 0.000000e+00 : f32
    %2 = vector.broadcast %cst : f32 to vector<1x18x128xf32>
    %c0_3 = arith.constant 0 : index
    %c0_4 = arith.constant 0 : index
    %c0_5 = arith.constant 0 : index
    %3 = vector.load %arg7[%c0_3, %c0_4, %c0_5] : memref<18x18x128xf32, #tpu.memory_space<vmem>>, vector<1x18x128xf32>
    tpu.vector_store %arg7[%c0_3, %c0_4, %c0_5], %2 {strides = array<i32>} : memref<18x18x128xf32, #tpu.memory_space<vmem>>, vector<1x18x128xf32>,
    %cst_6 = arith.constant 0.000000e+00 : f32
    %4 = vector.broadcast %cst_6 : f32 to vector<1x18x128xf32>
    %c17 = arith.constant 17 : index
    %c0_7 = arith.constant 0 : index
    %c0_8 = arith.constant 0 : index
    %5 = vector.load %arg7[%c17, %c0_7, %c0_8] : memref<18x18x128xf32, #tpu.memory_space<vmem>>, vector<1x18x128xf32>
    tpu.vector_store %arg7[%c17, %c0_7, %c0_8], %4 {strides = array<i32>} : memref<18x18x128xf32, #tpu.memory_space<vmem>>, vector<1x18x128xf32>,
    %cst_9 = arith.constant 0.000000e+00 : f32
    %6 = vector.broadcast %cst_9 : f32 to vector<18x1x128xf32>
    %c0_10 = arith.constant 0 : index
    %c0_11 = arith.constant 0 : index
    %c0_12 = arith.constant 0 : index
    %7 = vector.load %arg7[%c0_10, %c0_11, %c0_12] : memref<18x18x128xf32, #tpu.memory_space<vmem>>, vector<18x1x128xf32>
    tpu.vector_store %arg7[%c0_10, %c0_11, %c0_12], %6 {strides = array<i32>} : memref<18x18x128xf32, #tpu.memory_space<vmem>>, vector<18x1x128xf32>,
    %cst_13 = arith.constant 0.000000e+00 : f32
    %8 = vector.broadcast %cst_13 : f32 to vector<18x1x128xf32>
    %c0_14 = arith.constant 0 : index
    %c17_15 = arith.constant 17 : index
    %c0_16 = arith.constant 0 : index
    %9 = vector.load %arg7[%c0_14, %c17_15, %c0_16] : memref<18x18x128xf32, #tpu.memory_space<vmem>>, vector<18x1x128xf32>
    tpu.vector_store %arg7[%c0_14, %c17_15, %c0_16], %8 {strides = array<i32>} : memref<18x18x128xf32, #tpu.memory_space<vmem>>, vector<18x1x128xf32>,
    %c1 = arith.constant 1 : index
    %c1_17 = arith.constant 1 : index
    %c0_18 = arith.constant 0 : index
    %10 = vector.load %arg7[%c1, %c1_17, %c0_18] : memref<18x18x128xf32, #tpu.memory_space<vmem>>, vector<16x16x128xf32>
    tpu.vector_store %arg7[%c1, %c1_17, %c0_18], %1 {strides = array<i32>} : memref<18x18x128xf32, #tpu.memory_space<vmem>>, vector<16x16x128xf32>,
    %cst_19 = arith.constant 0.000000e+00 : f32
    %11 = vector.broadcast %cst_19 : f32 to vector<256x128xf32>
    %c0_20 = arith.constant 0 : index
    %c0_21 = arith.constant 0 : index
    %c0_22 = arith.constant 0 : index
    %12 = vector.load %arg7[%c0_20, %c0_21, %c0_22] : memref<18x18x128xf32, #tpu.memory_space<vmem>>, vector<16x16x128xf32>
    %13 = vector.shape_cast %12 : vector<16x16x128xf32> to vector<256x128xf32>
    %c0_23 = arith.constant 0 : index
    %c0_24 = arith.constant 0 : index
    %c0_25 = arith.constant 0 : index
    %c0_26 = arith.constant 0 : index
    %14 = vector.load %arg2[%c0_23, %c0_24, %c0_25, %c0_26] : memref<3x3x128x128xf32, #tpu.memory_space<vmem>>, vector<1x1x128x128xf32>
    %15 = vector.shape_cast %14 : vector<1x1x128x128xf32> to vector<128x128xf32>
    %cst_27 = arith.constant dense<0.000000e+00> : vector<256x128xf32>
    %16 = tpu.matmul %13, %15, %cst_27 {dimension_numbers = #tpu.dot_dimension_numbers<[1], [0], [0], [1], [0, 0, 1, 1], [], []>} : vector<256x128xf32>, vector<128x128xf32>, vector<256x128xf32> -> vector<256x128xf32>
    %17 = arith.addf %11, %16 : vector<256x128xf32>
    %c0_28 = arith.constant 0 : index
    %c1_29 = arith.constant 1 : index
    %c0_30 = arith.constant 0 : index
    %18 = vector.load %arg7[%c0_28, %c1_29, %c0_30] : memref<18x18x128xf32, #tpu.memory_space<vmem>>, vector<16x16x128xf32>
    %19 = vector.shape_cast %18 : vector<16x16x128xf32> to vector<256x128xf32>
    %c0_31 = arith.constant 0 : index
    %c1_32 = arith.constant 1 : index
    %c0_33 = arith.constant 0 : index
    %c0_34 = arith.constant 0 : index
    %20 = vector.load %arg2[%c0_31, %c1_32, %c0_33, %c0_34] : memref<3x3x128x128xf32, #tpu.memory_space<vmem>>, vector<1x1x128x128xf32>
    %21 = vector.shape_cast %20 : vector<1x1x128x128xf32> to vector<128x128xf32>
    %cst_35 = arith.constant dense<0.000000e+00> : vector<256x128xf32>
    %22 = tpu.matmul %19, %21, %cst_35 {dimension_numbers = #tpu.dot_dimension_numbers<[1], [0], [0], [1], [0, 0, 1, 1], [], []>} : vector<256x128xf32>, vector<128x128xf32>, vector<256x128xf32> -> vector<256x128xf32>
    %23 = arith.addf %17, %22 : vector<256x128xf32>
    %c0_36 = arith.constant 0 : index
    %c2 = arith.constant 2 : index
    %c0_37 = arith.constant 0 : index
    %24 = vector.load %arg7[%c0_36, %c2, %c0_37] : memref<18x18x128xf32, #tpu.memory_space<vmem>>, vector<16x16x128xf32>
    %25 = vector.shape_cast %24 : vector<16x16x128xf32> to vector<256x128xf32>
    %c0_38 = arith.constant 0 : index
    %c2_39 = arith.constant 2 : index
    %c0_40 = arith.constant 0 : index
    %c0_41 = arith.constant 0 : index
    %26 = vector.load %arg2[%c0_38, %c2_39, %c0_40, %c0_41] : memref<3x3x128x128xf32, #tpu.memory_space<vmem>>, vector<1x1x128x128xf32>
    %27 = vector.shape_cast %26 : vector<1x1x128x128xf32> to vector<128x128xf32>
    %cst_42 = arith.constant dense<0.000000e+00> : vector<256x128xf32>
    %28 = tpu.matmul %25, %27, %cst_42 {dimension_numbers = #tpu.dot_dimension_numbers<[1], [0], [0], [1], [0, 0, 1, 1], [], []>} : vector<256x128xf32>, vector<128x128xf32>, vector<256x128xf32> -> vector<256x128xf32>
    %29 = arith.addf %23, %28 : vector<256x128xf32>
    %c1_43 = arith.constant 1 : index
    %c0_44 = arith.constant 0 : index
    %c0_45 = arith.constant 0 : index
    %30 = vector.load %arg7[%c1_43, %c0_44, %c0_45] : memref<18x18x128xf32, #tpu.memory_space<vmem>>, vector<16x16x128xf32>
    %31 = vector.shape_cast %30 : vector<16x16x128xf32> to vector<256x128xf32>
    %c1_46 = arith.constant 1 : index
    %c0_47 = arith.constant 0 : index
    %c0_48 = arith.constant 0 : index
    %c0_49 = arith.constant 0 : index
    %32 = vector.load %arg2[%c1_46, %c0_47, %c0_48, %c0_49] : memref<3x3x128x128xf32, #tpu.memory_space<vmem>>, vector<1x1x128x128xf32>
    %33 = vector.shape_cast %32 : vector<1x1x128x128xf32> to vector<128x128xf32>
    %cst_50 = arith.constant dense<0.000000e+00> : vector<256x128xf32>
    %34 = tpu.matmul %31, %33, %cst_50 {dimension_numbers = #tpu.dot_dimension_numbers<[1], [0], [0], [1], [0, 0, 1, 1], [], []>} : vector<256x128xf32>, vector<128x128xf32>, vector<256x128xf32> -> vector<256x128xf32>
    %35 = arith.addf %29, %34 : vector<256x128xf32>
    %c1_51 = arith.constant 1 : index
    %c1_52 = arith.constant 1 : index
    %c0_53 = arith.constant 0 : index
    %36 = vector.load %arg7[%c1_51, %c1_52, %c0_53] : memref<18x18x128xf32, #tpu.memory_space<vmem>>, vector<16x16x128xf32>
    %37 = vector.shape_cast %36 : vector<16x16x128xf32> to vector<256x128xf32>
    %c1_54 = arith.constant 1 : index
    %c1_55 = arith.constant 1 : index
    %c0_56 = arith.constant 0 : index
    %c0_57 = arith.constant 0 : index
    %38 = vector.load %arg2[%c1_54, %c1_55, %c0_56, %c0_57] : memref<3x3x128x128xf32, #tpu.memory_space<vmem>>, vector<1x1x128x128xf32>
    %39 = vector.shape_cast %38 : vector<1x1x128x128xf32> to vector<128x128xf32>
    %cst_58 = arith.constant dense<0.000000e+00> : vector<256x128xf32>
    %40 = tpu.matmul %37, %39, %cst_58 {dimension_numbers = #tpu.dot_dimension_numbers<[1], [0], [0], [1], [0, 0, 1, 1], [], []>} : vector<256x128xf32>, vector<128x128xf32>, vector<256x128xf32> -> vector<256x128xf32>
    %41 = arith.addf %35, %40 : vector<256x128xf32>
    %c1_59 = arith.constant 1 : index
    %c2_60 = arith.constant 2 : index
    %c0_61 = arith.constant 0 : index
    %42 = vector.load %arg7[%c1_59, %c2_60, %c0_61] : memref<18x18x128xf32, #tpu.memory_space<vmem>>, vector<16x16x128xf32>
    %43 = vector.shape_cast %42 : vector<16x16x128xf32> to vector<256x128xf32>
    %c1_62 = arith.constant 1 : index
    %c2_63 = arith.constant 2 : index
    %c0_64 = arith.constant 0 : index
    %c0_65 = arith.constant 0 : index
    %44 = vector.load %arg2[%c1_62, %c2_63, %c0_64, %c0_65] : memref<3x3x128x128xf32, #tpu.memory_space<vmem>>, vector<1x1x128x128xf32>
    %45 = vector.shape_cast %44 : vector<1x1x128x128xf32> to vector<128x128xf32>
    %cst_66 = arith.constant dense<0.000000e+00> : vector<256x128xf32>
    %46 = tpu.matmul %43, %45, %cst_66 {dimension_numbers = #tpu.dot_dimension_numbers<[1], [0], [0], [1], [0, 0, 1, 1], [], []>} : vector<256x128xf32>, vector<128x128xf32>, vector<256x128xf32> -> vector<256x128xf32>
    %47 = arith.addf %41, %46 : vector<256x128xf32>
    %c2_67 = arith.constant 2 : index
    %c0_68 = arith.constant 0 : index
    %c0_69 = arith.constant 0 : index
    %48 = vector.load %arg7[%c2_67, %c0_68, %c0_69] : memref<18x18x128xf32, #tpu.memory_space<vmem>>, vector<16x16x128xf32>
    %49 = vector.shape_cast %48 : vector<16x16x128xf32> to vector<256x128xf32>
    %c2_70 = arith.constant 2 : index
    %c0_71 = arith.constant 0 : index
    %c0_72 = arith.constant 0 : index
    %c0_73 = arith.constant 0 : index
    %50 = vector.load %arg2[%c2_70, %c0_71, %c0_72, %c0_73] : memref<3x3x128x128xf32, #tpu.memory_space<vmem>>, vector<1x1x128x128xf32>
    %51 = vector.shape_cast %50 : vector<1x1x128x128xf32> to vector<128x128xf32>
    %cst_74 = arith.constant dense<0.000000e+00> : vector<256x128xf32>
    %52 = tpu.matmul %49, %51, %cst_74 {dimension_numbers = #tpu.dot_dimension_numbers<[1], [0], [0], [1], [0, 0, 1, 1], [], []>} : vector<256x128xf32>, vector<128x128xf32>, vector<256x128xf32> -> vector<256x128xf32>
    %53 = arith.addf %47, %52 : vector<256x128xf32>
    %c2_75 = arith.constant 2 : index
    %c1_76 = arith.constant 1 : index
    %c0_77 = arith.constant 0 : index
    %54 = vector.load %arg7[%c2_75, %c1_76, %c0_77] : memref<18x18x128xf32, #tpu.memory_space<vmem>>, vector<16x16x128xf32>
    %55 = vector.shape_cast %54 : vector<16x16x128xf32> to vector<256x128xf32>
    %c2_78 = arith.constant 2 : index
    %c1_79 = arith.constant 1 : index
    %c0_80 = arith.constant 0 : index
    %c0_81 = arith.constant 0 : index
    %56 = vector.load %arg2[%c2_78, %c1_79, %c0_80, %c0_81] : memref<3x3x128x128xf32, #tpu.memory_space<vmem>>, vector<1x1x128x128xf32>
    %57 = vector.shape_cast %56 : vector<1x1x128x128xf32> to vector<128x128xf32>
    %cst_82 = arith.constant dense<0.000000e+00> : vector<256x128xf32>
    %58 = tpu.matmul %55, %57, %cst_82 {dimension_numbers = #tpu.dot_dimension_numbers<[1], [0], [0], [1], [0, 0, 1, 1], [], []>} : vector<256x128xf32>, vector<128x128xf32>, vector<256x128xf32> -> vector<256x128xf32>
    %59 = arith.addf %53, %58 : vector<256x128xf32>
    %c2_83 = arith.constant 2 : index
    %c2_84 = arith.constant 2 : index
    %c0_85 = arith.constant 0 : index
    %60 = vector.load %arg7[%c2_83, %c2_84, %c0_85] : memref<18x18x128xf32, #tpu.memory_space<vmem>>, vector<16x16x128xf32>
    %61 = vector.shape_cast %60 : vector<16x16x128xf32> to vector<256x128xf32>
    %c2_86 = arith.constant 2 : index
    %c2_87 = arith.constant 2 : index
    %c0_88 = arith.constant 0 : index
    %c0_89 = arith.constant 0 : index
    %62 = vector.load %arg2[%c2_86, %c2_87, %c0_88, %c0_89] : memref<3x3x128x128xf32, #tpu.memory_space<vmem>>, vector<1x1x128x128xf32>
    %63 = vector.shape_cast %62 : vector<1x1x128x128xf32> to vector<128x128xf32>
    %cst_90 = arith.constant dense<0.000000e+00> : vector<256x128xf32>
    %64 = tpu.matmul %61, %63, %cst_90 {dimension_numbers = #tpu.dot_dimension_numbers<[1], [0], [0], [1], [0, 0, 1, 1], [], []>} : vector<256x128xf32>, vector<128x128xf32>, vector<256x128xf32> -> vector<256x128xf32>
    %65 = arith.addf %59, %64 : vector<256x128xf32>
    %66 = vector.shape_cast %65 : vector<256x128xf32> to vector<16x16x128xf32>
    %c0_91 = arith.constant 0 : index
    %c0_92 = arith.constant 0 : index
    %67 = vector.load %arg4[%c0_91, %c0_92] : memref<1x128xf32, #tpu.memory_space<vmem>>, vector<1x128xf32>
    %68 = vector.shape_cast %67 : vector<1x128xf32> to vector<1x1x128xf32>
    %69 = vector.broadcast %68 : vector<1x1x128xf32> to vector<16x16x128xf32>
    %70 = arith.addf %66, %69 : vector<16x16x128xf32>
    %cst_93 = arith.constant 0.000000e+00 : f32
    %71 = vector.broadcast %cst_93 : f32 to vector<16x16x128xf32>
    %72 = arith.maximumf %70, %71 : vector<16x16x128xf32>
    %cst_94 = arith.constant 0.000000e+00 : f32
    %73 = vector.broadcast %cst_94 : f32 to vector<1x18x128xf32>
    %c0_95 = arith.constant 0 : index
    %c0_96 = arith.constant 0 : index
    %c0_97 = arith.constant 0 : index
    %74 = vector.load %arg8[%c0_95, %c0_96, %c0_97] : memref<18x18x128xf32, #tpu.memory_space<vmem>>, vector<1x18x128xf32>
    tpu.vector_store %arg8[%c0_95, %c0_96, %c0_97], %73 {strides = array<i32>} : memref<18x18x128xf32, #tpu.memory_space<vmem>>, vector<1x18x128xf32>,
    %cst_98 = arith.constant 0.000000e+00 : f32
    %75 = vector.broadcast %cst_98 : f32 to vector<1x18x128xf32>
    %c17_99 = arith.constant 17 : index
    %c0_100 = arith.constant 0 : index
    %c0_101 = arith.constant 0 : index
    %76 = vector.load %arg8[%c17_99, %c0_100, %c0_101] : memref<18x18x128xf32, #tpu.memory_space<vmem>>, vector<1x18x128xf32>
    tpu.vector_store %arg8[%c17_99, %c0_100, %c0_101], %75 {strides = array<i32>} : memref<18x18x128xf32, #tpu.memory_space<vmem>>, vector<1x18x128xf32>,
    %cst_102 = arith.constant 0.000000e+00 : f32
    %77 = vector.broadcast %cst_102 : f32 to vector<18x1x128xf32>
    %c0_103 = arith.constant 0 : index
    %c0_104 = arith.constant 0 : index
    %c0_105 = arith.constant 0 : index
    %78 = vector.load %arg8[%c0_103, %c0_104, %c0_105] : memref<18x18x128xf32, #tpu.memory_space<vmem>>, vector<18x1x128xf32>
    tpu.vector_store %arg8[%c0_103, %c0_104, %c0_105], %77 {strides = array<i32>} : memref<18x18x128xf32, #tpu.memory_space<vmem>>, vector<18x1x128xf32>,
    %cst_106 = arith.constant 0.000000e+00 : f32
    %79 = vector.broadcast %cst_106 : f32 to vector<18x1x128xf32>
    %c0_107 = arith.constant 0 : index
    %c17_108 = arith.constant 17 : index
    %c0_109 = arith.constant 0 : index
    %80 = vector.load %arg8[%c0_107, %c17_108, %c0_109] : memref<18x18x128xf32, #tpu.memory_space<vmem>>, vector<18x1x128xf32>
    tpu.vector_store %arg8[%c0_107, %c17_108, %c0_109], %79 {strides = array<i32>} : memref<18x18x128xf32, #tpu.memory_space<vmem>>, vector<18x1x128xf32>,
    %c1_110 = arith.constant 1 : index
    %c1_111 = arith.constant 1 : index
    %c0_112 = arith.constant 0 : index
    %81 = vector.load %arg8[%c1_110, %c1_111, %c0_112] : memref<18x18x128xf32, #tpu.memory_space<vmem>>, vector<16x16x128xf32>
    tpu.vector_store %arg8[%c1_110, %c1_111, %c0_112], %72 {strides = array<i32>} : memref<18x18x128xf32, #tpu.memory_space<vmem>>, vector<16x16x128xf32>,
    %cst_113 = arith.constant 0.000000e+00 : f32
    %82 = vector.broadcast %cst_113 : f32 to vector<256x128xf32>
    %c0_114 = arith.constant 0 : index
    %c0_115 = arith.constant 0 : index
    %c0_116 = arith.constant 0 : index
    %83 = vector.load %arg8[%c0_114, %c0_115, %c0_116] : memref<18x18x128xf32, #tpu.memory_space<vmem>>, vector<16x16x128xf32>
    %84 = vector.shape_cast %83 : vector<16x16x128xf32> to vector<256x128xf32>
    %c0_117 = arith.constant 0 : index
    %c0_118 = arith.constant 0 : index
    %c0_119 = arith.constant 0 : index
    %c0_120 = arith.constant 0 : index
    %85 = vector.load %arg3[%c0_117, %c0_118, %c0_119, %c0_120] : memref<3x3x128x128xf32, #tpu.memory_space<vmem>>, vector<1x1x128x128xf32>
    %86 = vector.shape_cast %85 : vector<1x1x128x128xf32> to vector<128x128xf32>
    %cst_121 = arith.constant dense<0.000000e+00> : vector<256x128xf32>
    %87 = tpu.matmul %84, %86, %cst_121 {dimension_numbers = #tpu.dot_dimension_numbers<[1], [0], [0], [1], [0, 0, 1, 1], [], []>} : vector<256x128xf32>, vector<128x128xf32>, vector<256x128xf32> -> vector<256x128xf32>
    %88 = arith.addf %82, %87 : vector<256x128xf32>
    %c0_122 = arith.constant 0 : index
    %c1_123 = arith.constant 1 : index
    %c0_124 = arith.constant 0 : index
    %89 = vector.load %arg8[%c0_122, %c1_123, %c0_124] : memref<18x18x128xf32, #tpu.memory_space<vmem>>, vector<16x16x128xf32>
    %90 = vector.shape_cast %89 : vector<16x16x128xf32> to vector<256x128xf32>
    %c0_125 = arith.constant 0 : index
    %c1_126 = arith.constant 1 : index
    %c0_127 = arith.constant 0 : index
    %c0_128 = arith.constant 0 : index
    %91 = vector.load %arg3[%c0_125, %c1_126, %c0_127, %c0_128] : memref<3x3x128x128xf32, #tpu.memory_space<vmem>>, vector<1x1x128x128xf32>
    %92 = vector.shape_cast %91 : vector<1x1x128x128xf32> to vector<128x128xf32>
    %cst_129 = arith.constant dense<0.000000e+00> : vector<256x128xf32>
    %93 = tpu.matmul %90, %92, %cst_129 {dimension_numbers = #tpu.dot_dimension_numbers<[1], [0], [0], [1], [0, 0, 1, 1], [], []>} : vector<256x128xf32>, vector<128x128xf32>, vector<256x128xf32> -> vector<256x128xf32>
    %94 = arith.addf %88, %93 : vector<256x128xf32>
    %c0_130 = arith.constant 0 : index
    %c2_131 = arith.constant 2 : index
    %c0_132 = arith.constant 0 : index
    %95 = vector.load %arg8[%c0_130, %c2_131, %c0_132] : memref<18x18x128xf32, #tpu.memory_space<vmem>>, vector<16x16x128xf32>
    %96 = vector.shape_cast %95 : vector<16x16x128xf32> to vector<256x128xf32>
    %c0_133 = arith.constant 0 : index
    %c2_134 = arith.constant 2 : index
    %c0_135 = arith.constant 0 : index
    %c0_136 = arith.constant 0 : index
    %97 = vector.load %arg3[%c0_133, %c2_134, %c0_135, %c0_136] : memref<3x3x128x128xf32, #tpu.memory_space<vmem>>, vector<1x1x128x128xf32>
    %98 = vector.shape_cast %97 : vector<1x1x128x128xf32> to vector<128x128xf32>
    %cst_137 = arith.constant dense<0.000000e+00> : vector<256x128xf32>
    %99 = tpu.matmul %96, %98, %cst_137 {dimension_numbers = #tpu.dot_dimension_numbers<[1], [0], [0], [1], [0, 0, 1, 1], [], []>} : vector<256x128xf32>, vector<128x128xf32>, vector<256x128xf32> -> vector<256x128xf32>
    %100 = arith.addf %94, %99 : vector<256x128xf32>
    %c1_138 = arith.constant 1 : index
    %c0_139 = arith.constant 0 : index
    %c0_140 = arith.constant 0 : index
    %101 = vector.load %arg8[%c1_138, %c0_139, %c0_140] : memref<18x18x128xf32, #tpu.memory_space<vmem>>, vector<16x16x128xf32>
    %102 = vector.shape_cast %101 : vector<16x16x128xf32> to vector<256x128xf32>
    %c1_141 = arith.constant 1 : index
    %c0_142 = arith.constant 0 : index
    %c0_143 = arith.constant 0 : index
    %c0_144 = arith.constant 0 : index
    %103 = vector.load %arg3[%c1_141, %c0_142, %c0_143, %c0_144] : memref<3x3x128x128xf32, #tpu.memory_space<vmem>>, vector<1x1x128x128xf32>
    %104 = vector.shape_cast %103 : vector<1x1x128x128xf32> to vector<128x128xf32>
    %cst_145 = arith.constant dense<0.000000e+00> : vector<256x128xf32>
    %105 = tpu.matmul %102, %104, %cst_145 {dimension_numbers = #tpu.dot_dimension_numbers<[1], [0], [0], [1], [0, 0, 1, 1], [], []>} : vector<256x128xf32>, vector<128x128xf32>, vector<256x128xf32> -> vector<256x128xf32>
    %106 = arith.addf %100, %105 : vector<256x128xf32>
    %c1_146 = arith.constant 1 : index
    %c1_147 = arith.constant 1 : index
    %c0_148 = arith.constant 0 : index
    %107 = vector.load %arg8[%c1_146, %c1_147, %c0_148] : memref<18x18x128xf32, #tpu.memory_space<vmem>>, vector<16x16x128xf32>
    %108 = vector.shape_cast %107 : vector<16x16x128xf32> to vector<256x128xf32>
    %c1_149 = arith.constant 1 : index
    %c1_150 = arith.constant 1 : index
    %c0_151 = arith.constant 0 : index
    %c0_152 = arith.constant 0 : index
    %109 = vector.load %arg3[%c1_149, %c1_150, %c0_151, %c0_152] : memref<3x3x128x128xf32, #tpu.memory_space<vmem>>, vector<1x1x128x128xf32>
    %110 = vector.shape_cast %109 : vector<1x1x128x128xf32> to vector<128x128xf32>
    %cst_153 = arith.constant dense<0.000000e+00> : vector<256x128xf32>
    %111 = tpu.matmul %108, %110, %cst_153 {dimension_numbers = #tpu.dot_dimension_numbers<[1], [0], [0], [1], [0, 0, 1, 1], [], []>} : vector<256x128xf32>, vector<128x128xf32>, vector<256x128xf32> -> vector<256x128xf32>
    %112 = arith.addf %106, %111 : vector<256x128xf32>
    %c1_154 = arith.constant 1 : index
    %c2_155 = arith.constant 2 : index
    %c0_156 = arith.constant 0 : index
    %113 = vector.load %arg8[%c1_154, %c2_155, %c0_156] : memref<18x18x128xf32, #tpu.memory_space<vmem>>, vector<16x16x128xf32>
    %114 = vector.shape_cast %113 : vector<16x16x128xf32> to vector<256x128xf32>
    %c1_157 = arith.constant 1 : index
    %c2_158 = arith.constant 2 : index
    %c0_159 = arith.constant 0 : index
    %c0_160 = arith.constant 0 : index
    %115 = vector.load %arg3[%c1_157, %c2_158, %c0_159, %c0_160] : memref<3x3x128x128xf32, #tpu.memory_space<vmem>>, vector<1x1x128x128xf32>
    %116 = vector.shape_cast %115 : vector<1x1x128x128xf32> to vector<128x128xf32>
    %cst_161 = arith.constant dense<0.000000e+00> : vector<256x128xf32>
    %117 = tpu.matmul %114, %116, %cst_161 {dimension_numbers = #tpu.dot_dimension_numbers<[1], [0], [0], [1], [0, 0, 1, 1], [], []>} : vector<256x128xf32>, vector<128x128xf32>, vector<256x128xf32> -> vector<256x128xf32>
    %118 = arith.addf %112, %117 : vector<256x128xf32>
    %c2_162 = arith.constant 2 : index
    %c0_163 = arith.constant 0 : index
    %c0_164 = arith.constant 0 : index
    %119 = vector.load %arg8[%c2_162, %c0_163, %c0_164] : memref<18x18x128xf32, #tpu.memory_space<vmem>>, vector<16x16x128xf32>
    %120 = vector.shape_cast %119 : vector<16x16x128xf32> to vector<256x128xf32>
    %c2_165 = arith.constant 2 : index
    %c0_166 = arith.constant 0 : index
    %c0_167 = arith.constant 0 : index
    %c0_168 = arith.constant 0 : index
    %121 = vector.load %arg3[%c2_165, %c0_166, %c0_167, %c0_168] : memref<3x3x128x128xf32, #tpu.memory_space<vmem>>, vector<1x1x128x128xf32>
    %122 = vector.shape_cast %121 : vector<1x1x128x128xf32> to vector<128x128xf32>
    %cst_169 = arith.constant dense<0.000000e+00> : vector<256x128xf32>
    %123 = tpu.matmul %120, %122, %cst_169 {dimension_numbers = #tpu.dot_dimension_numbers<[1], [0], [0], [1], [0, 0, 1, 1], [], []>} : vector<256x128xf32>, vector<128x128xf32>, vector<256x128xf32> -> vector<256x128xf32>
    %124 = arith.addf %118, %123 : vector<256x128xf32>
    %c2_170 = arith.constant 2 : index
    %c1_171 = arith.constant 1 : index
    %c0_172 = arith.constant 0 : index
    %125 = vector.load %arg8[%c2_170, %c1_171, %c0_172] : memref<18x18x128xf32, #tpu.memory_space<vmem>>, vector<16x16x128xf32>
    %126 = vector.shape_cast %125 : vector<16x16x128xf32> to vector<256x128xf32>
    %c2_173 = arith.constant 2 : index
    %c1_174 = arith.constant 1 : index
    %c0_175 = arith.constant 0 : index
    %c0_176 = arith.constant 0 : index
    %127 = vector.load %arg3[%c2_173, %c1_174, %c0_175, %c0_176] : memref<3x3x128x128xf32, #tpu.memory_space<vmem>>, vector<1x1x128x128xf32>
    %128 = vector.shape_cast %127 : vector<1x1x128x128xf32> to vector<128x128xf32>
    %cst_177 = arith.constant dense<0.000000e+00> : vector<256x128xf32>
    %129 = tpu.matmul %126, %128, %cst_177 {dimension_numbers = #tpu.dot_dimension_numbers<[1], [0], [0], [1], [0, 0, 1, 1], [], []>} : vector<256x128xf32>, vector<128x128xf32>, vector<256x128xf32> -> vector<256x128xf32>
    %130 = arith.addf %124, %129 : vector<256x128xf32>
    %c2_178 = arith.constant 2 : index
    %c2_179 = arith.constant 2 : index
    %c0_180 = arith.constant 0 : index
    %131 = vector.load %arg8[%c2_178, %c2_179, %c0_180] : memref<18x18x128xf32, #tpu.memory_space<vmem>>, vector<16x16x128xf32>
    %132 = vector.shape_cast %131 : vector<16x16x128xf32> to vector<256x128xf32>
    %c2_181 = arith.constant 2 : index
    %c2_182 = arith.constant 2 : index
    %c0_183 = arith.constant 0 : index
    %c0_184 = arith.constant 0 : index
    %133 = vector.load %arg3[%c2_181, %c2_182, %c0_183, %c0_184] : memref<3x3x128x128xf32, #tpu.memory_space<vmem>>, vector<1x1x128x128xf32>
    %134 = vector.shape_cast %133 : vector<1x1x128x128xf32> to vector<128x128xf32>
    %cst_185 = arith.constant dense<0.000000e+00> : vector<256x128xf32>
    %135 = tpu.matmul %132, %134, %cst_185 {dimension_numbers = #tpu.dot_dimension_numbers<[1], [0], [0], [1], [0, 0, 1, 1], [], []>} : vector<256x128xf32>, vector<128x128xf32>, vector<256x128xf32> -> vector<256x128xf32>
    %136 = arith.addf %130, %135 : vector<256x128xf32>
    %137 = vector.shape_cast %136 : vector<256x128xf32> to vector<16x16x128xf32>
    %c0_186 = arith.constant 0 : index
    %c0_187 = arith.constant 0 : index
    %138 = vector.load %arg5[%c0_186, %c0_187] : memref<1x128xf32, #tpu.memory_space<vmem>>, vector<1x128xf32>
    %139 = vector.shape_cast %138 : vector<1x128xf32> to vector<1x1x128xf32>
    %140 = vector.broadcast %139 : vector<1x1x128xf32> to vector<16x16x128xf32>
    %141 = arith.addf %137, %140 : vector<16x16x128xf32>
    %142 = arith.addf %141, %1 : vector<16x16x128xf32>
    %cst_188 = arith.constant 0.000000e+00 : f32
    %143 = vector.broadcast %cst_188 : f32 to vector<16x16x128xf32>
    %144 = arith.maximumf %142, %143 : vector<16x16x128xf32>
    %c0_189 = arith.constant 0 : index
    %c0_190 = arith.constant 0 : index
    %c0_191 = arith.constant 0 : index
    %c0_192 = arith.constant 0 : index
    %145 = vector.load %arg6[%c0_189, %c0_190, %c0_191, %c0_192] : memref<1x16x16x128xf32, #tpu.memory_space<vmem>>, vector<1x16x16x128xf32>
    %146 = vector.shape_cast %145 : vector<1x16x16x128xf32> to vector<16x16x128xf32>
    %147 = vector.shape_cast %144 : vector<16x16x128xf32> to vector<1x16x16x128xf32>
    tpu.vector_store %arg6[%c0_189, %c0_190, %c0_191, %c0_192], %147 {strides = array<i32>} : memref<1x16x16x128xf32, #tpu.memory_space<vmem>>, vector<1x16x16x128xf32>,
    return
  }
  func.func @transform_0(%arg0: i32) -> (i32, i32, i32, i32) {
    %c0_i32 = arith.constant 0 : i32
    %c0_i32_0 = arith.constant 0 : i32
    %c0_i32_1 = arith.constant 0 : i32
    %c0_i32_2 = arith.constant 0 : i32
    return %arg0, %c0_i32, %c0_i32_0, %c0_i32_1 : i32, i32, i32, i32
  }
  func.func @transform_1(%arg0: i32) -> (i32, i32, i32, i32) {
    %c0_i32 = arith.constant 0 : i32
    %c0_i32_0 = arith.constant 0 : i32
    %c0_i32_1 = arith.constant 0 : i32
    %c0_i32_2 = arith.constant 0 : i32
    %c0_i32_3 = arith.constant 0 : i32
    return %c0_i32, %c0_i32_0, %c0_i32_1, %c0_i32_2 : i32, i32, i32, i32
  }
  func.func @transform_2(%arg0: i32) -> (i32, i32, i32, i32) {
    %c0_i32 = arith.constant 0 : i32
    %c0_i32_0 = arith.constant 0 : i32
    %c0_i32_1 = arith.constant 0 : i32
    %c0_i32_2 = arith.constant 0 : i32
    %c0_i32_3 = arith.constant 0 : i32
    return %c0_i32, %c0_i32_0, %c0_i32_1, %c0_i32_2 : i32, i32, i32, i32
  }
  func.func @transform_3(%arg0: i32) -> (i32, i32) {
    %c0_i32 = arith.constant 0 : i32
    %c0_i32_0 = arith.constant 0 : i32
    %c0_i32_1 = arith.constant 0 : i32
    return %c0_i32, %c0_i32_0 : i32, i32
  }
  func.func @transform_4(%arg0: i32) -> (i32, i32) {
    %c0_i32 = arith.constant 0 : i32
    %c0_i32_0 = arith.constant 0 : i32
    %c0_i32_1 = arith.constant 0 : i32
    return %c0_i32, %c0_i32_0 : i32, i32
  }
  func.func @transform_5(%arg0: i32) -> (i32, i32, i32, i32) {
    %c0_i32 = arith.constant 0 : i32
    %c0_i32_0 = arith.constant 0 : i32
    %c0_i32_1 = arith.constant 0 : i32
    %c0_i32_2 = arith.constant 0 : i32
    return %arg0, %c0_i32, %c0_i32_0, %c0_i32_1 : i32, i32, i32, i32
  }
}

</mosaic_0001>

<bundles_post_ra>
// kernel: tpu_custom_call.1
= control target key start
LH: loop header
LB: loop body
LE: loop exit
PB: predicated region body
PF: predicated region fallthrough
CT: control target
= control target key end

     0   :  { %10 = vsyncpa [#allocation5], 0  ;;  %s11221_s0 = inlined_call_operand.hbm [shape: f32[2,16,16,128], index: 0, kind: input, shape index: {}]   ;;  %s11222_s1 = inlined_call_operand.hbm [shape: f32[3,3,128,128], index: 1, kind: input, shape index: {}]   ;;  %s11223_s2 = inlined_call_operand.hbm [shape: f32[3,3,128,128], index: 2, kind: input, shape index: {}]   ;;  %s11224_s3 = inlined_call_operand.vmem [shape: f32[1,128], index: 3, kind: input, shape index: {}]   ;;  %s11225_s4 = inlined_call_operand.vmem [shape: f32[1,128], index: 4, kind: input, shape index: {}]   ;;  %s11226_s5 = inlined_call_operand.hbm [shape: f32[2,16,16,128], index: 5, kind: output, shape index: {}]  }
   0x1   :  { %12 = vsyncpa [#allocation5 + $0x1], 0 }
   0x2   :  { %13 = vsyncpa [#allocation8], 0 }
   0x3   :  { %14 = vsyncpa [#allocation6], 0 }
   0x4   :  { %16 = vsyncpa [#allocation6 + $0x1], 0  ;;  %s9867_s18 = smov 0   ;;  %s9869_s19 = smov 0  }
   0x5   :  { %s9871_s20 = smov 0   ;;  %s9873_s21 = smov 0  }
   0x6 LB: > { %s9888_s22 = sadd.s32 4294967295, %s9826_s21   ;;  %s6148_s23 = sadd.s32 4294967294, %s9826_s21   ;;  %s9826_s21 = sphi %s9873_s21, %s11472_s21   ;;  %s9822_s20 = sphi %s9871_s20, %s11471_s20   ;;  %s9818_s19 = sphi %s9869_s19, %s11470_s19   ;;  %s9814_s18 = sphi %s9867_s18, %s11469_s18  }
   0x7   : > { %p42_p0 = scmp.ne.s32.totalorder %s9818_s19, %s9814_s18  ;;  %p11227_p1 = scmp.eq.s32.totalorder %s9888_s22, 0 }
   0x8   : > { %p156_p3 = scmp.eq.s32.totalorder %s6148_s23, 1  ;;  %p6149_p5 = scmp.ge.s32.totalorder %s9826_s21, 1 }
   0x9   : > { %p9897_p4 = por %p11227_p1, %p42_p0  ;;  %p163_p7 = scmp.lt.s32.totalorder %s9826_s21, 3 }
   0xa   : > { %p9902_p6 = por %p156_p3, %p42_p0  ;;  %s9828_s27 = smov [#allocation7]  }
   0xb   : > { %s11306_s24 = scalar_select %p9897_p4, 1, 0 }
   0xc   : > { %s11307_s25 = scalar_select %p9902_p6, 1, 0 }
   0xd   : > { %p9907_p8 = pnand %p6149_p5, %p163_p7  ;;  %s175_s28 = sshll.u32 %s9828_s27, 4  ;;  %s9911_s28 = int_to_ptr.vmem [resolvable:$true] %s175_s28 }
   0xe   : > { %s9829_s30 = smov [#allocation9]   ;;  %s9670_s9 = scalar_lea.hbm %s11222_s1, 18432 }
   0xf   : > { %p9574_p9 = pneg %p9907_p8  ;;  %s188_s6 = sshll.u32 %s9829_s30, 4  ;;  %s9922_s6 = int_to_ptr.vmem [resolvable:$true] %s188_s6 }
  0x10   : > { %p9671_p12 = scmp.ne.s32.totalorder %s11222_s1, %s9670_s9  ;;  %p9677_p5 = scmp.lt.u32.totalorder %s9670_s9, %s11222_s1 }
  0x11   : > { %p9918_p11 = pnand %p9574_p9, %p11227_p1 }
  0x13   : > { %p9672_p13 = pneg %p9918_p11 }
  0x15   : > { %p9673_p0 = pnand %p9672_p13, %p9671_p12 }
  0x17   : > { %p9674_p3 = pneg %p9673_p0 }
  0x19   : > { %p9679_p7 = pnand %p9677_p5, %p9674_p3 }
  0x1b   : > { %9682 = shalt.err (!%p9679_p7)
}
  0x1c   : > { %s9683_s14 = scalar_lea.vmem %s9911_s28, 18432  ;;  %p9691_p2 = scmp.lt.s32.totalorder %s9911_s28, %s9911_s28 }
  0x1d   : > { %p9684_p9 = scmp.ne.s32.totalorder %s9911_s28, %s9683_s14  ;;  %p9692_p12 = scmp.lt.s32.totalorder %s9683_s14, %s9683_s14 }
  0x1f   : > { %p9686_p10 = pnand %p9684_p9, %p9672_p13  ;;  %p9693_p0 = por %p9692_p12, %p9691_p2 }
  0x21   : > { %p9687_p1 = pneg %p9686_p10 }
  0x23   : > { %p9694_p6 = pnand %p9693_p0, %p9687_p1 }
  0x25   : > { %9697 = shalt.err (!%p9694_p6)
}
  0x26   : > { %s9830_s15 = smov 128   ;;  %s9831_s16 = smov 8  }
  0x27   : > { %9577 = dma.hbm_to_vmem [thread:$0]  (!%p9918_p11), %s11222_s1, 18432, %s9911_s28, [#allocation8], %s9830_s15, %s9830_s15, %s9831_s16  }
  0x28   : > { %s9698_s7 = scalar_lea.hbm %s11223_s2, 18432 }
  0x29   : > { %p9699_p1 = scmp.ne.s32.totalorder %s11223_s2, %s9698_s7  ;;  %p9705_p10 = scmp.lt.u32.totalorder %s9698_s7, %s11223_s2 }
  0x2b   : > { %p9701_p2 = pnand %p9699_p1, %p9672_p13 }
  0x2d   : > { %p9702_p6 = pneg %p9701_p2 }
  0x2f   : > { %p9707_p3 = pnand %p9705_p10, %p9702_p6 }
  0x31   : > { %9710 = shalt.err (!%p9707_p3)
}
  0x32   : > { %s9711_s28 = scalar_lea.vmem %s9922_s6, 18432  ;;  %p9719_p12 = scmp.lt.s32.totalorder %s9922_s6, %s9922_s6 }
  0x33   : > { %p9712_p5 = scmp.ne.s32.totalorder %s9922_s6, %s9711_s28  ;;  %p9720_p0 = scmp.lt.s32.totalorder %s9711_s28, %s9711_s28 }
  0x35   : > { %p9714_p7 = pnand %p9712_p5, %p9672_p13  ;;  %p9721_p1 = por %p9720_p0, %p9719_p12 }
  0x37   : > { %p9715_p9 = pneg %p9714_p7 }
  0x39   : > { %p9722_p2 = pnand %p9721_p1, %p9715_p9 }
  0x3b   : > { %9725 = shalt.err (!%p9722_p2)
}
  0x3c   : > { %9580 = dma.hbm_to_vmem [thread:$0]  (!%p9918_p11), %s11223_s2, 18432, %s9922_s6, [#allocation8], %s9830_s15, %s9830_s15, %s9831_s16  }
  0x3d   : > { %s9983_s29 = sadd.s32 1, %s9826_s21   ;;  %s29_s14 = sadd.s32 1, %s9822_s20 }
  0x3e   : > { %s26_s17 = ssub.s32 %s9826_s21, %s9983_s29  ;;  %p36_p13 = scmp.ne.s32.totalorder %s9822_s20, %s9818_s19 }
  0x3f   : > { %p27_p6 = scmp.eq.s32.totalorder %s26_s17, 0  ;;  %p37_p10 = scmp.eq.s32.totalorder %s9826_s21, 0 }
  0x40   : > { %p11310_p3 = scmp.eq.s32.totalorder %s9888_s22, 1  ;;  %p9591_p7 = scmp.lt.s32.totalorder %s9826_s21, 2 }
  0x41   : > { %s9999_s27 = scalar_select %p27_p6, %s9822_s20, %s29_s14  }
  0x42   : > { %p9993_p5 = por %p11310_p3, %p36_p13  ;;  %p38_p9 = por %p37_p10, %p36_p13 }
  0x43   : > { %s208_s30 = sand.u32 1, %s9822_s20   ;;  %s6168_s6 = sshll.u32 %s9826_s21, 12 }
  0x44   : > { %s11311_s23 = scalar_select %p9993_p5, 1, 0 }
  0x45   : > { %s6153_s7 = sshll.u32 %s208_s30, 8  ;;  %s10006_s10 = scalar_lea.hbm %s11221_s0, %s6168_s6 }
  0x46   : > { %s212_s11 = scalar_lea.vmem [#allocation4], %s6153_s7  ;;  %p10010_p11 = pnand %p9591_p7, %p38_p9 }
  0x47   : > { %s219_s28 = sshll.u32 %s212_s11, 4  ;;  %s10014_s13 = scalar_lea.sflag [#allocation5], %s208_s30  ;;  %s10008_s28 = int_to_ptr.vmem [resolvable:$true] %s219_s28 }
  0x48   : > { %s9726_s14 = scalar_lea.hbm %s10006_s10, 4096  ;;  %p9728_p0 = pneg %p10010_p11 }
  0x49   : > { %p9727_p12 = scmp.ne.s32.totalorder %s10006_s10, %s9726_s14  ;;  %s9731_s6 = scalar_lea.hbm %s11221_s0, 8192 }
  0x4a   : > { %p9732_p13 = scmp.lt.u32.totalorder %s10006_s10, %s11221_s0  ;;  %p9733_p6 = scmp.lt.u32.totalorder %s9731_s6, %s9726_s14 }
  0x4b   : > { %p9729_p1 = pnand %p9728_p0, %p9727_p12  ;;  %p9735_p3 = scmp.lt.u32.totalorder %s9726_s14, %s10006_s10 }
  0x4c   : > { %p9734_p10 = por %p9733_p6, %p9732_p13 }
  0x4d   : > { %p9730_p2 = pneg %p9729_p1 }
  0x4e   : > { %p9736_p7 = por %p9735_p3, %p9734_p10 }
  0x50   : > { %p9737_p9 = pnand %p9736_p7, %p9730_p2 }
  0x52   : > { %9740 = shalt.err (!%p9737_p9)
}
  0x53   : > { %s9741_s30 = scalar_lea.vmem %s10008_s28, 4096  ;;  %s9832_s11 = smov [#allocation4]  }
  0x54   : > { %p9742_p12 = scmp.ne.s32.totalorder %s10008_s28, %s9741_s30  ;;  %s9746_s17 = sshll.u32 %s9832_s11, 4  ;;  %s9747_s17 = int_to_ptr.vmem [resolvable:$false] %s9746_s17 }
  0x55   : > { %s9748_s7 = scalar_lea.vmem %s9747_s17, 8192  ;;  %p9749_p4 = scmp.lt.s32.totalorder %s10008_s28, %s9747_s17 }
  0x56   : > { %p9744_p1 = pnand %p9742_p12, %p9728_p0  ;;  %p9750_p13 = scmp.lt.s32.totalorder %s9748_s7, %s9741_s30 }
  0x58   : > { %p9745_p5 = pneg %p9744_p1  ;;  %p9751_p6 = por %p9750_p13, %p9749_p4 }
  0x5a   : > { %p9752_p10 = pnand %p9751_p6, %p9745_p5 }
  0x5c   : > { %9755 = shalt.err (!%p9752_p10)
}
  0x5d   : > { %9584 = dma.hbm_to_vmem [thread:$0]  (!%p10010_p11), %s10006_s10, 4096, %s10008_s28, %s10014_s13, %s9830_s15, %s9830_s15, %s9831_s16  }
  0x5e   : > { %231 = sbr.rel (%p9907_p8) target bundleno = 1675 (0x68b), region = 40 }
  0x65   : > { %s10048_s14 = sand.u32 1, %s9818_s19   ;;  %p11313_p4 = scmp.ne.s32.totalorder %s11306_s24, 0 }
  0x66   : > { %s6157_s6 = sshll.u32 %s10048_s14, 8  ;;  %s234_s8 = scalar_lea.sflag [#allocation5], %s10048_s14 }
  0x67   : > { %s10054_s12 = scalar_lea.vmem [#allocation4], %s6157_s6 }
  0x68   : > { %9801 = dma.done.wait (%p11313_p4), %s234_s8, 4096  }
  0x69   : > { %9803 = vsyncadd (%p11313_p4), %s234_s8, 4294963200  ;;  %p11314_p5 = scmp.eq.s32.totalorder %s9888_s22, 0 }
  0x6b   : > { %9805 = dma.done.wait (%p11314_p5), [#allocation8], 36864   ;;  %p11315_p8 = pmov %p11314_p5 }
  0x6c   : > { %v9833_v0 = vmov 0.0   ;;  %v461_v1 = vld [vmem:[#allocation7 + $0x80] sm:$0xff]  ;;  %v462_v2 = vld [vmem:[#allocation7 + $0x88] sm:$0xff]  ;;  %v463_v3 = vld [vmem:[#allocation7 + $0x90] sm:$0xff]  ;;  %s11108_s10 = scalar_lea.vmem [#allocation10], %s6157_s6  ;;  %s6169_s28 = sshll.u32 %s9888_s22, 12 }
  0x6d   : > { %9807 = vsyncadd (%p11315_p8), [#allocation8], 4294930432  ;;  %304 = vst [vmem:[#allocation2] sm:$0xff] %v9833_v0  ;;  %v8474_v4 = vpack.c.bf16 %v462_v2, %v461_v1  ;;  %v464_v5 = vld [vmem:[#allocation7 + $0x98] sm:$0xff]  ;;  %v465_v7 = vld [vmem:[#allocation7 + $0xa0] sm:$0xff]  ;;  %s6056_s13 = sshll.u32 %s11108_s10, 4  ;;  %s11173_s11 = scalar_lea.hbm %s11226_s5, %s6169_s28  ;;  %s11175_s13 = int_to_ptr.vmem [resolvable:$true] %s6056_s13 }
  0x6e   : > { %305 = vst [vmem:[#allocation2 + $0x8] sm:$0xff] %v9833_v0  ;;  %306 = vst [vmem:[#allocation2 + $0x10] sm:$0x3] %v9833_v0  ;;  %v8478_v6 = vpack.c.bf16 %v464_v5, %v463_v3  ;;  %v466_v8 = vld [vmem:[#allocation7 + $0xa8] sm:$0xff]  ;;  %v467_v11 = vld [vmem:[#allocation7 + $0xb0] sm:$0xff]  ;;  %s6043_s22 = scalar_lea.sflag [#allocation6], %s10048_s14 }
  0x6f   : > { %308 = vst [vmem:[#allocation2 + $0x198] sm:$0xff] %v9833_v0  ;;  %309 = vst [vmem:[#allocation2 + $0x1a0] sm:$0xff] %v9833_v0  ;;  %8475 = vmatprep.subr.bf16.mxu0 %v8474_v4  ;;  %v8482_v9 = vpack.c.bf16 %v466_v8, %v465_v7  ;;  %v468_v12 = vld [vmem:[#allocation7 + $0xb8] sm:$0xff]  ;;  %v10149_v13 = vld [vmem:[%s10054_s12] sm:$0xff]  ;;  %s9756_s17 = scalar_lea.vmem %s11175_s13, 4096  ;;  %p11466_p0 = scmp.ne.s32.totalorder %s11311_s23, 0 }
  0x70   : > { %310 = vst [vmem:[#allocation2 + $0x1a8] sm:$0x3] %v9833_v0  ;;  %312 = vst [vmem:[#allocation2 + $0x18] sm:$0x1] %v9833_v0  ;;  %8477 = vmatpush3.bf16.msra.mxu0 %v8474_v4  ;;  %v10153_v14 = vld [vmem:[%s10054_s12 + $0x8] sm:$0xff]  ;;  %v10156_v15 = vld [vmem:[%s10054_s12 + $0x10] sm:$0xff]  ;;  %v8486_v18 = vpack.c.bf16 %v468_v12, %v467_v11  ;;  %p9757_p11 = scmp.ne.s32.totalorder %s11175_s13, %s9756_s17 }
  0x71   : > { %313 = vst [vmem:[#allocation2 + $0x30] sm:$0x1] %v9833_v0  ;;  %314 = vst [vmem:[#allocation2 + $0x48] sm:$0x1] %v9833_v0  ;;  %8479 = vmatprep.subr.bf16.mxu0 %v8478_v6  ;;  %v10159_v16 = vld [vmem:[%s10054_s12 + $0x18] sm:$0xff]  ;;  %v10165_v17 = vld [vmem:[%s10054_s12 + $0x20] sm:$0xff] }
  0x72   : > { %315 = vst [vmem:[#allocation2 + $0x60] sm:$0x1] %v9833_v0  ;;  %316 = vst [vmem:[#allocation2 + $0x78] sm:$0x1] %v9833_v0  ;;  %v10169_v19 = vld [vmem:[%s10054_s12 + $0x28] sm:$0xff]  ;;  %v10172_v20 = vld [vmem:[%s10054_s12 + $0x30] sm:$0xff]  ;;  %p9758_p2 = pnand %p9757_p11, %p11466_p0 }
  0x73   : > { %317 = vst [vmem:[#allocation2 + $0x90] sm:$0x1] %v9833_v0  ;;  %318 = vst [vmem:[#allocation2 + $0xa8] sm:$0x1] %v9833_v0  ;;  %v10175_v21 = vld [vmem:[%s10054_s12 + $0x38] sm:$0xff]  ;;  %v469_v22 = vld [vmem:[#allocation7 + $0xc0] sm:$0xff] }
  0x74   : > { %319 = vst [vmem:[#allocation2 + $0xc0] sm:$0x1] %v9833_v0  ;;  %320 = vst [vmem:[#allocation2 + $0xd8] sm:$0x1] %v9833_v0  ;;  %8481 = vmatpush3.bf16.msra.mxu0 %v8478_v6  ;;  %v470_v23 = vld [vmem:[#allocation7 + $0xc8] sm:$0xff]  ;;  %v10181_v24 = vld [vmem:[%s10054_s12 + $0x40] sm:$0xff]  ;;  %p9759_p3 = pneg %p9758_p2 }
  0x75   : > { %321 = vst [vmem:[#allocation2 + $0xf0] sm:$0x1] %v9833_v0  ;;  %322 = vst [vmem:[#allocation2 + $0x108] sm:$0x1] %v9833_v0  ;;  %v428_v10 = vld [vmem:[#allocation2 + $0x1] sm:$0xff]  ;;  %8483 = vmatprep.subr.bf16.mxu0 %v8482_v9  ;;  %v10188_v26 = vld [vmem:[%s10054_s12 + $0x50] sm:$0xff]  ;;  %v8490_v29 = vpack.c.bf16 %v470_v23, %v469_v22 }
  0x76   : > { %323 = vst [vmem:[#allocation2 + $0x120] sm:$0x1] %v9833_v0  ;;  %324 = vst [vmem:[#allocation2 + $0x138] sm:$0x1] %v9833_v0  ;;  %7066 = vmatprep.mubr.f32.mxu0 %v428_v10  ;;  %v10185_v25 = vld [vmem:[%s10054_s12 + $0x48] sm:$0xff]  ;;  %v10191_v27 = vld [vmem:[%s10054_s12 + $0x58] sm:$0xff] }
  0x77   : > { %325 = vst [vmem:[#allocation2 + $0x150] sm:$0x1] %v9833_v0  ;;  %326 = vst [vmem:[#allocation2 + $0x168] sm:$0x1] %v9833_v0  ;;  %v10197_v28 = vld [vmem:[%s10054_s12 + $0x60] sm:$0xff]  ;;  %v10201_v30 = vld [vmem:[%s10054_s12 + $0x68] sm:$0xff] }
  0x78   : > { %327 = vst [vmem:[#allocation2 + $0x180] sm:$0x1] %v9833_v0  ;;  %330 = vst [vmem:[#allocation2 + $0x29] sm:$0x1] %v9833_v0  ;;  %8485 = vmatpush3.bf16.msra.mxu0 %v8482_v9  ;;  %v10204_v31 = vld [vmem:[%s10054_s12 + $0x70] sm:$0xff]  ;;  %v10207_v32 = vld [vmem:[%s10054_s12 + $0x78] sm:$0xff] }
  0x79   : > { %331 = vst [vmem:[#allocation2 + $0x41] sm:$0x1] %v9833_v0  ;;  %332 = vst [vmem:[#allocation2 + $0x59] sm:$0x1] %v9833_v0  ;;  %8487 = vmatprep.subr.bf16.mxu0 %v8486_v18  ;;  %v471_v33 = vld [vmem:[#allocation7 + $0xd0] sm:$0xff]  ;;  %v472_v34 = vld [vmem:[#allocation7 + $0xd8] sm:$0xff] }
  0x7a   : > { %333 = vst [vmem:[#allocation2 + $0x71] sm:$0x1] %v9833_v0  ;;  %334 = vst [vmem:[#allocation2 + $0x89] sm:$0x1] %v9833_v0  ;;  %v10213_v35 = vld [vmem:[%s10054_s12 + $0x80] sm:$0xff]  ;;  %v10217_v36 = vld [vmem:[%s10054_s12 + $0x88] sm:$0xff]  ;;  %v8494_v40 = vpack.c.bf16 %v472_v34, %v471_v33 }
  0x7b   : > { %335 = vst [vmem:[#allocation2 + $0xa1] sm:$0x1] %v9833_v0  ;;  %336 = vst [vmem:[#allocation2 + $0xb9] sm:$0x1] %v9833_v0  ;;  %v10220_v37 = vld [vmem:[%s10054_s12 + $0x90] sm:$0xff]  ;;  %v10223_v38 = vld [vmem:[%s10054_s12 + $0x98] sm:$0xff] }
  0x7c   : > { %337 = vst [vmem:[#allocation2 + $0xd1] sm:$0x1] %v9833_v0  ;;  %338 = vst [vmem:[#allocation2 + $0xe9] sm:$0x1] %v9833_v0  ;;  %8489 = vmatpush3.bf16.msra.mxu0 %v8486_v18  ;;  %v10229_v39 = vld [vmem:[%s10054_s12 + $0xa0] sm:$0xff]  ;;  %v10233_v41 = vld [vmem:[%s10054_s12 + $0xa8] sm:$0xff] }
  0x7d   : > { %339 = vst [vmem:[#allocation2 + $0x101] sm:$0x1] %v9833_v0  ;;  %340 = vst [vmem:[#allocation2 + $0x119] sm:$0x1] %v9833_v0  ;;  %8491 = vmatprep.subr.bf16.mxu0 %v8490_v29  ;;  %v10236_v42 = vld [vmem:[%s10054_s12 + $0xb0] sm:$0xff]  ;;  %v10239_v43 = vld [vmem:[%s10054_s12 + $0xb8] sm:$0xff] }
  0x7e   : > { %341 = vst [vmem:[#allocation2 + $0x131] sm:$0x1] %v9833_v0  ;;  %342 = vst [vmem:[#allocation2 + $0x149] sm:$0x1] %v9833_v0  ;;  %v473_v44 = vld [vmem:[#allocation7 + $0xe0] sm:$0xff]  ;;  %v474_v45 = vld [vmem:[#allocation7 + $0xe8] sm:$0xff] }
  0x7f   : > { %343 = vst [vmem:[#allocation2 + $0x161] sm:$0x1] %v9833_v0  ;;  %344 = vst [vmem:[#allocation2 + $0x179] sm:$0x1] %v9833_v0  ;;  %v10245_v46 = vld [vmem:[%s10054_s12 + $0xc0] sm:$0xff]  ;;  %v10249_v47 = vld [vmem:[%s10054_s12 + $0xc8] sm:$0xff]  ;;  %v8498_v51 = vpack.c.bf16 %v474_v45, %v473_v44 }
  0x80   : > { %345 = vst [vmem:[#allocation2 + $0x191] sm:$0x1] %v9833_v0  ;;  %3141 = vst [vmem:[#allocation3] sm:$0xff] %v9833_v0  ;;  %v10252_v48 = vld [vmem:[%s10054_s12 + $0xd0] sm:$0xff]  ;;  %v10255_v49 = vld [vmem:[%s10054_s12 + $0xd8] sm:$0xff]  ;;  %8493 = vmatpush3.bf16.msra.mxu0 %v8490_v29  ;;  %s9834_s7 = smov [#allocation10]  }
  0x81   : > { %3142 = vst [vmem:[#allocation3 + $0x8] sm:$0xff] %v9833_v0  ;;  %3143 = vst [vmem:[#allocation3 + $0x10] sm:$0x3] %v9833_v0  ;;  %v10261_v50 = vld [vmem:[%s10054_s12 + $0xe0] sm:$0xff]  ;;  %8495 = vmatprep.subr.bf16.mxu0 %v8494_v40  ;;  %v10265_v52 = vld [vmem:[%s10054_s12 + $0xe8] sm:$0xff]  ;;  %s9760_s6 = sshll.u32 %s9834_s7, 4  ;;  %s9761_s6 = int_to_ptr.vmem [resolvable:$false] %s9760_s6 }
  0x82   : > { %3145 = vst [vmem:[#allocation3 + $0x198] sm:$0xff] %v9833_v0  ;;  %3146 = vst [vmem:[#allocation3 + $0x1a0] sm:$0xff] %v9833_v0  ;;  %v475_v53 = vld [vmem:[#allocation7 + $0xf0] sm:$0xff]  ;;  %v476_v54 = vld [vmem:[#allocation7 + $0xf8] sm:$0xff]  ;;  %s9762_s8 = scalar_lea.vmem %s9761_s6, 8192  ;;  %p9763_p7 = scmp.lt.s32.totalorder %s11175_s13, %s9761_s6 }
  0x83   : > { %3147 = vst [vmem:[#allocation3 + $0x1a8] sm:$0x3] %v9833_v0  ;;  %3149 = vst [vmem:[#allocation3 + $0x18] sm:$0x1] %v9833_v0  ;;  %v8502_v55 = vpack.c.bf16 %v476_v54, %v475_v53  ;;  %v412_v56 = vld [vmem:[#allocation7] sm:$0xff]  ;;  %v413_v57 = vld [vmem:[#allocation7 + $0x8] sm:$0xff]  ;;  %p9764_p9 = scmp.lt.s32.totalorder %s9762_s8, %s9756_s17 }
  0x84   : > { %3150 = vst [vmem:[#allocation3 + $0x30] sm:$0x1] %v9833_v0  ;;  %3151 = vst [vmem:[#allocation3 + $0x48] sm:$0x1] %v9833_v0  ;;  %8497 = vmatpush3.bf16.msra.mxu0 %v8494_v40  ;;  %v8506_v58 = vpack.c.bf16 %v413_v57, %v412_v56  ;;  %v414_v59 = vld [vmem:[#allocation7 + $0x10] sm:$0xff]  ;;  %v415_v60 = vld [vmem:[#allocation7 + $0x18] sm:$0xff] }
  0x85   : > { %3152 = vst [vmem:[#allocation3 + $0x60] sm:$0x1] %v9833_v0  ;;  %3153 = vst [vmem:[#allocation3 + $0x78] sm:$0x1] %v9833_v0  ;;  %8499 = vmatprep.subr.bf16.mxu0 %v8498_v51  ;;  %v429_v61 = vld [vmem:[#allocation2 + $0x9] sm:$0xff]  ;;  %v8510_v62 = vpack.c.bf16 %v415_v60, %v414_v59  ;;  %v416_v63 = vld [vmem:[#allocation7 + $0x20] sm:$0xff]  ;;  %p9765_p12 = por %p9764_p9, %p9763_p7 }
  0x86   : > { %3154 = vst [vmem:[#allocation3 + $0x90] sm:$0x1] %v9833_v0  ;;  %3155 = vst [vmem:[#allocation3 + $0xa8] sm:$0x1] %v9833_v0  ;;  %v417_v1 = vld [vmem:[#allocation7 + $0x28] sm:$0xff]  ;;  %v418_v3 = vld [vmem:[#allocation7 + $0x30] sm:$0xff] }
  0x87   : > { %3156 = vst [vmem:[#allocation3 + $0xc0] sm:$0x1] %v9833_v0  ;;  %3157 = vst [vmem:[#allocation3 + $0xd8] sm:$0x1] %v9833_v0  ;;  %v8514_v2 = vpack.c.bf16 %v417_v1, %v416_v63  ;;  %v419_v4 = vld [vmem:[#allocation7 + $0x38] sm:$0xff]  ;;  %v420_v6 = vld [vmem:[#allocation7 + $0x40] sm:$0xff]  ;;  %p9766_p1 = pnand %p9765_p12, %p9759_p3 }
  0x88   : > { %3158 = vst [vmem:[#allocation3 + $0xf0] sm:$0x1] %v9833_v0  ;;  %3159 = vst [vmem:[#allocation3 + $0x108] sm:$0x1] %v9833_v0  ;;  %8501 = vmatpush3.bf16.msra.mxu0 %v8498_v51  ;;  %v8518_v5 = vpack.c.bf16 %v419_v4, %v418_v3  ;;  %v421_v7 = vld [vmem:[#allocation7 + $0x48] sm:$0xff]  ;;  %v422_v9 = vld [vmem:[#allocation7 + $0x50] sm:$0xff] }
  0x89   : > { %3160 = vst [vmem:[#allocation3 + $0x120] sm:$0x1] %v9833_v0  ;;  %3161 = vst [vmem:[#allocation3 + $0x138] sm:$0x1] %v9833_v0  ;;  %8503 = vmatprep.subr.bf16.mxu0 %v8502_v55  ;;  %v8522_v8 = vpack.c.bf16 %v421_v7, %v420_v6  ;;  %v423_v10 = vld [vmem:[#allocation7 + $0x58] sm:$0xff]  ;;  %v424_v12 = vld [vmem:[#allocation7 + $0x60] sm:$0xff] }
  0x8a   : > { %3162 = vst [vmem:[#allocation3 + $0x150] sm:$0x1] %v9833_v0  ;;  %3163 = vst [vmem:[#allocation3 + $0x168] sm:$0x1] %v9833_v0  ;;  %v8526_v11 = vpack.c.bf16 %v423_v10, %v422_v9  ;;  %v425_v18 = vld [vmem:[#allocation7 + $0x68] sm:$0xff]  ;;  %v426_v23 = vld [vmem:[#allocation7 + $0x70] sm:$0xff] }
  0x8b   : > { %3164 = vst [vmem:[#allocation3 + $0x180] sm:$0x1] %v9833_v0  ;;  %3167 = vst [vmem:[#allocation3 + $0x29] sm:$0x1] %v9833_v0  ;;  %v8530_v22 = vpack.c.bf16 %v425_v18, %v424_v12  ;;  %v427_v29 = vld [vmem:[#allocation7 + $0x78] sm:$0xff]  ;;  %v960_v34 = vld [vmem:[#allocation7 + $0x100] sm:$0xff] }
  0x8c   : > { %3168 = vst [vmem:[#allocation3 + $0x41] sm:$0x1] %v9833_v0  ;;  %3169 = vst [vmem:[#allocation3 + $0x59] sm:$0x1] %v9833_v0  ;;  %8505 = vmatpush3.bf16.msra.mxu0 %v8502_v55  ;;  %v8534_v33 = vpack.c.bf16 %v427_v29, %v426_v23  ;;  %v961_v40 = vld [vmem:[#allocation7 + $0x108] sm:$0xff]  ;;  %v962_v51 = vld [vmem:[#allocation7 + $0x110] sm:$0xff] }
  0x8d   : > { %3170 = vst [vmem:[#allocation3 + $0x71] sm:$0x1] %v9833_v0  ;;  %3171 = vst [vmem:[#allocation3 + $0x89] sm:$0x1] %v9833_v0  ;;  %8507 = vmatprep.subr.bf16.mxu0 %v8506_v58  ;;  %v8538_v44 = vpack.c.bf16 %v961_v40, %v960_v34  ;;  %v963_v53 = vld [vmem:[#allocation7 + $0x118] sm:$0xff]  ;;  %v964_v56 = vld [vmem:[#allocation7 + $0x120] sm:$0xff] }
  0x8e   : > { %3172 = vst [vmem:[#allocation3 + $0xa1] sm:$0x1] %v9833_v0  ;;  %3173 = vst [vmem:[#allocation3 + $0xb9] sm:$0x1] %v9833_v0  ;;  %v8542_v55 = vpack.c.bf16 %v963_v53, %v962_v51  ;;  %v965_v57 = vld [vmem:[#allocation7 + $0x128] sm:$0xff]  ;;  %v970_v7 = vld [vmem:[#allocation7 + $0x150] sm:$0xff] }
  0x8f   : > { %3174 = vst [vmem:[#allocation3 + $0xd1] sm:$0x1] %v9833_v0  ;;  %3175 = vst [vmem:[#allocation3 + $0xe9] sm:$0x1] %v9833_v0  ;;  %7067 = vmatmul.mubr.f32.vlgmr.msra.gmra.mrb[0].mxu0 %v429_v61  ;;  %v8546_v60 = vpack.c.bf16 %v965_v57, %v964_v56  ;;  %v966_v61 = vld [vmem:[#allocation7 + $0x130] sm:$0xff]  ;;  %v969_v3 = vld [vmem:[#allocation7 + $0x148] sm:$0xff] }
  0x90   : > { %3176 = vst [vmem:[#allocation3 + $0x101] sm:$0x1] %v9833_v0  ;;  %3177 = vst [vmem:[#allocation3 + $0x119] sm:$0x1] %v9833_v0  ;;  %8509 = vmatpush3.bf16.msra.mxu0 %v8506_v58  ;;  %7069 = vmatprep.mubr.f32.mxu0 %v10149_v13  ;;  %v972_v12 = vld [vmem:[#allocation7 + $0x160] sm:$0xff]  ;;  %v973_v18 = vld [vmem:[#allocation7 + $0x168] sm:$0xff] }
  0x91   : > { %3178 = vst [vmem:[#allocation3 + $0x131] sm:$0x1] %v9833_v0  ;;  %3179 = vst [vmem:[#allocation3 + $0x149] sm:$0x1] %v9833_v0  ;;  %8511 = vmatprep.subr.bf16.mxu0 %v8510_v62  ;;  %v8562_v29 = vpack.c.bf16 %v973_v18, %v972_v12  ;;  %v975_v34 = vld [vmem:[#allocation7 + $0x178] sm:$0xff]  ;;  %v1266_v51 = vld [vmem:[#allocation7 + $0x180] sm:$0xff] }
  0x92   : > { %3180 = vst [vmem:[#allocation3 + $0x161] sm:$0x1] %v9833_v0  ;;  %3181 = vst [vmem:[#allocation3 + $0x179] sm:$0x1] %v9833_v0  ;;  %v1267_v53 = vld [vmem:[#allocation7 + $0x188] sm:$0xff] }
  0x93   : > { %3182 = vst [vmem:[#allocation3 + $0x191] sm:$0x1] %v9833_v0  ;;  %311 = vst [vmem:[#allocation2] sm:$0x1] %v9833_v0  ;;  %7070 = vmatmul.mubr.f32.gmra.mrb[2].mxu0 %v10153_v14  ;;  %v8570_v57 = vpack.c.bf16 %v1267_v53, %v1266_v51  ;;  %v927_v53 = vld [vmem:[#allocation2 + $0x2] sm:$0xff] }
  0x94   : > { %329 = vst [vmem:[#allocation2 + $0x11] sm:$0x1] %v9833_v0  ;;  %328 = vst [vmem:[#allocation2 + $0x198] sm:$0x1] %v9833_v0  ;;  %7072 = vmatprep.mubr.f32.mxu0 %v10156_v15  ;;  %8513 = vmatpush3.bf16.msra.mxu0 %v8510_v62  ;;  %v967_v62 = vld [vmem:[#allocation7 + $0x138] sm:$0xff] }
  0x95   : > { %346 = vst [vmem:[#allocation2 + $0x1a9] sm:$0x1] %v9833_v0  ;;  %3148 = vst [vmem:[#allocation3] sm:$0x1] %v9833_v0  ;;  %8515 = vmatprep.subr.bf16.mxu0 %v8514_v2 }
  0x96   : > { %3165 = vst [vmem:[#allocation3 + $0x198] sm:$0x1] %v9833_v0  ;;  %3166 = vst [vmem:[#allocation3 + $0x11] sm:$0x1] %v9833_v0 }
  0x97   : > { %3183 = vst [vmem:[#allocation3 + $0x1a9] sm:$0x1] %v9833_v0  ;;  %348 = vst [vmem:[#allocation2 + $0x19] sm:$0xff] %v10149_v13  ;;  %7073 = vmatmul.mubr.f32.gmra.mrb[4].mxu0 %v10159_v16 }
  0x98   : > { %349 = vst [vmem:[#allocation2 + $0x21] sm:$0xff] %v10153_v14  ;;  %350 = vst [vmem:[#allocation2 + $0x31] sm:$0xff] %v10156_v15  ;;  %7075 = vmatprep.mubr.f32.mxu0 %v10165_v17  ;;  %8517 = vmatpush3.bf16.msra.mxu0 %v8514_v2  ;;  %v968_v2 = vld [vmem:[#allocation7 + $0x140] sm:$0xff] }
  0x99   : > { %351 = vst [vmem:[#allocation2 + $0x39] sm:$0xff] %v10159_v16  ;;  %352 = vst [vmem:[#allocation2 + $0x49] sm:$0xff] %v10165_v17  ;;  %8519 = vmatprep.subr.bf16.mxu0 %v8518_v5  ;;  %v8554_v6 = vpack.c.bf16 %v969_v3, %v968_v2 }
  0x9a   : > { %353 = vst [vmem:[#allocation2 + $0x51] sm:$0xff] %v10169_v19  ;;  %354 = vst [vmem:[#allocation2 + $0x61] sm:$0xff] %v10172_v20  ;;  %v380_v45 = vld [vmem:[#allocation2] sm:$0xff] }
  0x9b   : > { %355 = vst [vmem:[#allocation2 + $0x69] sm:$0xff] %v10175_v21  ;;  %356 = vst [vmem:[#allocation2 + $0x79] sm:$0xff] %v10181_v24  ;;  %7076 = vmatmul.mubr.f32.gmra.mrb[6].mxu0 %v10169_v19 }
  0x9c   : > { %357 = vst [vmem:[#allocation2 + $0x81] sm:$0xff] %v10185_v25  ;;  %358 = vst [vmem:[#allocation2 + $0x91] sm:$0xff] %v10188_v26  ;;  %7078 = vmatprep.mubr.f32.mxu0 %v10172_v20  ;;  %8521 = vmatpush3.bf16.msra.mxu0 %v8518_v5 }
  0x9d   : > { %359 = vst [vmem:[#allocation2 + $0x99] sm:$0xff] %v10191_v27  ;;  %360 = vst [vmem:[#allocation2 + $0xa9] sm:$0xff] %v10197_v28  ;;  %8523 = vmatprep.subr.bf16.mxu0 %v8522_v8 }
  0x9e   : > { %361 = vst [vmem:[#allocation2 + $0xb1] sm:$0xff] %v10201_v30  ;;  %362 = vst [vmem:[#allocation2 + $0xc1] sm:$0xff] %v10204_v31  ;;  %v10298_v54 = vld [vmem:[#allocation2 + $0x18] sm:$0xff] }
  0x9f   : > { %363 = vst [vmem:[#allocation2 + $0xc9] sm:$0xff] %v10207_v32  ;;  %364 = vst [vmem:[#allocation2 + $0xd9] sm:$0xff] %v10213_v35  ;;  %7079 = vmatmul.mubr.f32.gmra.mrb[8].mxu0 %v10175_v21  ;;  %v10302_v58 = vld [vmem:[#allocation2 + $0x20] sm:$0xff]  ;;  %v10304_v59 = vld [vmem:[#allocation2 + $0x30] sm:$0xff] }
  0xa0   : > { %365 = vst [vmem:[#allocation2 + $0xe1] sm:$0xff] %v10217_v36  ;;  %366 = vst [vmem:[#allocation2 + $0xf1] sm:$0xff] %v10220_v37  ;;  %7081 = vmatprep.mubr.f32.mxu0 %v10181_v24  ;;  %8525 = vmatpush3.bf16.msra.mxu0 %v8522_v8  ;;  %v10308_v63 = vld [vmem:[#allocation2 + $0x38] sm:$0xff]  ;;  %v10310_v1 = vld [vmem:[#allocation2 + $0x48] sm:$0xff] }
  0xa1   : > { %367 = vst [vmem:[#allocation2 + $0xf9] sm:$0xff] %v10223_v38  ;;  %11316 = vst [vmem:[#allocation14_spill] sm:$0xff] %v10229_v39  ;;  %8527 = vmatprep.subr.bf16.mxu0 %v8526_v11  ;;  %v10314_v4 = vld [vmem:[#allocation2 + $0x50] sm:$0xff]  ;;  %v10316_v5 = vld [vmem:[#allocation2 + $0x60] sm:$0xff] }
  0xa2   : > { %368 = vst [vmem:[#allocation2 + $0x109] sm:$0xff] %v10229_v39  ;;  %11317 = vst [vmem:[#allocation15_spill] sm:$0xff] %v10233_v41  ;;  %v971_v8 = vld [vmem:[#allocation7 + $0x158] sm:$0xff]  ;;  %v10320_v9 = vld [vmem:[#allocation2 + $0x68] sm:$0xff] }
  0xa3   : > { %11318 = vst [vmem:[#allocation16_spill] sm:$0xff] %v10236_v42  ;;  %11319 = vst [vmem:[#allocation17_spill] sm:$0xff] %v10239_v43  ;;  %7082 = vmatmul.mubr.f32.gmra.mrb[10].mxu0 %v10185_v25  ;;  %v10322_v10 = vld [vmem:[#allocation2 + $0x78] sm:$0xff]  ;;  %v10328_v23 = vld [vmem:[#allocation2 + $0x90] sm:$0xff] }
  0xa4   : > { %369 = vst [vmem:[#allocation2 + $0x111] sm:$0xff] %v10233_v41  ;;  %370 = vst [vmem:[#allocation2 + $0x121] sm:$0xff] %v10236_v42  ;;  %7084 = vmatprep.mubr.f32.mxu0 %v10188_v26  ;;  %8529 = vmatpush3.bf16.msra.mxu0 %v8526_v11  ;;  %v8558_v11 = vpack.c.bf16 %v971_v8, %v970_v7  ;;  %v10332_v40 = vld [vmem:[#allocation2 + $0x98] sm:$0xff] }
  0xa5   : > { %371 = vst [vmem:[#allocation2 + $0x129] sm:$0xff] %v10239_v43  ;;  %11320 = vst [vmem:[#allocation18_spill] sm:$0xff] %v10245_v46  ;;  %8531 = vmatprep.subr.bf16.mxu0 %v8530_v22  ;;  %v10340_v56 = vld [vmem:[#allocation2 + $0xc0] sm:$0xff] }
  0xa6   : > { %372 = vst [vmem:[#allocation2 + $0x139] sm:$0xff] %v10245_v46  ;;  %11321 = vst [vmem:[#allocation19_spill] sm:$0xff] %v10249_v47 }
  0xa7   : > { %11322 = vst [vmem:[#allocation20_spill] sm:$0xff] %v10252_v48  ;;  %11323 = vst [vmem:[#allocation21_spill] sm:$0xff] %v10255_v49  ;;  %7085 = vmatmul.mubr.f32.gmra.mrb[12].mxu0 %v10191_v27 }
  0xa8   : > { %373 = vst [vmem:[#allocation2 + $0x141] sm:$0xff] %v10249_v47  ;;  %374 = vst [vmem:[#allocation2 + $0x151] sm:$0xff] %v10252_v48  ;;  %7087 = vmatprep.mubr.f32.mxu0 %v10197_v28  ;;  %8533 = vmatpush3.bf16.msra.mxu0 %v8530_v22  ;;  %v10326_v22 = vld [vmem:[#allocation2 + $0x80] sm:$0xff]  ;;  %v10356_v2 = vld [vmem:[#allocation2 + $0xf8] sm:$0xff] }
  0xa9   : > { %375 = vst [vmem:[#allocation2 + $0x159] sm:$0xff] %v10255_v49  ;;  %11324 = vst [vmem:[#allocation22_spill] sm:$0xff] %v10261_v50  ;;  %8535 = vmatprep.subr.bf16.mxu0 %v8534_v33  ;;  %v10358_v3 = vld [vmem:[#allocation2 + $0x108] sm:$0xff] }
  0xaa   : > { %376 = vst [vmem:[#allocation2 + $0x169] sm:$0xff] %v10261_v50  ;;  %11325 = vst [vmem:[#allocation23_spill] sm:$0xff] %v10265_v52 }
  0xab   : > { %377 = vst [vmem:[#allocation2 + $0x171] sm:$0xff] %v10265_v52  ;;  %7088 = vmatmul.mubr.f32.gmra.mrb[14].mxu0 %v10201_v30  ;;  %v10364_v7 = vld [vmem:[#allocation2 + $0x120] sm:$0xff] }
  0xac   : > { %7090 = vmatprep.mubr.f32.mxu0 %v10204_v31  ;;  %8537 = vmatpush3.bf16.msra.mxu0 %v8534_v33  ;;  %v974_v33 = vld [vmem:[#allocation7 + $0x170] sm:$0xff]  ;;  %v10368_v8 = vld [vmem:[#allocation2 + $0x128] sm:$0xff] }
  0xad   : > { %8539 = vmatprep.subr.bf16.mxu0 %v8538_v44 }
  0xaf   : > { %7091 = vmatmul.mubr.f32.gmra.mrb[16].mxu0 %v10207_v32  ;;  %v10374_v12 = vld [vmem:[#allocation2 + $0x140] sm:$0xff]  ;;  %v10376_v18 = vld [vmem:[#allocation2 + $0x150] sm:$0xff] }
  0xb0   : > { %7093 = vmatprep.mubr.f32.mxu0 %v10213_v35 }
  0xb2   : > { %v10394_v51 = vld [vmem:[#allocation2 + $0x170] sm:$0xff] }
  0xb3   : > { %7094 = vmatmul.mubr.f32.gmra.mrb[18].mxu0 %v10217_v36 }
  0xb4   : > { %7096 = vmatprep.mubr.f32.mxu0 %v10220_v37 }
  0xb7   : > { %7097 = vmatmul.mubr.f32.gmra.mrb[20].mxu0 %v10223_v38 }
  0xb8   : > { %7099 = vmatprep.mubr.f32.mxu0 %v10229_v39  ;;  %v1273_v39 = vld [vmem:[#allocation7 + $0x1b8] sm:$0xff] }
  0xbb   : > { %7100 = vmatmul.mubr.f32.gmra.mrb[22].mxu0 %v10233_v41  ;;  %v1272_v41 = vld [vmem:[#allocation7 + $0x1b0] sm:$0xff] }
  0xbc   : > { %7102 = vmatprep.mubr.f32.mxu0 %v10236_v42 }
  0xbf   : > { %7103 = vmatmul.mubr.f32.gmra.mrb[24].mxu0 %v10239_v43  ;;  %v10402_v43 = vld [vmem:[#allocation2 + $0x32] sm:$0xff] }
  0xc0   : > { %7105 = vmatprep.mubr.f32.mxu0 %v10245_v46  ;;  %v10400_v46 = vld [vmem:[#allocation2 + $0x22] sm:$0xff]  ;;  %11330 = vst [vmem:[#allocation28_spill] sm:$0xff] %v10402_v43 }
  0xc1   : > { %11329 = vst [vmem:[#allocation27_spill] sm:$0xff] %v10400_v46 }
  0xc3   : > { %7106 = vmatmul.mubr.f32.gmra.mrb[26].mxu0 %v10249_v47  ;;  %v1271_v47 = vld [vmem:[#allocation7 + $0x1a8] sm:$0xff] }
  0xc4   : > { %7108 = vmatprep.mubr.f32.mxu0 %v10252_v48  ;;  %v1270_v48 = vld [vmem:[#allocation7 + $0x1a0] sm:$0xff] }
  0xc5   : > { %v8578_v42 = vpack.c.bf16 %v1271_v47, %v1270_v48  ;;  %v10412_v47 = vld [vmem:[#allocation2 + $0x52] sm:$0xff]  ;;  %v10414_v48 = vld [vmem:[#allocation2 + $0x62] sm:$0xff] }
  0xc6   : > { %11333 = vst [vmem:[#allocation31_spill] sm:$0xff] %v10412_v47  ;;  %11334 = vst [vmem:[#allocation32_spill] sm:$0xff] %v10414_v48 }
  0xc7   : > { %7109 = vmatmul.mubr.f32.gmra.mrb[28].mxu0 %v10255_v49 }
  0xc8   : > { %7111 = vmatprep.mubr.f32.mxu0 %v10261_v50  ;;  %v928_v50 = vld [vmem:[#allocation2 + $0xa] sm:$0xff] }
  0xcb   : > { %7112 = vmatmul.mubr.f32.gmra.mrb[30].mxu0 %v10265_v52  ;;  %v1269_v52 = vld [vmem:[#allocation7 + $0x198] sm:$0xff] }
  0xcc   : > { %7146 = vmatprep.mubr.f32.mxu0 %v380_v45  ;;  %v8566_v45 = vpack.c.bf16 %v975_v34, %v974_v33  ;;  %v10383_v33 = vld [vmem:[%s10054_s12 + $0xf8] sm:$0xff] }
  0xcd   : > { %11327 = vst [vmem:[#allocation25_spill] sm:$0xff] %v10383_v33  ;;  %379 = vst [vmem:[#allocation2 + $0x189] sm:$0xff] %v10383_v33  ;;  %v10388_v34 = vld [vmem:[#allocation2 + $0x158] sm:$0xff] }
  0xce   : > { %v10397_v33 = vld [vmem:[#allocation2 + $0x1a] sm:$0xff] }
  0xcf   : > { %7147 = vmatmul.mubr.f32.vlgmr.msra.gmra.mrb[0].mxu0 %v9833_v0  ;;  %v8550_v0 = vpack.c.bf16 %v967_v62, %v966_v61  ;;  %v10346_v61 = vld [vmem:[#allocation2 + $0xd8] sm:$0xff]  ;;  %v10350_v62 = vld [vmem:[#allocation2 + $0xe0] sm:$0xff]  ;;  %11328 = vst [vmem:[#allocation26_spill] sm:$0xff] %v10397_v33 }
  0xd0   : > { %8541 = vmatpush3.bf16.msra.mxu0 %v8538_v44  ;;  %7149 = vmatprep.mubr.f32.mxu0 %v10298_v54  ;;  %v10334_v44 = vld [vmem:[#allocation2 + $0xa8] sm:$0xff] }
  0xd1   : > { %8543 = vmatprep.subr.bf16.mxu0 %v8542_v55 }
  0xd3   : > { %7150 = vmatmul.mubr.f32.gmra.mrb[2].mxu0 %v10302_v58 }
  0xd4   : > { %7152 = vmatprep.mubr.f32.mxu0 %v10304_v59  ;;  %8545 = vmatpush3.bf16.msra.mxu0 %v8542_v55  ;;  %v10338_v55 = vld [vmem:[#allocation2 + $0xb0] sm:$0xff] }
  0xd5   : > { %8547 = vmatprep.subr.bf16.mxu0 %v8546_v60 }
  0xd7   : > { %7153 = vmatmul.mubr.f32.gmra.mrb[4].mxu0 %v10308_v63 }
  0xd8   : > { %7155 = vmatprep.mubr.f32.mxu0 %v10310_v1  ;;  %8549 = vmatpush3.bf16.msra.mxu0 %v8546_v60  ;;  %v10344_v60 = vld [vmem:[#allocation2 + $0xc8] sm:$0xff] }
  0xd9   : > { %8551 = vmatprep.subr.bf16.mxu0 %v8550_v0 }
  0xdb   : > { %7156 = vmatmul.mubr.f32.gmra.mrb[6].mxu0 %v10314_v4 }
  0xdc   : > { %7158 = vmatprep.mubr.f32.mxu0 %v10316_v5  ;;  %8553 = vmatpush3.bf16.msra.mxu0 %v8550_v0  ;;  %v10352_v0 = vld [vmem:[#allocation2 + $0xf0] sm:$0xff] }
  0xdd   : > { %8555 = vmatprep.subr.bf16.mxu0 %v8554_v6 }
  0xdf   : > { %7159 = vmatmul.mubr.f32.gmra.mrb[8].mxu0 %v10320_v9 }
  0xe0   : > { %7161 = vmatprep.mubr.f32.mxu0 %v10322_v10  ;;  %8557 = vmatpush3.bf16.msra.mxu0 %v8554_v6  ;;  %v10362_v6 = vld [vmem:[#allocation2 + $0x110] sm:$0xff] }
  0xe1   : > { %8559 = vmatprep.subr.bf16.mxu0 %v8558_v11 }
  0xe3   : > { %7162 = vmatmul.mubr.f32.gmra.mrb[10].mxu0 %v10326_v22 }
  0xe4   : > { %7164 = vmatprep.mubr.f32.mxu0 %v10328_v23  ;;  %8561 = vmatpush3.bf16.msra.mxu0 %v8558_v11  ;;  %v10370_v11 = vld [vmem:[#allocation2 + $0x138] sm:$0xff] }
  0xe5   : > { %8563 = vmatprep.subr.bf16.mxu0 %v8562_v29 }
  0xe7   : > { %7165 = vmatmul.mubr.f32.gmra.mrb[12].mxu0 %v10332_v40 }
  0xe8   : > { %7167 = vmatprep.mubr.f32.mxu0 %v10334_v44  ;;  %8565 = vmatpush3.bf16.msra.mxu0 %v8562_v29  ;;  %v10379_v29 = vld [vmem:[%s10054_s12 + $0xf0] sm:$0xff] }
  0xe9   : > { %8567 = vmatprep.subr.bf16.mxu0 %v8566_v45  ;;  %11326 = vst [vmem:[#allocation24_spill] sm:$0xff] %v10379_v29  ;;  %378 = vst [vmem:[#allocation2 + $0x181] sm:$0xff] %v10379_v29  ;;  %v1268_v29 = vld [vmem:[#allocation7 + $0x190] sm:$0xff] }
  0xea   : > { %v8574_v49 = vpack.c.bf16 %v1269_v52, %v1268_v29  ;;  %v10408_v52 = vld [vmem:[#allocation2 + $0x4a] sm:$0xff] }
  0xeb   : > { %7168 = vmatmul.mubr.f32.gmra.mrb[14].mxu0 %v10338_v55  ;;  %11332 = vst [vmem:[#allocation30_spill] sm:$0xff] %v10408_v52  ;;  %v1275_v29 = vld [vmem:[#allocation7 + $0x1c8] sm:$0xff] }
  0xec   : > { %7170 = vmatprep.mubr.f32.mxu0 %v10340_v56  ;;  %8569 = vmatpush3.bf16.msra.mxu0 %v8566_v45  ;;  %v10390_v45 = vld [vmem:[#allocation2 + $0x168] sm:$0xff] }
  0xed   : > { %8571 = vmatprep.subr.bf16.mxu0 %v8570_v57 }
  0xef   : > { %7171 = vmatmul.mubr.f32.gmra.mrb[16].mxu0 %v10344_v60 }
  0xf0   : > { %7173 = vmatprep.mubr.f32.mxu0 %v10346_v61 }
  0xf3   : > { %7174 = vmatmul.mubr.f32.gmra.mrb[18].mxu0 %v10350_v62 }
  0xf4   : > { %7176 = vmatprep.mubr.f32.mxu0 %v10352_v0 }
  0xf7   : > { %7177 = vmatmul.mubr.f32.gmra.mrb[20].mxu0 %v10356_v2 }
  0xf8   : > { %7179 = vmatprep.mubr.f32.mxu0 %v10358_v3 }
  0xfb   : > { %7180 = vmatmul.mubr.f32.gmra.mrb[22].mxu0 %v10362_v6 }
  0xfc   : > { %7182 = vmatprep.mubr.f32.mxu0 %v10364_v7 }
  0xff   : > { %7183 = vmatmul.mubr.f32.gmra.mrb[24].mxu0 %v10368_v8 }
 0x100   : > { %7185 = vmatprep.mubr.f32.mxu0 %v10370_v11 }
 0x103   : > { %7186 = vmatmul.mubr.f32.gmra.mrb[26].mxu0 %v10374_v12 }
 0x104   : > { %7188 = vmatprep.mubr.f32.mxu0 %v10376_v18 }
 0x107   : > { %7189 = vmatmul.mubr.f32.gmra.mrb[28].mxu0 %v10388_v34 }
 0x108   : > { %7191 = vmatprep.mubr.f32.mxu0 %v10390_v45 }
 0x10b   : > { %7192 = vmatmul.mubr.f32.gmra.mrb[30].mxu0 %v10394_v51 }
 0x10c   : > { %7226 = vmatprep.mubr.f32.mxu0 %v927_v53  ;;  %v10406_v53 = vld [vmem:[#allocation2 + $0x3a] sm:$0xff] }
 0x10d   : > { %11331 = vst [vmem:[#allocation29_spill] sm:$0xff] %v10406_v53 }
 0x10f   : > { %7227 = vmatmul.mubr.f32.vlgmr.msra.gmra.mrb[0].mxu0 %v928_v50  ;;  %v8582_v50 = vpack.c.bf16 %v1273_v39, %v1272_v41  ;;  %v10418_v39 = vld [vmem:[#allocation2 + $0x6a] sm:$0xff]  ;;  %v10420_v41 = vld [vmem:[#allocation2 + $0x7a] sm:$0xff] }
 0x110   : > { %8573 = vmatpush3.bf16.msra.mxu0 %v8570_v57  ;;  %7229 = vmatprep.mubr.f32.mxu0 %v10397_v33  ;;  %v1274_v57 = vld [vmem:[#allocation7 + $0x1c0] sm:$0xff]  ;;  %v1277_v33 = vld [vmem:[#allocation7 + $0x1d8] sm:$0xff]  ;;  %11335 = vst [vmem:[#allocation33_spill] sm:$0xff] %v10418_v39  ;;  %11336 = vst [vmem:[#allocation34_spill] sm:$0xff] %v10420_v41 }
 0x111   : > { %8575 = vmatprep.subr.bf16.mxu0 %v8574_v49 }
 0x113   : > { %7230 = vmatmul.mubr.f32.gmra.mrb[2].mxu0 %v10400_v46  ;;  %v1276_v46 = vld [vmem:[#allocation7 + $0x1d0] sm:$0xff] }
 0x114   : > { %7232 = vmatprep.mubr.f32.mxu0 %v10402_v43  ;;  %8577 = vmatpush3.bf16.msra.mxu0 %v8574_v49  ;;  %v8586_v43 = vpack.c.bf16 %v1275_v29, %v1274_v57  ;;  %v8590_v49 = vpack.c.bf16 %v1277_v33, %v1276_v46  ;;  %v10426_v57 = vld [vmem:[#allocation2 + $0x92] sm:$0xff]  ;;  %v10430_v46 = vld [vmem:[#allocation2 + $0x9a] sm:$0xff]  ;;  %v10432_v33 = vld [vmem:[#allocation2 + $0xaa] sm:$0xff] }
 0x115   : > { %8579 = vmatprep.subr.bf16.mxu0 %v8578_v42 }
 0x117   : > { %7233 = vmatmul.mubr.f32.gmra.mrb[4].mxu0 %v10406_v53  ;;  %v1279_v53 = vld [vmem:[#allocation7 + $0x1e8] sm:$0xff] }
 0x118   : > { %7235 = vmatprep.mubr.f32.mxu0 %v10408_v52  ;;  %8581 = vmatpush3.bf16.msra.mxu0 %v8578_v42  ;;  %v1278_v52 = vld [vmem:[#allocation7 + $0x1e0] sm:$0xff] }
 0x119   : > { %8583 = vmatprep.subr.bf16.mxu0 %v8582_v50  ;;  %v10424_v42 = vld [vmem:[#allocation2 + $0x82] sm:$0xff]  ;;  %v8594_v29 = vpack.c.bf16 %v1279_v53, %v1278_v52 }
 0x11a   : > { %v10438_v53 = vld [vmem:[#allocation2 + $0xc2] sm:$0xff] }
 0x11b   : > { %7236 = vmatmul.mubr.f32.gmra.mrb[6].mxu0 %v10412_v47  ;;  %v1281_v47 = vld [vmem:[#allocation7 + $0x1f8] sm:$0xff]  ;;  %11338 = vst [vmem:[#allocation36_spill] sm:$0xff] %v10438_v53 }
 0x11c   : > { %7238 = vmatprep.mubr.f32.mxu0 %v10414_v48  ;;  %8585 = vmatpush3.bf16.msra.mxu0 %v8582_v50  ;;  %v1280_v48 = vld [vmem:[#allocation7 + $0x1f0] sm:$0xff] }
 0x11d   : > { %8587 = vmatprep.subr.bf16.mxu0 %v8586_v43  ;;  %v8598_v50 = vpack.c.bf16 %v1281_v47, %v1280_v48  ;;  %v10444_v47 = vld [vmem:[#allocation2 + $0xda] sm:$0xff]  ;;  %v10448_v48 = vld [vmem:[#allocation2 + $0xe2] sm:$0xff] }
 0x11e   : > { %11340 = vst [vmem:[#allocation38_spill] sm:$0xff] %v10444_v47  ;;  %11341 = vst [vmem:[#allocation39_spill] sm:$0xff] %v10448_v48 }
 0x11f   : > { %7239 = vmatmul.mubr.f32.gmra.mrb[8].mxu0 %v10418_v39  ;;  %v1573_v39 = vld [vmem:[#allocation7 + $0x208] sm:$0xff] }
 0x120   : > { %7241 = vmatprep.mubr.f32.mxu0 %v10420_v41  ;;  %8589 = vmatpush3.bf16.msra.mxu0 %v8586_v43  ;;  %v1572_v41 = vld [vmem:[#allocation7 + $0x200] sm:$0xff]  ;;  %v10436_v43 = vld [vmem:[#allocation2 + $0xb2] sm:$0xff] }
 0x121   : > { %8591 = vmatprep.subr.bf16.mxu0 %v8590_v49  ;;  %11337 = vst [vmem:[#allocation35_spill] sm:$0xff] %v10436_v43  ;;  %v8602_v52 = vpack.c.bf16 %v1573_v39, %v1572_v41  ;;  %v10454_v39 = vld [vmem:[#allocation2 + $0xfa] sm:$0xff]  ;;  %v10456_v41 = vld [vmem:[#allocation2 + $0x10a] sm:$0xff] }
 0x122   : > { %11343 = vst [vmem:[#allocation41_spill] sm:$0xff] %v10454_v39  ;;  %11344 = vst [vmem:[#allocation42_spill] sm:$0xff] %v10456_v41 }
 0x123   : > { %7242 = vmatmul.mubr.f32.gmra.mrb[10].mxu0 %v10424_v42 }
 0x124   : > { %7244 = vmatprep.mubr.f32.mxu0 %v10426_v57  ;;  %8593 = vmatpush3.bf16.msra.mxu0 %v8590_v49  ;;  %v10442_v49 = vld [vmem:[#allocation2 + $0xca] sm:$0xff] }
 0x125   : > { %8595 = vmatprep.subr.bf16.mxu0 %v8594_v29  ;;  %11339 = vst [vmem:[#allocation37_spill] sm:$0xff] %v10442_v49 }
 0x127   : > { %7245 = vmatmul.mubr.f32.gmra.mrb[12].mxu0 %v10430_v46 }
 0x128   : > { %7247 = vmatprep.mubr.f32.mxu0 %v10432_v33  ;;  %8597 = vmatpush3.bf16.msra.mxu0 %v8594_v29  ;;  %v10450_v29 = vld [vmem:[#allocation2 + $0xf2] sm:$0xff] }
 0x129   : > { %8599 = vmatprep.subr.bf16.mxu0 %v8598_v50  ;;  %11342 = vst [vmem:[#allocation40_spill] sm:$0xff] %v10450_v29 }
 0x12b   : > { %7248 = vmatmul.mubr.f32.gmra.mrb[14].mxu0 %v10436_v43  ;;  %v1577_v43 = vld [vmem:[#allocation7 + $0x228] sm:$0xff] }
 0x12c   : > { %7250 = vmatprep.mubr.f32.mxu0 %v10438_v53  ;;  %8601 = vmatpush3.bf16.msra.mxu0 %v8598_v50  ;;  %v10460_v50 = vld [vmem:[#allocation2 + $0x112] sm:$0xff] }
 0x12d   : > { %8603 = vmatprep.subr.bf16.mxu0 %v8602_v52  ;;  %11345 = vst [vmem:[#allocation43_spill] sm:$0xff] %v10460_v50 }
 0x12f   : > { %7251 = vmatmul.mubr.f32.gmra.mrb[16].mxu0 %v10442_v49  ;;  %v10462_v49 = vld [vmem:[#allocation2 + $0x122] sm:$0xff] }
 0x130   : > { %7253 = vmatprep.mubr.f32.mxu0 %v10444_v47  ;;  %11346 = vst [vmem:[#allocation44_spill] sm:$0xff] %v10462_v49  ;;  %v10466_v47 = vld [vmem:[#allocation2 + $0x12a] sm:$0xff] }
 0x131   : > { %11347 = vst [vmem:[#allocation45_spill] sm:$0xff] %v10466_v47 }
 0x133   : > { %7254 = vmatmul.mubr.f32.gmra.mrb[18].mxu0 %v10448_v48  ;;  %v10468_v48 = vld [vmem:[#allocation2 + $0x13a] sm:$0xff] }
 0x134   : > { %7256 = vmatprep.mubr.f32.mxu0 %v10450_v29  ;;  %11348 = vst [vmem:[#allocation46_spill] sm:$0xff] %v10468_v48  ;;  %v10472_v29 = vld [vmem:[#allocation2 + $0x142] sm:$0xff] }
 0x135   : > { %11349 = vst [vmem:[#allocation47_spill] sm:$0xff] %v10472_v29 }
 0x137   : > { %7257 = vmatmul.mubr.f32.gmra.mrb[20].mxu0 %v10454_v39  ;;  %v10474_v39 = vld [vmem:[#allocation2 + $0x152] sm:$0xff] }
 0x138   : > { %7259 = vmatprep.mubr.f32.mxu0 %v10456_v41  ;;  %11350 = vst [vmem:[#allocation48_spill] sm:$0xff] %v10474_v39  ;;  %v10478_v41 = vld [vmem:[#allocation2 + $0x15a] sm:$0xff] }
 0x139   : > { %11351 = vst [vmem:[#allocation49_spill] sm:$0xff] %v10478_v41 }
 0x13b   : > { %7260 = vmatmul.mubr.f32.gmra.mrb[22].mxu0 %v10460_v50  ;;  %v10480_v50 = vld [vmem:[#allocation2 + $0x16a] sm:$0xff] }
 0x13c   : > { %7262 = vmatprep.mubr.f32.mxu0 %v10462_v49  ;;  %11352 = vst [vmem:[#allocation50_spill] sm:$0xff] %v10480_v50  ;;  %v10484_v49 = vld [vmem:[#allocation2 + $0x172] sm:$0xff] }
 0x13d   : > { %11353 = vst [vmem:[#allocation51_spill] sm:$0xff] %v10484_v49 }
 0x13f   : > { %7263 = vmatmul.mubr.f32.gmra.mrb[24].mxu0 %v10466_v47  ;;  %v1574_v47 = vld [vmem:[#allocation7 + $0x210] sm:$0xff] }
 0x140   : > { %7265 = vmatprep.mubr.f32.mxu0 %v10468_v48  ;;  %v1575_v48 = vld [vmem:[#allocation7 + $0x218] sm:$0xff] }
 0x141   : > { %v8606_v53 = vpack.c.bf16 %v1575_v48, %v1574_v47  ;;  %v1581_v47 = vld [vmem:[#allocation7 + $0x248] sm:$0xff]  ;;  %v1584_v48 = vld [vmem:[#allocation7 + $0x260] sm:$0xff] }
 0x143   : > { %7266 = vmatmul.mubr.f32.gmra.mrb[26].mxu0 %v10472_v29  ;;  %v1576_v29 = vld [vmem:[#allocation7 + $0x220] sm:$0xff] }
 0x144   : > { %7268 = vmatprep.mubr.f32.mxu0 %v10474_v39  ;;  %v1578_v39 = vld [vmem:[#allocation7 + $0x230] sm:$0xff] }
 0x147   : > { %7269 = vmatmul.mubr.f32.gmra.mrb[28].mxu0 %v10478_v41  ;;  %v8610_v41 = vpack.c.bf16 %v1577_v43, %v1576_v29  ;;  %v1583_v43 = vld [vmem:[#allocation7 + $0x258] sm:$0xff]  ;;  %v1585_v29 = vld [vmem:[#allocation7 + $0x268] sm:$0xff] }
 0x148   : > { %7271 = vmatprep.mubr.f32.mxu0 %v10480_v50  ;;  %v1579_v50 = vld [vmem:[#allocation7 + $0x238] sm:$0xff] }
 0x14b   : > { %7272 = vmatmul.mubr.f32.gmra.mrb[30].mxu0 %v10484_v49  ;;  %v8614_v49 = vpack.c.bf16 %v1579_v50, %v1578_v39  ;;  %v8626_v39 = vpack.c.bf16 %v1585_v29, %v1584_v48  ;;  %v1587_v50 = vld [vmem:[#allocation7 + $0x278] sm:$0xff] }
 0x14c   : > { %7306 = vmatprep.mubr.f32.mxu0 %v10298_v54  ;;  %v1580_v54 = vld [vmem:[#allocation7 + $0x240] sm:$0xff]  ;;  %v1881_v48 = vld [vmem:[#allocation7 + $0x298] sm:$0xff] }
 0x14f   : > { %7307 = vmatmul.mubr.f32.vlgmr.msra.gmra.mrb[0].mxu0 %v10302_v58  ;;  %v8618_v58 = vpack.c.bf16 %v1581_v47, %v1580_v54  ;;  %v1878_v54 = vld [vmem:[#allocation7 + $0x280] sm:$0xff]  ;;  %v1879_v47 = vld [vmem:[#allocation7 + $0x288] sm:$0xff] }
 0x150   : > { %8605 = vmatpush3.bf16.msra.mxu0 %v8602_v52  ;;  %7309 = vmatprep.mubr.f32.mxu0 %v10304_v59  ;;  %v1582_v52 = vld [vmem:[#allocation7 + $0x250] sm:$0xff] }
 0x151   : > { %8607 = vmatprep.subr.bf16.mxu0 %v8606_v53 }
 0x153   : > { %7310 = vmatmul.mubr.f32.gmra.mrb[2].mxu0 %v10308_v63 }
 0x154   : > { %7312 = vmatprep.mubr.f32.mxu0 %v10310_v1  ;;  %8609 = vmatpush3.bf16.msra.mxu0 %v8606_v53  ;;  %v8622_v53 = vpack.c.bf16 %v1583_v43, %v1582_v52  ;;  %v10516_v52 = vld [vmem:[#allocation2 + $0x180] sm:$0xff]  ;;  %v10520_v43 = vld [vmem:[#allocation2 + $0x188] sm:$0xff] }
 0x155   : > { %8611 = vmatprep.subr.bf16.mxu0 %v8610_v41 }
 0x157   : > { %7313 = vmatmul.mubr.f32.gmra.mrb[4].mxu0 %v10314_v4 }
 0x158   : > { %7315 = vmatprep.mubr.f32.mxu0 %v10316_v5  ;;  %8613 = vmatpush3.bf16.msra.mxu0 %v8610_v41  ;;  %v1586_v41 = vld [vmem:[#allocation7 + $0x270] sm:$0xff] }
 0x159   : > { %8615 = vmatprep.subr.bf16.mxu0 %v8614_v49 }
 0x15b   : > { %7316 = vmatmul.mubr.f32.gmra.mrb[6].mxu0 %v10320_v9 }
 0x15c   : > { %7318 = vmatprep.mubr.f32.mxu0 %v10322_v10  ;;  %8617 = vmatpush3.bf16.msra.mxu0 %v8614_v49  ;;  %v8630_v49 = vpack.c.bf16 %v1587_v50, %v1586_v41  ;;  %v1883_v41 = vld [vmem:[#allocation7 + $0x2a8] sm:$0xff] }
 0x15d   : > { %8619 = vmatprep.subr.bf16.mxu0 %v8618_v58 }
 0x15f   : > { %7319 = vmatmul.mubr.f32.gmra.mrb[8].mxu0 %v10326_v22 }
 0x160   : > { %7321 = vmatprep.mubr.f32.mxu0 %v10328_v23  ;;  %8621 = vmatpush3.bf16.msra.mxu0 %v8618_v58  ;;  %v8634_v58 = vpack.c.bf16 %v1879_v47, %v1878_v54  ;;  %v1885_v54 = vld [vmem:[#allocation7 + $0x2b8] sm:$0xff] }
 0x161   : > { %8623 = vmatprep.subr.bf16.mxu0 %v8622_v53 }
 0x163   : > { %7322 = vmatmul.mubr.f32.gmra.mrb[10].mxu0 %v10332_v40 }
 0x164   : > { %7324 = vmatprep.mubr.f32.mxu0 %v10334_v44  ;;  %8625 = vmatpush3.bf16.msra.mxu0 %v8622_v53  ;;  %v1880_v53 = vld [vmem:[#allocation7 + $0x290] sm:$0xff] }
 0x165   : > { %8627 = vmatprep.subr.bf16.mxu0 %v8626_v39  ;;  %v8638_v29 = vpack.c.bf16 %v1881_v48, %v1880_v53  ;;  %v1887_v53 = vld [vmem:[#allocation7 + $0x2c8] sm:$0xff] }
 0x166   : > { %v1891_v48 = vld [vmem:[#allocation7 + $0x2e8] sm:$0xff] }
 0x167   : > { %7325 = vmatmul.mubr.f32.gmra.mrb[12].mxu0 %v10338_v55 }
 0x168   : > { %7327 = vmatprep.mubr.f32.mxu0 %v10340_v56  ;;  %8629 = vmatpush3.bf16.msra.mxu0 %v8626_v39  ;;  %v1882_v39 = vld [vmem:[#allocation7 + $0x2a0] sm:$0xff] }
 0x169   : > { %8631 = vmatprep.subr.bf16.mxu0 %v8630_v49  ;;  %v8642_v50 = vpack.c.bf16 %v1883_v41, %v1882_v39  ;;  %v2186_v39 = vld [vmem:[#allocation7 + $0x308] sm:$0xff]  ;;  %v11361_v41 = vld [vmem:[#allocation21_spill] sm:$0xff] }
 0x16b   : > { %7328 = vmatmul.mubr.f32.gmra.mrb[14].mxu0 %v10344_v60 }
 0x16c   : > { %7330 = vmatprep.mubr.f32.mxu0 %v10346_v61  ;;  %8633 = vmatpush3.bf16.msra.mxu0 %v8630_v49  ;;  %v1884_v49 = vld [vmem:[#allocation7 + $0x2b0] sm:$0xff] }
 0x16d   : > { %8635 = vmatprep.subr.bf16.mxu0 %v8634_v58  ;;  %v8646_v47 = vpack.c.bf16 %v1885_v54, %v1884_v49  ;;  %v2188_v49 = vld [vmem:[#allocation7 + $0x318] sm:$0xff] }
 0x16e   : > { %v11365_v54 = vld [vmem:[#allocation25_spill] sm:$0xff] }
 0x16f   : > { %7331 = vmatmul.mubr.f32.gmra.mrb[16].mxu0 %v10350_v62 }
 0x170   : > { %7333 = vmatprep.mubr.f32.mxu0 %v10352_v0 }
 0x173   : > { %7334 = vmatmul.mubr.f32.gmra.mrb[18].mxu0 %v10356_v2 }
 0x174   : > { %7336 = vmatprep.mubr.f32.mxu0 %v10358_v3 }
 0x177   : > { %7337 = vmatmul.mubr.f32.gmra.mrb[20].mxu0 %v10362_v6 }
 0x178   : > { %7339 = vmatprep.mubr.f32.mxu0 %v10364_v7 }
 0x17b   : > { %7340 = vmatmul.mubr.f32.gmra.mrb[22].mxu0 %v10368_v8 }
 0x17c   : > { %7342 = vmatprep.mubr.f32.mxu0 %v10370_v11 }
 0x17f   : > { %7343 = vmatmul.mubr.f32.gmra.mrb[24].mxu0 %v10374_v12 }
 0x180   : > { %7345 = vmatprep.mubr.f32.mxu0 %v10376_v18 }
 0x183   : > { %7346 = vmatmul.mubr.f32.gmra.mrb[26].mxu0 %v10388_v34 }
 0x184   : > { %7348 = vmatprep.mubr.f32.mxu0 %v10390_v45 }
 0x187   : > { %7349 = vmatmul.mubr.f32.gmra.mrb[28].mxu0 %v10394_v51 }
 0x188   : > { %7351 = vmatprep.mubr.f32.mxu0 %v10516_v52 }
 0x18b   : > { %7352 = vmatmul.mubr.f32.gmra.mrb[30].mxu0 %v10520_v43 }
 0x18c   : > { %7386 = vmatprep.mubr.f32.mxu0 %v10149_v13  ;;  %v1886_v13 = vld [vmem:[#allocation7 + $0x2c0] sm:$0xff] }
 0x18f   : > { %7387 = vmatmul.mubr.f32.vlgmr.msra.gmra.mrb[0].mxu0 %v10153_v14  ;;  %v8650_v14 = vpack.c.bf16 %v1887_v53, %v1886_v13  ;;  %v2189_v53 = vld [vmem:[#allocation7 + $0x320] sm:$0xff] }
 0x190   : > { %8637 = vmatpush3.bf16.msra.mxu0 %v8634_v58  ;;  %7389 = vmatprep.mubr.f32.mxu0 %v10156_v15  ;;  %v1888_v15 = vld [vmem:[#allocation7 + $0x2d0] sm:$0xff]  ;;  %v1889_v58 = vld [vmem:[#allocation7 + $0x2d8] sm:$0xff] }
 0x191   : > { %8639 = vmatprep.subr.bf16.mxu0 %v8638_v29 }
 0x193   : > { %7390 = vmatmul.mubr.f32.gmra.mrb[2].mxu0 %v10159_v16  ;;  %v8654_v16 = vpack.c.bf16 %v1889_v58, %v1888_v15  ;;  %v11367_v15 = vld [vmem:[#allocation27_spill] sm:$0xff]  ;;  %v11368_v58 = vld [vmem:[#allocation28_spill] sm:$0xff] }
 0x194   : > { %7392 = vmatprep.mubr.f32.mxu0 %v10165_v17  ;;  %8641 = vmatpush3.bf16.msra.mxu0 %v8638_v29  ;;  %v1890_v17 = vld [vmem:[#allocation7 + $0x2e0] sm:$0xff]  ;;  %v1893_v29 = vld [vmem:[#allocation7 + $0x2f8] sm:$0xff] }
 0x195   : > { %8643 = vmatprep.subr.bf16.mxu0 %v8642_v50 }
 0x197   : > { %7393 = vmatmul.mubr.f32.gmra.mrb[4].mxu0 %v10169_v19  ;;  %v8658_v19 = vpack.c.bf16 %v1891_v48, %v1890_v17  ;;  %v2191_v17 = vld [vmem:[#allocation7 + $0x330] sm:$0xff]  ;;  %v2192_v48 = vld [vmem:[#allocation7 + $0x338] sm:$0xff] }
 0x198   : > { %7395 = vmatprep.mubr.f32.mxu0 %v10172_v20  ;;  %8645 = vmatpush3.bf16.msra.mxu0 %v8642_v50  ;;  %v1892_v20 = vld [vmem:[#allocation7 + $0x2f0] sm:$0xff] }
 0x199   : > { %8647 = vmatprep.subr.bf16.mxu0 %v8646_v47  ;;  %v2187_v50 = vld [vmem:[#allocation7 + $0x310] sm:$0xff] }
 0x19a   : > { %v8670_v13 = vpack.c.bf16 %v2188_v49, %v2187_v50  ;;  %v2491_v49 = vld [vmem:[#allocation7 + $0x380] sm:$0xff] }
 0x19b   : > { %7396 = vmatmul.mubr.f32.gmra.mrb[6].mxu0 %v10175_v21  ;;  %v8662_v21 = vpack.c.bf16 %v1893_v29, %v1892_v20  ;;  %v11370_v20 = vld [vmem:[#allocation30_spill] sm:$0xff]  ;;  %v8678_v29 = vpack.c.bf16 %v2192_v48, %v2191_v17  ;;  %v11385_v17 = vld [vmem:[#allocation45_spill] sm:$0xff] }
 0x19c   : > { %7398 = vmatprep.mubr.f32.mxu0 %v10181_v24  ;;  %8649 = vmatpush3.bf16.msra.mxu0 %v8646_v47  ;;  %v2185_v24 = vld [vmem:[#allocation7 + $0x300] sm:$0xff] }
 0x19d   : > { %8651 = vmatprep.subr.bf16.mxu0 %v8650_v14  ;;  %v11366_v47 = vld [vmem:[#allocation26_spill] sm:$0xff] }
 0x19e   : > { %v11386_v48 = vld [vmem:[#allocation46_spill] sm:$0xff] }
 0x19f   : > { %7399 = vmatmul.mubr.f32.gmra.mrb[8].mxu0 %v10185_v25  ;;  %v8666_v25 = vpack.c.bf16 %v2186_v39, %v2185_v24  ;;  %v2194_v24 = vld [vmem:[#allocation7 + $0x348] sm:$0xff] }
 0x1a0   : > { %7401 = vmatprep.mubr.f32.mxu0 %v10188_v26  ;;  %8653 = vmatpush3.bf16.msra.mxu0 %v8650_v14  ;;  %v11354_v26 = vld [vmem:[#allocation14_spill] sm:$0xff]  ;;  %v2190_v14 = vld [vmem:[#allocation7 + $0x328] sm:$0xff] }
 0x1a1   : > { %8655 = vmatprep.subr.bf16.mxu0 %v8654_v16  ;;  %v11371_v39 = vld [vmem:[#allocation31_spill] sm:$0xff] }
 0x1a3   : > { %7402 = vmatmul.mubr.f32.gmra.mrb[10].mxu0 %v10191_v27  ;;  %v11355_v27 = vld [vmem:[#allocation15_spill] sm:$0xff] }
 0x1a4   : > { %7404 = vmatprep.mubr.f32.mxu0 %v10197_v28  ;;  %8657 = vmatpush3.bf16.msra.mxu0 %v8654_v16  ;;  %v11356_v28 = vld [vmem:[#allocation16_spill] sm:$0xff]  ;;  %v8674_v16 = vpack.c.bf16 %v2190_v14, %v2189_v53  ;;  %v11378_v53 = vld [vmem:[#allocation38_spill] sm:$0xff]  ;;  %v11381_v14 = vld [vmem:[#allocation41_spill] sm:$0xff] }
 0x1a5   : > { %8659 = vmatprep.subr.bf16.mxu0 %v8658_v19 }
 0x1a7   : > { %7405 = vmatmul.mubr.f32.gmra.mrb[12].mxu0 %v10201_v30  ;;  %v11357_v30 = vld [vmem:[#allocation17_spill] sm:$0xff] }
 0x1a8   : > { %7407 = vmatprep.mubr.f32.mxu0 %v10204_v31  ;;  %8661 = vmatpush3.bf16.msra.mxu0 %v8658_v19  ;;  %v11358_v31 = vld [vmem:[#allocation18_spill] sm:$0xff]  ;;  %v11369_v19 = vld [vmem:[#allocation29_spill] sm:$0xff] }
 0x1a9   : > { %8663 = vmatprep.subr.bf16.mxu0 %v8662_v21 }
 0x1ab   : > { %7408 = vmatmul.mubr.f32.gmra.mrb[14].mxu0 %v10207_v32  ;;  %v11359_v32 = vld [vmem:[#allocation19_spill] sm:$0xff] }
 0x1ac   : > { %7410 = vmatprep.mubr.f32.mxu0 %v10213_v35  ;;  %8665 = vmatpush3.bf16.msra.mxu0 %v8662_v21  ;;  %v11360_v35 = vld [vmem:[#allocation20_spill] sm:$0xff]  ;;  %v2193_v21 = vld [vmem:[#allocation7 + $0x340] sm:$0xff] }
 0x1ad   : > { %8667 = vmatprep.subr.bf16.mxu0 %v8666_v25 }
 0x1af   : > { %7411 = vmatmul.mubr.f32.gmra.mrb[16].mxu0 %v10217_v36  ;;  %v11362_v36 = vld [vmem:[#allocation22_spill] sm:$0xff] }
 0x1b0   : > { %7413 = vmatprep.mubr.f32.mxu0 %v10220_v37  ;;  %v11363_v37 = vld [vmem:[#allocation23_spill] sm:$0xff] }
 0x1b3   : > { %7414 = vmatmul.mubr.f32.gmra.mrb[18].mxu0 %v10223_v38  ;;  %v11364_v38 = vld [vmem:[#allocation24_spill] sm:$0xff] }
 0x1b4   : > { %7416 = vmatprep.mubr.f32.mxu0 %v11354_v26  ;;  %v11372_v26 = vld [vmem:[#allocation32_spill] sm:$0xff] }
 0x1b7   : > { %7417 = vmatmul.mubr.f32.gmra.mrb[20].mxu0 %v11355_v27  ;;  %v2195_v27 = vld [vmem:[#allocation7 + $0x350] sm:$0xff] }
 0x1b8   : > { %7419 = vmatprep.mubr.f32.mxu0 %v11356_v28  ;;  %v2196_v28 = vld [vmem:[#allocation7 + $0x358] sm:$0xff] }
 0x1bb   : > { %7420 = vmatmul.mubr.f32.gmra.mrb[22].mxu0 %v11357_v30  ;;  %v11373_v30 = vld [vmem:[#allocation33_spill] sm:$0xff] }
 0x1bc   : > { %7422 = vmatprep.mubr.f32.mxu0 %v11358_v31  ;;  %v11374_v31 = vld [vmem:[#allocation34_spill] sm:$0xff] }
 0x1bf   : > { %7423 = vmatmul.mubr.f32.gmra.mrb[24].mxu0 %v11359_v32  ;;  %v8686_v32 = vpack.c.bf16 %v2196_v28, %v2195_v27  ;;  %v2494_v27 = vld [vmem:[#allocation7 + $0x398] sm:$0xff] }
 0x1c0   : > { %7425 = vmatprep.mubr.f32.mxu0 %v11360_v35  ;;  %v2197_v35 = vld [vmem:[#allocation7 + $0x360] sm:$0xff] }
 0x1c3   : > { %7426 = vmatmul.mubr.f32.gmra.mrb[26].mxu0 %v11361_v41  ;;  %v2198_v41 = vld [vmem:[#allocation7 + $0x368] sm:$0xff] }
 0x1c4   : > { %7428 = vmatprep.mubr.f32.mxu0 %v11362_v36  ;;  %v8690_v36 = vpack.c.bf16 %v2198_v41, %v2197_v35  ;;  %v2497_v35 = vld [vmem:[#allocation7 + $0x3b0] sm:$0xff]  ;;  %v2498_v41 = vld [vmem:[#allocation7 + $0x3b8] sm:$0xff] }
 0x1c7   : > { %7429 = vmatmul.mubr.f32.gmra.mrb[28].mxu0 %v11363_v37  ;;  %v2199_v37 = vld [vmem:[#allocation7 + $0x370] sm:$0xff] }
 0x1c8   : > { %7431 = vmatprep.mubr.f32.mxu0 %v11364_v38  ;;  %v2200_v38 = vld [vmem:[#allocation7 + $0x378] sm:$0xff] }
 0x1c9   : > { %v8694_v50 = vpack.c.bf16 %v2200_v38, %v2199_v37  ;;  %v2500_v37 = vld [vmem:[#allocation7 + $0x3c8] sm:$0xff]  ;;  %v2502_v38 = vld [vmem:[#allocation7 + $0x3d8] sm:$0xff] }
 0x1cb   : > { %7432 = vmatmul.mubr.f32.gmra.mrb[30].mxu0 %v11365_v54  ;;  %v2492_v54 = vld [vmem:[#allocation7 + $0x388] sm:$0xff] }
 0x1cc   : > { %7466 = vmatprep.mubr.f32.mxu0 %v11366_v47  ;;  %v11375_v47 = vld [vmem:[#allocation35_spill] sm:$0xff] }
 0x1cf   : > { %7467 = vmatmul.mubr.f32.vlgmr.msra.gmra.mrb[0].mxu0 %v11367_v15  ;;  %v11382_v15 = vld [vmem:[#allocation42_spill] sm:$0xff] }
 0x1d0   : > { %8669 = vmatpush3.bf16.msra.mxu0 %v8666_v25  ;;  %7469 = vmatprep.mubr.f32.mxu0 %v11368_v58  ;;  %v8682_v25 = vpack.c.bf16 %v2194_v24, %v2193_v21  ;;  %v11383_v58 = vld [vmem:[#allocation43_spill] sm:$0xff]  ;;  %v11390_v21 = vld [vmem:[#allocation50_spill] sm:$0xff] }
 0x1d1   : > { %8671 = vmatprep.subr.bf16.mxu0 %v8670_v13  ;;  %v10584_v24 = vld [vmem:[#allocation2 + $0x182] sm:$0xff] }
 0x1d3   : > { %7470 = vmatmul.mubr.f32.gmra.mrb[2].mxu0 %v11369_v19  ;;  %v11387_v19 = vld [vmem:[#allocation47_spill] sm:$0xff] }
 0x1d4   : > { %7472 = vmatprep.mubr.f32.mxu0 %v11370_v20  ;;  %8673 = vmatpush3.bf16.msra.mxu0 %v8670_v13  ;;  %v11376_v13 = vld [vmem:[#allocation36_spill] sm:$0xff] }
 0x1d5   : > { %8675 = vmatprep.subr.bf16.mxu0 %v8674_v16  ;;  %v11388_v20 = vld [vmem:[#allocation48_spill] sm:$0xff] }
 0x1d7   : > { %7473 = vmatmul.mubr.f32.gmra.mrb[4].mxu0 %v11371_v39  ;;  %v11391_v39 = vld [vmem:[#allocation51_spill] sm:$0xff] }
 0x1d8   : > { %7475 = vmatprep.mubr.f32.mxu0 %v11372_v26  ;;  %8677 = vmatpush3.bf16.msra.mxu0 %v8674_v16  ;;  %v11384_v16 = vld [vmem:[#allocation44_spill] sm:$0xff] }
 0x1d9   : > { %8679 = vmatprep.subr.bf16.mxu0 %v8678_v29  ;;  %v10588_v26 = vld [vmem:[#allocation2 + $0x18a] sm:$0xff] }
 0x1db   : > { %7476 = vmatmul.mubr.f32.gmra.mrb[6].mxu0 %v11373_v30  ;;  %v2495_v30 = vld [vmem:[#allocation7 + $0x3a0] sm:$0xff] }
 0x1dc   : > { %7478 = vmatprep.mubr.f32.mxu0 %v11374_v31  ;;  %8681 = vmatpush3.bf16.msra.mxu0 %v8678_v29  ;;  %v11389_v29 = vld [vmem:[#allocation49_spill] sm:$0xff]  ;;  %v2496_v31 = vld [vmem:[#allocation7 + $0x3a8] sm:$0xff] }
 0x1dd   : > { %8683 = vmatprep.subr.bf16.mxu0 %v8682_v25 }
 0x1df   : > { %7479 = vmatmul.mubr.f32.gmra.mrb[8].mxu0 %v10424_v42  ;;  %v8698_v42 = vpack.c.bf16 %v2492_v54, %v2491_v49  ;;  %v2506_v49 = vld [vmem:[#allocation7 + $0x3f8] sm:$0xff]  ;;  %v2798_v54 = vld [vmem:[#allocation7 + $0x408] sm:$0xff] }
 0x1e0   : > { %7481 = vmatprep.mubr.f32.mxu0 %v10426_v57  ;;  %8685 = vmatpush3.bf16.msra.mxu0 %v8682_v25  ;;  %v11377_v57 = vld [vmem:[#allocation37_spill] sm:$0xff]  ;;  %v2493_v25 = vld [vmem:[#allocation7 + $0x390] sm:$0xff] }
 0x1e1   : > { %8687 = vmatprep.subr.bf16.mxu0 %v8686_v32  ;;  %v8702_v28 = vpack.c.bf16 %v2494_v27, %v2493_v25  ;;  %v2808_v27 = vld [vmem:[#allocation7 + $0x458] sm:$0xff] }
 0x1e3   : > { %7482 = vmatmul.mubr.f32.gmra.mrb[10].mxu0 %v10430_v46  ;;  %v11379_v46 = vld [vmem:[#allocation39_spill] sm:$0xff] }
 0x1e4   : > { %7484 = vmatprep.mubr.f32.mxu0 %v10432_v33  ;;  %8689 = vmatpush3.bf16.msra.mxu0 %v8686_v32  ;;  %v11380_v33 = vld [vmem:[#allocation40_spill] sm:$0xff]  ;;  %v8706_v32 = vpack.c.bf16 %v2496_v31, %v2495_v30  ;;  %v3309_v30 = vld [vmem:[#allocation9 + $0xd8] sm:$0xff] }
 0x1e5   : > { %8691 = vmatprep.subr.bf16.mxu0 %v8690_v36  ;;  %v2467_v31 = vld [vmem:[#allocation2 + $0x99] sm:$0xff] }
 0x1e7   : > { %7485 = vmatmul.mubr.f32.gmra.mrb[12].mxu0 %v11375_v47 }
 0x1e8   : > { %7487 = vmatprep.mubr.f32.mxu0 %v11376_v13  ;;  %8693 = vmatpush3.bf16.msra.mxu0 %v8690_v36  ;;  %v8710_v36 = vpack.c.bf16 %v2498_v41, %v2497_v35  ;;  %v2803_v13 = vld [vmem:[#allocation7 + $0x430] sm:$0xff] }
 0x1e9   : > { %8695 = vmatprep.subr.bf16.mxu0 %v8694_v50 }
 0x1eb   : > { %7488 = vmatmul.mubr.f32.gmra.mrb[14].mxu0 %v11377_v57  ;;  %v2804_v57 = vld [vmem:[#allocation7 + $0x438] sm:$0xff] }
 0x1ec   : > { %7490 = vmatprep.mubr.f32.mxu0 %v11378_v53  ;;  %8697 = vmatpush3.bf16.msra.mxu0 %v8694_v50  ;;  %v2504_v50 = vld [vmem:[#allocation7 + $0x3e8] sm:$0xff]  ;;  %v3304_v53 = vld [vmem:[#allocation9 + $0xb0] sm:$0xff] }
 0x1ed   : > { %8699 = vmatprep.subr.bf16.mxu0 %v8698_v42 }
 0x1ef   : > { %7491 = vmatmul.mubr.f32.gmra.mrb[16].mxu0 %v11379_v46  ;;  %v3305_v46 = vld [vmem:[#allocation9 + $0xb8] sm:$0xff] }
 0x1f0   : > { %7493 = vmatprep.mubr.f32.mxu0 %v11380_v33  ;;  %v2463_v33 = vld [vmem:[#allocation2 + $0x69] sm:$0xff] }
 0x1f3   : > { %7494 = vmatmul.mubr.f32.gmra.mrb[18].mxu0 %v11381_v14  ;;  %v2464_v14 = vld [vmem:[#allocation2 + $0x79] sm:$0xff] }
 0x1f4   : > { %7496 = vmatprep.mubr.f32.mxu0 %v11382_v15  ;;  %v8742_v15 = vpack.c.bf16 %v2804_v57, %v2803_v13  ;;  %v2773_v13 = vld [vmem:[#allocation2 + $0x9a] sm:$0xff]  ;;  %v2775_v57 = vld [vmem:[#allocation2 + $0xb2] sm:$0xff] }
 0x1f7   : > { %7497 = vmatmul.mubr.f32.gmra.mrb[20].mxu0 %v11383_v58  ;;  %v2805_v58 = vld [vmem:[#allocation7 + $0x440] sm:$0xff] }
 0x1f8   : > { %7499 = vmatprep.mubr.f32.mxu0 %v11384_v16  ;;  %v8774_v16 = vpack.c.bf16 %v3305_v46, %v3304_v53  ;;  %v2776_v53 = vld [vmem:[#allocation2 + $0xc2] sm:$0xff]  ;;  %v2777_v46 = vld [vmem:[#allocation2 + $0xca] sm:$0xff] }
 0x1fb   : > { %7500 = vmatmul.mubr.f32.gmra.mrb[22].mxu0 %v11385_v17  ;;  %v2806_v17 = vld [vmem:[#allocation7 + $0x448] sm:$0xff] }
 0x1fc   : > { %7502 = vmatprep.mubr.f32.mxu0 %v11386_v48  ;;  %v3306_v48 = vld [vmem:[#allocation9 + $0xc0] sm:$0xff] }
 0x1ff   : > { %7503 = vmatmul.mubr.f32.gmra.mrb[24].mxu0 %v11387_v19  ;;  %v3307_v19 = vld [vmem:[#allocation9 + $0xc8] sm:$0xff] }
 0x200   : > { %7505 = vmatprep.mubr.f32.mxu0 %v11388_v20  ;;  %v2465_v20 = vld [vmem:[#allocation2 + $0x81] sm:$0xff]  ;;  %v8778_v25 = vpack.c.bf16 %v3307_v19, %v3306_v48  ;;  %v2785_v19 = vld [vmem:[#allocation2 + $0x12a] sm:$0xff] }
 0x201   : > { %v2784_v48 = vld [vmem:[#allocation2 + $0x122] sm:$0xff] }
 0x203   : > { %7506 = vmatmul.mubr.f32.gmra.mrb[26].mxu0 %v11389_v29  ;;  %v2466_v29 = vld [vmem:[#allocation2 + $0x91] sm:$0xff] }
 0x204   : > { %7508 = vmatprep.mubr.f32.mxu0 %v11390_v21  ;;  %v8746_v21 = vpack.c.bf16 %v2806_v17, %v2805_v58  ;;  %v2781_v58 = vld [vmem:[#allocation2 + $0xfa] sm:$0xff]  ;;  %v2783_v17 = vld [vmem:[#allocation2 + $0x112] sm:$0xff] }
 0x207   : > { %7509 = vmatmul.mubr.f32.gmra.mrb[28].mxu0 %v11391_v39  ;;  %v2807_v39 = vld [vmem:[#allocation7 + $0x450] sm:$0xff] }
 0x208   : > { %7511 = vmatprep.mubr.f32.mxu0 %v10584_v24  ;;  %v8750_v35 = vpack.c.bf16 %v2808_v27, %v2807_v39  ;;  %v2789_v39 = vld [vmem:[#allocation2 + $0x15a] sm:$0xff]  ;;  %v2791_v27 = vld [vmem:[#allocation2 + $0x172] sm:$0xff] }
 0x20b   : > { %7512 = vmatmul.mubr.f32.gmra.mrb[30].mxu0 %v10588_v26 }
 0x20c   : > { %7546 = vmatprep.mubr.f32.mxu0 %v10304_v59  ;;  %v2499_v59 = vld [vmem:[#allocation7 + $0x3c0] sm:$0xff] }
 0x20f   : > { %7547 = vmatmul.mubr.f32.vlgmr.msra.gmra.mrb[0].mxu0 %v10308_v63  ;;  %v8714_v63 = vpack.c.bf16 %v2500_v37, %v2499_v59  ;;  %v2810_v59 = vld [vmem:[#allocation7 + $0x468] sm:$0xff]  ;;  %v2469_v37 = vld [vmem:[#allocation2 + $0xb1] sm:$0xff] }
 0x210   : > { %8701 = vmatpush3.bf16.msra.mxu0 %v8698_v42  ;;  %7549 = vmatprep.mubr.f32.mxu0 %v10310_v1  ;;  %v2501_v1 = vld [vmem:[#allocation7 + $0x3d0] sm:$0xff] }
 0x211   : > { %8703 = vmatprep.subr.bf16.mxu0 %v8702_v28 }
 0x213   : > { %7550 = vmatmul.mubr.f32.gmra.mrb[2].mxu0 %v10314_v4  ;;  %v8718_v4 = vpack.c.bf16 %v2502_v38, %v2501_v1  ;;  %v2811_v38 = vld [vmem:[#allocation7 + $0x470] sm:$0xff] }
 0x214   : > { %7552 = vmatprep.mubr.f32.mxu0 %v10316_v5  ;;  %8705 = vmatpush3.bf16.msra.mxu0 %v8702_v28  ;;  %v2503_v5 = vld [vmem:[#allocation7 + $0x3e0] sm:$0xff]  ;;  %v3308_v28 = vld [vmem:[#allocation9 + $0xd0] sm:$0xff] }
 0x215   : > { %8707 = vmatprep.subr.bf16.mxu0 %v8706_v32  ;;  %v8782_v41 = vpack.c.bf16 %v3309_v30, %v3308_v28  ;;  %v2794_v28 = vld [vmem:[#allocation2 + $0x19a] sm:$0xff]  ;;  %v2795_v30 = vld [vmem:[#allocation2 + $0x1a2] sm:$0xff] }
 0x217   : > { %7553 = vmatmul.mubr.f32.gmra.mrb[4].mxu0 %v10320_v9  ;;  %v8722_v9 = vpack.c.bf16 %v2504_v50, %v2503_v5  ;;  %v2471_v5 = vld [vmem:[#allocation2 + $0xc9] sm:$0xff]  ;;  %v2472_v50 = vld [vmem:[#allocation2 + $0xd9] sm:$0xff] }
 0x218   : > { %7555 = vmatprep.mubr.f32.mxu0 %v10322_v10  ;;  %8709 = vmatpush3.bf16.msra.mxu0 %v8706_v32  ;;  %v2505_v10 = vld [vmem:[#allocation7 + $0x3f0] sm:$0xff] }
 0x219   : > { %8711 = vmatprep.subr.bf16.mxu0 %v8710_v36  ;;  %v2468_v32 = vld [vmem:[#allocation2 + $0xa9] sm:$0xff] }
 0x21b   : > { %7556 = vmatmul.mubr.f32.gmra.mrb[6].mxu0 %v10326_v22  ;;  %v8726_v22 = vpack.c.bf16 %v2506_v49, %v2505_v10  ;;  %v2473_v10 = vld [vmem:[#allocation2 + $0xe1] sm:$0xff]  ;;  %v2474_v49 = vld [vmem:[#allocation2 + $0xf1] sm:$0xff] }
 0x21c   : > { %7558 = vmatprep.mubr.f32.mxu0 %v10328_v23  ;;  %8713 = vmatpush3.bf16.msra.mxu0 %v8710_v36  ;;  %v2797_v23 = vld [vmem:[#allocation7 + $0x400] sm:$0xff] }
 0x21d   : > { %8715 = vmatprep.subr.bf16.mxu0 %v8714_v63  ;;  %v2809_v36 = vld [vmem:[#allocation7 + $0x460] sm:$0xff] }
 0x21e   : > { %v8754_v1 = vpack.c.bf16 %v2810_v59, %v2809_v36  ;;  %v3313_v36 = vld [vmem:[#allocation9 + $0xf8] sm:$0xff] }
 0x21f   : > { %7559 = vmatmul.mubr.f32.gmra.mrb[8].mxu0 %v10332_v40  ;;  %v8730_v40 = vpack.c.bf16 %v2798_v54, %v2797_v23  ;;  %v2476_v23 = vld [vmem:[#allocation2 + $0x109] sm:$0xff]  ;;  %v2477_v54 = vld [vmem:[#allocation2 + $0x111] sm:$0xff] }
 0x220   : > { %7561 = vmatprep.mubr.f32.mxu0 %v10334_v44  ;;  %8717 = vmatpush3.bf16.msra.mxu0 %v8714_v63  ;;  %v2182_v44 = vld [vmem:[#allocation2 + $0x198] sm:$0xff]  ;;  %v2470_v63 = vld [vmem:[#allocation2 + $0xc1] sm:$0xff] }
 0x221   : > { %8719 = vmatprep.subr.bf16.mxu0 %v8718_v4 }
 0x223   : > { %7562 = vmatmul.mubr.f32.gmra.mrb[10].mxu0 %v10338_v55  ;;  %v2458_v55 = vld [vmem:[#allocation2 + $0x31] sm:$0xff] }
 0x224   : > { %7564 = vmatprep.mubr.f32.mxu0 %v10340_v56  ;;  %8721 = vmatpush3.bf16.msra.mxu0 %v8718_v4  ;;  %v2799_v56 = vld [vmem:[#allocation7 + $0x410] sm:$0xff]  ;;  %v2812_v4 = vld [vmem:[#allocation7 + $0x478] sm:$0xff] }
 0x225   : > { %8723 = vmatprep.subr.bf16.mxu0 %v8722_v9 }
 0x227   : > { %7565 = vmatmul.mubr.f32.gmra.mrb[12].mxu0 %v10344_v60  ;;  %v2800_v60 = vld [vmem:[#allocation7 + $0x418] sm:$0xff] }
 0x228   : > { %7567 = vmatprep.mubr.f32.mxu0 %v10346_v61  ;;  %8725 = vmatpush3.bf16.msra.mxu0 %v8722_v9  ;;  %v10621_v61 = vld [vmem:[#allocation2 + $0x8] sm:$0xff]  ;;  %v8758_v9 = vpack.c.bf16 %v2812_v4, %v2811_v38  ;;  %v3251_v38 = vld [vmem:[#allocation9 + $0x10] sm:$0xff]  ;;  %v3252_v4 = vld [vmem:[#allocation9 + $0x18] sm:$0xff] }
 0x229   : > { %8727 = vmatprep.subr.bf16.mxu0 %v8726_v22 }
 0x22b   : > { %7568 = vmatmul.mubr.f32.gmra.mrb[14].mxu0 %v10350_v62  ;;  %v3298_v62 = vld [vmem:[#allocation9 + $0x80] sm:$0xff] }
 0x22c   : > { %7570 = vmatprep.mubr.f32.mxu0 %v10352_v0  ;;  %8729 = vmatpush3.bf16.msra.mxu0 %v8726_v22  ;;  %v3299_v0 = vld [vmem:[#allocation9 + $0x88] sm:$0xff]  ;;  %v2475_v22 = vld [vmem:[#allocation2 + $0xf9] sm:$0xff] }
 0x22d   : > { %8731 = vmatprep.subr.bf16.mxu0 %v8730_v40 }
 0x22f   : > { %7571 = vmatmul.mubr.f32.gmra.mrb[16].mxu0 %v10356_v2  ;;  %v3300_v2 = vld [vmem:[#allocation9 + $0x90] sm:$0xff] }
 0x230   : > { %7573 = vmatprep.mubr.f32.mxu0 %v10358_v3  ;;  %v2459_v3 = vld [vmem:[#allocation2 + $0x39] sm:$0xff] }
 0x233   : > { %7574 = vmatmul.mubr.f32.gmra.mrb[18].mxu0 %v10362_v6  ;;  %v8762_v6 = vpack.c.bf16 %v3299_v0, %v3298_v62  ;;  %v2483_v62 = vld [vmem:[#allocation2 + $0x159] sm:$0xff]  ;;  %v2484_v0 = vld [vmem:[#allocation2 + $0x169] sm:$0xff] }
 0x234   : > { %7576 = vmatprep.mubr.f32.mxu0 %v10364_v7  ;;  %v3301_v7 = vld [vmem:[#allocation9 + $0x98] sm:$0xff] }
 0x235   : > { %8763 = vmatprep.subr.bf16.mxu1 %v8762_v6 }
 0x236   : > { %8765 = vmatpush3.bf16.msra.mxu1 %v8762_v6  ;;  %v2488_v6 = vld [vmem:[#allocation2 + $0x199] sm:$0xff] }
 0x237   : > { %7577 = vmatmul.mubr.f32.gmra.mrb[20].mxu0 %v10368_v8  ;;  %v2460_v8 = vld [vmem:[#allocation2 + $0x49] sm:$0xff] }
 0x238   : > { %7579 = vmatprep.mubr.f32.mxu0 %v10370_v11  ;;  %v8734_v11 = vpack.c.bf16 %v2800_v60, %v2799_v56  ;;  %v2481_v56 = vld [vmem:[#allocation2 + $0x141] sm:$0xff]  ;;  %v2482_v60 = vld [vmem:[#allocation2 + $0x151] sm:$0xff] }
 0x23b   : > { %7580 = vmatmul.mubr.f32.gmra.mrb[22].mxu0 %v10374_v12  ;;  %v2801_v12 = vld [vmem:[#allocation7 + $0x420] sm:$0xff] }
 0x23c   : > { %7582 = vmatprep.mubr.f32.mxu0 %v10376_v18  ;;  %v8766_v18 = vpack.c.bf16 %v3301_v7, %v3300_v2  ;;  %v2485_v2 = vld [vmem:[#allocation2 + $0x171] sm:$0xff]  ;;  %v9636_v7 = vld [vmem:[#allocation2 + $0x189] sm:$0xff] }
 0x23e   : > { %8767 = vmatprep.subr.bf16.mxu1 %v8766_v18 }
 0x23f   : > { %7583 = vmatmul.mubr.f32.gmra.mrb[24].mxu0 %v10388_v34  ;;  %v2802_v34 = vld [vmem:[#allocation7 + $0x428] sm:$0xff]  ;;  %8769 = vmatpush3.bf16.msra.mxu1 %v8766_v18 }
 0x240   : > { %7585 = vmatprep.mubr.f32.mxu0 %v10390_v45  ;;  %v3302_v45 = vld [vmem:[#allocation9 + $0xa0] sm:$0xff]  ;;  %v8738_v47 = vpack.c.bf16 %v2802_v34, %v2801_v12  ;;  %v2766_v18 = vld [vmem:[#allocation2 + $0x4a] sm:$0xff]  ;;  %v2767_v34 = vld [vmem:[#allocation2 + $0x52] sm:$0xff] }
 0x241   : > { %v2765_v12 = vld [vmem:[#allocation2 + $0x3a] sm:$0xff] }
 0x243   : > { %7586 = vmatmul.mubr.f32.gmra.mrb[26].mxu0 %v10394_v51  ;;  %v3303_v51 = vld [vmem:[#allocation9 + $0xa8] sm:$0xff] }
 0x244   : > { %7588 = vmatprep.mubr.f32.mxu0 %v10516_v52  ;;  %v2461_v52 = vld [vmem:[#allocation2 + $0x51] sm:$0xff]  ;;  %v8770_v42 = vpack.c.bf16 %v3303_v51, %v3302_v45  ;;  %v2768_v45 = vld [vmem:[#allocation2 + $0x62] sm:$0xff] }
 0x245   : > { %v2769_v51 = vld [vmem:[#allocation2 + $0x6a] sm:$0xff] }
 0x246   : > { %8771 = vmatprep.subr.bf16.mxu1 %v8770_v42 }
 0x247   : > { %7589 = vmatmul.mubr.f32.gmra.mrb[28].mxu0 %v10520_v43  ;;  %v2462_v43 = vld [vmem:[#allocation2 + $0x61] sm:$0xff]  ;;  %8773 = vmatpush3.bf16.msra.mxu1 %v8770_v42  ;;  %v2774_v42 = vld [vmem:[#allocation2 + $0xaa] sm:$0xff] }
 0x248   : > { %7591 = vmatprep.mubr.f32.mxu0 %v2182_v44  ;;  %8775 = vmatprep.subr.bf16.mxu1 %v8774_v16  ;;  %v2479_v44 = vld [vmem:[#allocation2 + $0x129] sm:$0xff] }
 0x24b   : > { %7592 = vmatmul.mubr.f32.gmra.mrb[30].mxu0 %v10621_v61  ;;  %8777 = vmatpush3.bf16.msra.mxu1 %v8774_v16  ;;  %v2782_v16 = vld [vmem:[#allocation2 + $0x10a] sm:$0xff] }
 0x24c   : > { %7626 = vmatprep.mubr.f32.mxu0 %v2458_v55  ;;  %8779 = vmatprep.subr.bf16.mxu1 %v8778_v25  ;;  %v2480_v55 = vld [vmem:[#allocation2 + $0x139] sm:$0xff] }
 0x24f   : > { %7627 = vmatmul.mubr.f32.vlgmr.msra.gmra.mrb[0].mxu0 %v2459_v3  ;;  %8781 = vmatpush3.bf16.msra.mxu1 %v8778_v25  ;;  %v9635_v3 = vld [vmem:[#allocation2 + $0x181] sm:$0xff]  ;;  %v2790_v25 = vld [vmem:[#allocation2 + $0x16a] sm:$0xff] }
 0x250   : > { %8733 = vmatpush3.bf16.msra.mxu0 %v8730_v40  ;;  %7629 = vmatprep.mubr.f32.mxu0 %v2460_v8  ;;  %v2478_v40 = vld [vmem:[#allocation2 + $0x121] sm:$0xff] }
 0x251   : > { %8735 = vmatprep.subr.bf16.mxu0 %v8734_v11  ;;  %8783 = vmatprep.subr.bf16.mxu1 %v8782_v41  ;;  %v2489_v8 = vld [vmem:[#allocation2 + $0x1a1] sm:$0xff] }
 0x253   : > { %7630 = vmatmul.mubr.f32.gmra.mrb[2].mxu0 %v2461_v52  ;;  %8785 = vmatpush3.bf16.msra.mxu1 %v8782_v41  ;;  %v2770_v52 = vld [vmem:[#allocation2 + $0x7a] sm:$0xff]  ;;  %v3312_v41 = vld [vmem:[#allocation9 + $0xf0] sm:$0xff] }
 0x254   : > { %7632 = vmatprep.mubr.f32.mxu0 %v2462_v43  ;;  %8737 = vmatpush3.bf16.msra.mxu0 %v8734_v11  ;;  %v2764_v11 = vld [vmem:[#allocation2 + $0x32] sm:$0xff]  ;;  %v2771_v43 = vld [vmem:[#allocation2 + $0x82] sm:$0xff]  ;;  %v8790_v59 = vpack.c.bf16 %v3313_v36, %v3312_v41 }
 0x255   : > { %8739 = vmatprep.subr.bf16.mxu0 %v8738_v47 }
 0x257   : > { %7633 = vmatmul.mubr.f32.gmra.mrb[4].mxu0 %v2463_v33  ;;  %v2778_v33 = vld [vmem:[#allocation2 + $0xda] sm:$0xff] }
 0x258   : > { %7635 = vmatprep.mubr.f32.mxu0 %v2464_v14  ;;  %8741 = vmatpush3.bf16.msra.mxu0 %v8738_v47  ;;  %v2772_v47 = vld [vmem:[#allocation2 + $0x92] sm:$0xff]  ;;  %v2779_v14 = vld [vmem:[#allocation2 + $0xe2] sm:$0xff] }
 0x259   : > { %8743 = vmatprep.subr.bf16.mxu0 %v8742_v15 }
 0x25b   : > { %7636 = vmatmul.mubr.f32.gmra.mrb[6].mxu0 %v2465_v20  ;;  %v2786_v20 = vld [vmem:[#allocation2 + $0x13a] sm:$0xff] }
 0x25c   : > { %7638 = vmatprep.mubr.f32.mxu0 %v2466_v29  ;;  %8745 = vmatpush3.bf16.msra.mxu0 %v8742_v15  ;;  %v2780_v15 = vld [vmem:[#allocation2 + $0xf2] sm:$0xff]  ;;  %v2787_v29 = vld [vmem:[#allocation2 + $0x142] sm:$0xff] }
 0x25d   : > { %8747 = vmatprep.subr.bf16.mxu0 %v8746_v21 }
 0x25f   : > { %7639 = vmatmul.mubr.f32.gmra.mrb[8].mxu0 %v2467_v31  ;;  %v3310_v31 = vld [vmem:[#allocation9 + $0xe0] sm:$0xff] }
 0x260   : > { %7641 = vmatprep.mubr.f32.mxu0 %v2468_v32  ;;  %8749 = vmatpush3.bf16.msra.mxu0 %v8746_v21  ;;  %v2788_v21 = vld [vmem:[#allocation2 + $0x152] sm:$0xff]  ;;  %v3311_v32 = vld [vmem:[#allocation9 + $0xe8] sm:$0xff] }
 0x261   : > { %8751 = vmatprep.subr.bf16.mxu0 %v8750_v35 }
 0x263   : > { %7642 = vmatmul.mubr.f32.gmra.mrb[10].mxu0 %v2469_v37  ;;  %v3265_v37 = vld [vmem:[#allocation3 + $0x1] sm:$0xff] }
 0x264   : > { %7644 = vmatprep.mubr.f32.mxu0 %v2470_v63  ;;  %8753 = vmatpush3.bf16.msra.mxu0 %v8750_v35  ;;  %v8786_v35 = vpack.c.bf16 %v3311_v32, %v3310_v31  ;;  %v3266_v63 = vld [vmem:[#allocation3 + $0x9] sm:$0xff] }
 0x265   : > { %8755 = vmatprep.subr.bf16.mxu0 %v8754_v1  ;;  %7786 = vmatprep.mubr.f32.mxu1 %v3265_v37 }
 0x266   : > { %8787 = vmatprep.subr.bf16.mxu1 %v8786_v35 }
 0x267   : > { %7645 = vmatmul.mubr.f32.gmra.mrb[12].mxu0 %v2471_v5  ;;  %8789 = vmatpush3.bf16.msra.mxu1 %v8786_v35  ;;  %v8798_v5 = vpack.c.bf16 %v3252_v4, %v3251_v38 }
 0x268   : > { %7647 = vmatprep.mubr.f32.mxu0 %v2472_v50  ;;  %8757 = vmatpush3.bf16.msra.mxu0 %v8754_v1  ;;  %v3250_v1 = vld [vmem:[#allocation9 + $0x8] sm:$0xff]  ;;  %v3253_v50 = vld [vmem:[#allocation9 + $0x20] sm:$0xff] }
 0x269   : > { %8759 = vmatprep.subr.bf16.mxu0 %v8758_v9  ;;  %8791 = vmatprep.subr.bf16.mxu1 %v8790_v59 }
 0x26b   : > { %7648 = vmatmul.mubr.f32.gmra.mrb[14].mxu0 %v2473_v10  ;;  %8793 = vmatpush3.bf16.msra.mxu1 %v8790_v59 }
 0x26c   : > { %7650 = vmatprep.mubr.f32.mxu0 %v2474_v49  ;;  %8761 = vmatpush3.bf16.msra.mxu0 %v8758_v9  ;;  %v3254_v9 = vld [vmem:[#allocation9 + $0x28] sm:$0xff]  ;;  %v3255_v49 = vld [vmem:[#allocation9 + $0x30] sm:$0xff] }
 0x26d   : > { %v8802_v10 = vpack.c.bf16 %v3254_v9, %v3253_v50 }
 0x26e   : > { %7787 = vmatmul.mubr.f32.vlgmr.msra.gmra.mrb[0].mxu1 %v3266_v63 }
 0x26f   : > { %7651 = vmatmul.mubr.f32.gmra.mrb[16].mxu0 %v2475_v22  ;;  %v3256_v22 = vld [vmem:[#allocation9 + $0x38] sm:$0xff] }
 0x270   : > { %7653 = vmatprep.mubr.f32.mxu0 %v2476_v23  ;;  %v8806_v23 = vpack.c.bf16 %v3256_v22, %v3255_v49 }
 0x273   : > { %7654 = vmatmul.mubr.f32.gmra.mrb[18].mxu0 %v2477_v54  ;;  %v3257_v54 = vld [vmem:[#allocation9 + $0x40] sm:$0xff] }
 0x274   : > { %7656 = vmatprep.mubr.f32.mxu0 %v2478_v40  ;;  %v3258_v40 = vld [vmem:[#allocation9 + $0x48] sm:$0xff] }
 0x277   : > { %7657 = vmatmul.mubr.f32.gmra.mrb[20].mxu0 %v2479_v44  ;;  %v8810_v44 = vpack.c.bf16 %v3258_v40, %v3257_v54 }
 0x278   : > { %7659 = vmatprep.mubr.f32.mxu0 %v2480_v55  ;;  %v3259_v55 = vld [vmem:[#allocation9 + $0x50] sm:$0xff] }
 0x27b   : > { %7660 = vmatmul.mubr.f32.gmra.mrb[22].mxu0 %v2481_v56  ;;  %v3260_v56 = vld [vmem:[#allocation9 + $0x58] sm:$0xff] }
 0x27c   : > { %7662 = vmatprep.mubr.f32.mxu0 %v2482_v60  ;;  %v8814_v60 = vpack.c.bf16 %v3260_v56, %v3259_v55 }
 0x27f   : > { %7663 = vmatmul.mubr.f32.gmra.mrb[24].mxu0 %v2483_v62  ;;  %v3261_v62 = vld [vmem:[#allocation9 + $0x60] sm:$0xff] }
 0x280   : > { %7665 = vmatprep.mubr.f32.mxu0 %v2484_v0  ;;  %v3262_v0 = vld [vmem:[#allocation9 + $0x68] sm:$0xff] }
 0x283   : > { %7666 = vmatmul.mubr.f32.gmra.mrb[26].mxu0 %v2485_v2  ;;  %v8818_v2 = vpack.c.bf16 %v3262_v0, %v3261_v62 }
 0x284   : > { %7668 = vmatprep.mubr.f32.mxu0 %v9635_v3  ;;  %v3263_v3 = vld [vmem:[#allocation9 + $0x70] sm:$0xff] }
 0x287   : > { %7669 = vmatmul.mubr.f32.gmra.mrb[28].mxu0 %v9636_v7 }
 0x288   : > { %7671 = vmatprep.mubr.f32.mxu0 %v2488_v6  ;;  %v3264_v6 = vld [vmem:[#allocation9 + $0x78] sm:$0xff] }
 0x289   : > { %v8822_v7 = vpack.c.bf16 %v3264_v6, %v3263_v3 }
 0x28b   : > { %7672 = vmatmul.mubr.f32.gmra.mrb[30].mxu0 %v2489_v8  ;;  %v3797_v8 = vld [vmem:[#allocation9 + $0x100] sm:$0xff] }
 0x28c   : > { %7706 = vmatprep.mubr.f32.mxu0 %v2764_v11  ;;  %v3798_v11 = vld [vmem:[#allocation9 + $0x108] sm:$0xff] }
 0x28f   : > { %7707 = vmatmul.mubr.f32.vlgmr.msra.gmra.mrb[0].mxu0 %v2765_v12  ;;  %v10626_v12 = vpack.c.bf16 %v3798_v11, %v3797_v8 }
 0x290   : > { %7709 = vmatprep.mubr.f32.mxu0 %v2766_v18  ;;  %v10632_v18 = vld [vmem:[%s11224_s3] ss:$0 sm:$0xff] }
 0x293   : > { %7710 = vmatmul.mubr.f32.gmra.mrb[2].mxu0 %v2767_v34 }
 0x294   : > { %7712 = vmatprep.mubr.f32.mxu0 %v2768_v45 }
 0x297   : > { %7713 = vmatmul.mubr.f32.gmra.mrb[4].mxu0 %v2769_v51 }
 0x298   : > { %7715 = vmatprep.mubr.f32.mxu0 %v2770_v52 }
 0x29b   : > { %7716 = vmatmul.mubr.f32.gmra.mrb[6].mxu0 %v2771_v43 }
 0x29c   : > { %7718 = vmatprep.mubr.f32.mxu0 %v2772_v47 }
 0x29f   : > { %7719 = vmatmul.mubr.f32.gmra.mrb[8].mxu0 %v2773_v13 }
 0x2a0   : > { %7721 = vmatprep.mubr.f32.mxu0 %v2774_v42 }
 0x2a3   : > { %7722 = vmatmul.mubr.f32.gmra.mrb[10].mxu0 %v2775_v57 }
 0x2a4   : > { %7724 = vmatprep.mubr.f32.mxu0 %v2776_v53 }
 0x2a7   : > { %7725 = vmatmul.mubr.f32.gmra.mrb[12].mxu0 %v2777_v46 }
 0x2a8   : > { %7727 = vmatprep.mubr.f32.mxu0 %v2778_v33 }
 0x2ab   : > { %7728 = vmatmul.mubr.f32.gmra.mrb[14].mxu0 %v2779_v14 }
 0x2ac   : > { %7730 = vmatprep.mubr.f32.mxu0 %v2780_v15 }
 0x2af   : > { %7731 = vmatmul.mubr.f32.gmra.mrb[16].mxu0 %v2781_v58 }
 0x2b0   : > { %7733 = vmatprep.mubr.f32.mxu0 %v2782_v16 }
 0x2b3   : > { %7734 = vmatmul.mubr.f32.gmra.mrb[18].mxu0 %v2783_v17 }
 0x2b4   : > { %7736 = vmatprep.mubr.f32.mxu0 %v2784_v48 }
 0x2b7   : > { %7737 = vmatmul.mubr.f32.gmra.mrb[20].mxu0 %v2785_v19 }
 0x2b8   : > { %7739 = vmatprep.mubr.f32.mxu0 %v2786_v20 }
 0x2bb   : > { %7740 = vmatmul.mubr.f32.gmra.mrb[22].mxu0 %v2787_v29 }
 0x2bc   : > { %7742 = vmatprep.mubr.f32.mxu0 %v2788_v21 }
 0x2bf   : > { %7743 = vmatmul.mubr.f32.gmra.mrb[24].mxu0 %v2789_v39 }
 0x2c0   : > { %7745 = vmatprep.mubr.f32.mxu0 %v2790_v25 }
 0x2c3   : > { %7746 = vmatmul.mubr.f32.gmra.mrb[26].mxu0 %v2791_v27 }
 0x2c4   : > { %7748 = vmatprep.mubr.f32.mxu0 %v10584_v24  ;;  %v3249_v24 = vld [vmem:[#allocation9] sm:$0xff] }
 0x2c7   : > { %7749 = vmatmul.mubr.f32.gmra.mrb[28].mxu0 %v10588_v26  ;;  %v8794_v26 = vpack.c.bf16 %v3250_v1, %v3249_v24 }
 0x2c8   : > { %7751 = vmatprep.mubr.f32.mxu0 %v2794_v28 }
 0x2c9   : > { %8795 = vmatprep.subr.bf16.mxu1 %v8794_v26 }
 0x2ca   : > { %8797 = vmatpush3.bf16.msra.mxu1 %v8794_v26 }
 0x2cb   : > { %7752 = vmatmul.mubr.f32.gmra.mrb[30].mxu0 %v2795_v30  ;;  %8799 = vmatprep.subr.bf16.mxu1 %v8798_v5 }
 0x2ce   : > { %8801 = vmatpush3.bf16.msra.mxu1 %v8798_v5 }
 0x2cf   : > { %8803 = vmatprep.subr.bf16.mxu1 %v8802_v10 }
 0x2d2   : > { %8805 = vmatpush3.bf16.msra.mxu1 %v8802_v10 }
 0x2d3   : > { %8807 = vmatprep.subr.bf16.mxu1 %v8806_v23 }
 0x2d6   : > { %8809 = vmatpush3.bf16.msra.mxu1 %v8806_v23 }
 0x2d7   : > { %8811 = vmatprep.subr.bf16.mxu1 %v8810_v44 }
 0x2da   : > { %8813 = vmatpush3.bf16.msra.mxu1 %v8810_v44 }
 0x2db   : > { %8815 = vmatprep.subr.bf16.mxu1 %v8814_v60 }
 0x2de   : > { %8817 = vmatpush3.bf16.msra.mxu1 %v8814_v60 }
 0x2df   : > { %8819 = vmatprep.subr.bf16.mxu1 %v8818_v2 }
 0x2e2   : > { %8821 = vmatpush3.bf16.msra.mxu1 %v8818_v2 }
 0x2e3   : > { %8823 = vmatprep.subr.bf16.mxu1 %v8822_v7 }
 0x2e6   : > { %8825 = vmatpush3.bf16.msra.mxu1 %v8822_v7 }
 0x2e7   : > { %8827 = vmatprep.subr.bf16.mxu1 %v10626_v12 }
 0x362   : > { %v7708_v34 = vpop.f32.mrb[0].mxu0 }
 0x363   : > { %v3078_v45 = vadd.f32 %v7708_v34, %v10632_v18  ;;  %v2879_v51 = vpop.f32.mrb[1].mxu0 }
 0x364   : > { %v3077_v52 = vadd.f32 %v10632_v18, %v2879_v51 }
 0x365   : > { %v3110_v43 = vmax.f32 %v3078_v45, 0.0 }
 0x366   : > { %v3109_v47 = vmax.f32 %v3077_v52, 0.0  ;;  %v7711_v13 = vpop.f32.mrb[2].mxu0 }
 0x367   : > { %3186 = vst [vmem:[#allocation3 + $0x21] sm:$0xff] %v3110_v43  ;;  %v3080_v42 = vadd.f32 %v7711_v13, %v10632_v18  ;;  %v2889_v57 = vpop.f32.mrb[3].mxu0 }
 0x368   : > { %3185 = vst [vmem:[#allocation3 + $0x19] sm:$0xff] %v3109_v47  ;;  %v3079_v53 = vadd.f32 %v10632_v18, %v2889_v57  ;;  %7789 = vmatprep.mubr.f32.mxu1 %v3109_v47 }
 0x369   : > { %v3112_v46 = vmax.f32 %v3080_v42, 0.0  ;;  %7790 = vmatmul.mubr.f32.gmra.mrb[2].mxu1 %v3110_v43 }
 0x36a   : > { %v3111_v33 = vmax.f32 %v3079_v53, 0.0  ;;  %v7714_v14 = vpop.f32.mrb[4].mxu0 }
 0x36b   : > { %3188 = vst [vmem:[#allocation3 + $0x39] sm:$0xff] %v3112_v46  ;;  %v3082_v15 = vadd.f32 %v7714_v14, %v10632_v18  ;;  %v2899_v58 = vpop.f32.mrb[5].mxu0 }
 0x36c   : > { %3187 = vst [vmem:[#allocation3 + $0x31] sm:$0xff] %v3111_v33  ;;  %v3081_v16 = vadd.f32 %v10632_v18, %v2899_v58  ;;  %7792 = vmatprep.mubr.f32.mxu1 %v3111_v33 }
 0x36d   : > { %v3114_v17 = vmax.f32 %v3082_v15, 0.0  ;;  %7793 = vmatmul.mubr.f32.gmra.mrb[4].mxu1 %v3112_v46 }
 0x36e   : > { %v3113_v48 = vmax.f32 %v3081_v16, 0.0  ;;  %v7717_v19 = vpop.f32.mrb[6].mxu0 }
 0x36f   : > { %3190 = vst [vmem:[#allocation3 + $0x51] sm:$0xff] %v3114_v17  ;;  %v3084_v20 = vadd.f32 %v7717_v19, %v10632_v18  ;;  %v2909_v29 = vpop.f32.mrb[7].mxu0 }
 0x370   : > { %3189 = vst [vmem:[#allocation3 + $0x49] sm:$0xff] %v3113_v48  ;;  %v3083_v21 = vadd.f32 %v10632_v18, %v2909_v29  ;;  %7795 = vmatprep.mubr.f32.mxu1 %v3113_v48 }
 0x371   : > { %v3116_v39 = vmax.f32 %v3084_v20, 0.0  ;;  %7796 = vmatmul.mubr.f32.gmra.mrb[6].mxu1 %v3114_v17 }
 0x372   : > { %v3115_v25 = vmax.f32 %v3083_v21, 0.0  ;;  %v7720_v27 = vpop.f32.mrb[8].mxu0 }
 0x373   : > { %3192 = vst [vmem:[#allocation3 + $0x69] sm:$0xff] %v3116_v39  ;;  %v3086_v28 = vadd.f32 %v7720_v27, %v10632_v18  ;;  %v2919_v30 = vpop.f32.mrb[9].mxu0 }
 0x374   : > { %3191 = vst [vmem:[#allocation3 + $0x61] sm:$0xff] %v3115_v25  ;;  %v3085_v31 = vadd.f32 %v10632_v18, %v2919_v30  ;;  %7798 = vmatprep.mubr.f32.mxu1 %v3115_v25 }
 0x375   : > { %v3118_v32 = vmax.f32 %v3086_v28, 0.0  ;;  %7799 = vmatmul.mubr.f32.gmra.mrb[8].mxu1 %v3116_v39 }
 0x376   : > { %v3117_v35 = vmax.f32 %v3085_v31, 0.0  ;;  %v7723_v41 = vpop.f32.mrb[10].mxu0 }
 0x377   : > { %3194 = vst [vmem:[#allocation3 + $0x81] sm:$0xff] %v3118_v32  ;;  %v3088_v36 = vadd.f32 %v7723_v41, %v10632_v18  ;;  %v2929_v59 = vpop.f32.mrb[11].mxu0 }
 0x378   : > { %3193 = vst [vmem:[#allocation3 + $0x79] sm:$0xff] %v3117_v35  ;;  %v3087_v37 = vadd.f32 %v10632_v18, %v2929_v59  ;;  %7801 = vmatprep.mubr.f32.mxu1 %v3117_v35  ;;  %v3217_v59 = vld [vmem:[#allocation3] sm:$0xff] }
 0x379   : > { %v3120_v63 = vmax.f32 %v3088_v36, 0.0  ;;  %7802 = vmatmul.mubr.f32.gmra.mrb[10].mxu1 %v3118_v32 }
 0x37a   : > { %v10646_v24 = vmax.f32 %v3087_v37, 0.0  ;;  %v7726_v1 = vpop.f32.mrb[12].mxu0 }
 0x37b   : > { %3196 = vst [vmem:[#allocation3 + $0x99] sm:$0xff] %v3120_v63  ;;  %v3090_v26 = vadd.f32 %v7726_v1, %v10632_v18  ;;  %v2939_v38 = vpop.f32.mrb[13].mxu0  ;;  %v3800_v1 = vld [vmem:[#allocation9 + $0x118] sm:$0xff] }
 0x37c   : > { %3195 = vst [vmem:[#allocation3 + $0x91] sm:$0xff] %v10646_v24  ;;  %v3089_v4 = vadd.f32 %v10632_v18, %v2939_v38  ;;  %7804 = vmatprep.mubr.f32.mxu1 %v10646_v24 }
 0x37d   : > { %v10652_v5 = vmax.f32 %v3090_v26, 0.0  ;;  %7805 = vmatmul.mubr.f32.gmra.mrb[12].mxu1 %v3120_v63  ;;  %v3799_v63 = vld [vmem:[#allocation9 + $0x110] sm:$0xff] }
 0x37e   : > { %v10654_v50 = vmax.f32 %v3089_v4, 0.0  ;;  %v7729_v9 = vpop.f32.mrb[14].mxu0  ;;  %v8830_v4 = vpack.c.bf16 %v3800_v1, %v3799_v63 }
 0x37f   : > { %3198 = vst [vmem:[#allocation3 + $0xb1] sm:$0xff] %v10652_v5  ;;  %v3092_v10 = vadd.f32 %v7729_v9, %v10632_v18  ;;  %v2949_v49 = vpop.f32.mrb[15].mxu0  ;;  %v3802_v9 = vld [vmem:[#allocation9 + $0x128] sm:$0xff] }
 0x380   : > { %3197 = vst [vmem:[#allocation3 + $0xa9] sm:$0xff] %v10654_v50  ;;  %v3091_v22 = vadd.f32 %v10632_v18, %v2949_v49  ;;  %7807 = vmatprep.mubr.f32.mxu1 %v10654_v50 }
 0x381   : > { %v10661_v23 = vmax.f32 %v3092_v10, 0.0  ;;  %7808 = vmatmul.mubr.f32.gmra.mrb[14].mxu1 %v10652_v5  ;;  %v10753_v10 = vld [vmem:[#allocation3 + $0x18] sm:$0xff] }
 0x382   : > { %v10664_v54 = vmax.f32 %v3091_v22, 0.0  ;;  %v7732_v40 = vpop.f32.mrb[16].mxu0  ;;  %v10757_v22 = vld [vmem:[#allocation3 + $0x20] sm:$0xff] }
 0x383   : > { %3200 = vst [vmem:[#allocation3 + $0xc9] sm:$0xff] %v10661_v23  ;;  %v3094_v44 = vadd.f32 %v7732_v40, %v10632_v18  ;;  %v2959_v55 = vpop.f32.mrb[17].mxu0  ;;  %v3803_v40 = vld [vmem:[#allocation9 + $0x130] sm:$0xff] }
 0x384   : > { %3199 = vst [vmem:[#allocation3 + $0xc1] sm:$0xff] %v10664_v54  ;;  %v3093_v56 = vadd.f32 %v10632_v18, %v2959_v55  ;;  %7810 = vmatprep.mubr.f32.mxu1 %v10664_v54  ;;  %v10760_v55 = vld [vmem:[#allocation3 + $0x30] sm:$0xff] }
 0x385   : > { %v10671_v60 = vmax.f32 %v3094_v44, 0.0  ;;  %7811 = vmatmul.mubr.f32.gmra.mrb[16].mxu1 %v10661_v23  ;;  %v3804_v44 = vld [vmem:[#allocation9 + $0x138] sm:$0xff] }
 0x386   : > { %v10674_v62 = vmax.f32 %v3093_v56, 0.0  ;;  %v7735_v0 = vpop.f32.mrb[18].mxu0  ;;  %v10763_v56 = vld [vmem:[#allocation3 + $0x38] sm:$0xff] }
 0x387   : > { %3202 = vst [vmem:[#allocation3 + $0xe1] sm:$0xff] %v10671_v60  ;;  %v3096_v2 = vadd.f32 %v7735_v0, %v10632_v18  ;;  %v2969_v3 = vpop.f32.mrb[19].mxu0  ;;  %v3805_v0 = vld [vmem:[#allocation9 + $0x140] sm:$0xff] }
 0x388   : > { %3201 = vst [vmem:[#allocation3 + $0xd9] sm:$0xff] %v10674_v62  ;;  %v3095_v6 = vadd.f32 %v10632_v18, %v2969_v3  ;;  %7813 = vmatprep.mubr.f32.mxu1 %v10674_v62 }
 0x389   : > { %v10681_v7 = vmax.f32 %v3096_v2, 0.0  ;;  %7814 = vmatmul.mubr.f32.gmra.mrb[18].mxu1 %v10671_v60  ;;  %v3806_v2 = vld [vmem:[#allocation9 + $0x148] sm:$0xff] }
 0x38a   : > { %v10684_v8 = vmax.f32 %v3095_v6, 0.0  ;;  %v7738_v11 = vpop.f32.mrb[20].mxu0  ;;  %v8842_v3 = vpack.c.bf16 %v3806_v2, %v3805_v0  ;;  %v10769_v6 = vld [vmem:[#allocation3 + $0x50] sm:$0xff] }
 0x38b   : > { %3204 = vst [vmem:[#allocation3 + $0xf9] sm:$0xff] %v10681_v7  ;;  %v3098_v34 = vadd.f32 %v7738_v11, %v10632_v18  ;;  %v2979_v45 = vpop.f32.mrb[21].mxu0  ;;  %v3807_v11 = vld [vmem:[#allocation9 + $0x150] sm:$0xff] }
 0x38c   : > { %3203 = vst [vmem:[#allocation3 + $0xf1] sm:$0xff] %v10684_v8  ;;  %v3097_v51 = vadd.f32 %v10632_v18, %v2979_v45  ;;  %7816 = vmatprep.mubr.f32.mxu1 %v10684_v8  ;;  %v10772_v45 = vld [vmem:[#allocation3 + $0x60] sm:$0xff] }
 0x38d   : > { %v10691_v52 = vmax.f32 %v3098_v34, 0.0  ;;  %7817 = vmatmul.mubr.f32.gmra.mrb[20].mxu1 %v10681_v7  ;;  %v3808_v34 = vld [vmem:[#allocation9 + $0x158] sm:$0xff] }
 0x38e   : > { %v10694_v43 = vmax.f32 %v3097_v51, 0.0  ;;  %v7741_v47 = vpop.f32.mrb[22].mxu0  ;;  %v8846_v51 = vpack.c.bf16 %v3808_v34, %v3807_v11  ;;  %v3764_v11 = vld [vmem:[#allocation3 + $0x2] sm:$0xff] }
 0x38f   : > { %3206 = vst [vmem:[#allocation3 + $0x111] sm:$0xff] %v10691_v52  ;;  %v3100_v13 = vadd.f32 %v7741_v47, %v10632_v18  ;;  %v2989_v42 = vpop.f32.mrb[23].mxu0  ;;  %v10775_v47 = vld [vmem:[#allocation3 + $0x68] sm:$0xff]  ;;  %v10805_v63 = vld [vmem:[#allocation3 + $0xe0] sm:$0xff] }
 0x390   : > { %3205 = vst [vmem:[#allocation3 + $0x109] sm:$0xff] %v10694_v43  ;;  %v3099_v57 = vadd.f32 %v10632_v18, %v2989_v42  ;;  %7819 = vmatprep.mubr.f32.mxu1 %v10694_v43  ;;  %v3810_v42 = vld [vmem:[#allocation9 + $0x168] sm:$0xff] }
 0x391   : > { %v10701_v53 = vmax.f32 %v3100_v13, 0.0  ;;  %7820 = vmatmul.mubr.f32.gmra.mrb[22].mxu1 %v10691_v52  ;;  %v3809_v13 = vld [vmem:[#allocation9 + $0x160] sm:$0xff] }
 0x392   : > { %v10704_v46 = vmax.f32 %v3099_v57, 0.0  ;;  %v7744_v33 = vpop.f32.mrb[24].mxu0  ;;  %v10778_v57 = vld [vmem:[#allocation3 + $0x78] sm:$0xff] }
 0x393   : > { %3208 = vst [vmem:[#allocation3 + $0x129] sm:$0xff] %v10701_v53  ;;  %v3102_v14 = vadd.f32 %v7744_v33, %v10632_v18  ;;  %v2999_v15 = vpop.f32.mrb[25].mxu0  ;;  %v8850_v33 = vpack.c.bf16 %v3810_v42, %v3809_v13  ;;  %v10808_v1 = vld [vmem:[#allocation3 + $0xf0] sm:$0xff]  ;;  %v4106_v13 = vld [vmem:[#allocation9 + $0x198] sm:$0xff] }
 0x394   : > { %3207 = vst [vmem:[#allocation3 + $0x121] sm:$0xff] %v10704_v46  ;;  %v3101_v58 = vadd.f32 %v10632_v18, %v2999_v15  ;;  %7822 = vmatprep.mubr.f32.mxu1 %v10704_v46  ;;  %v3811_v15 = vld [vmem:[#allocation9 + $0x170] sm:$0xff]  ;;  %v3765_v42 = vld [vmem:[#allocation3 + $0xa] sm:$0xff] }
 0x395   : > { %v10711_v16 = vmax.f32 %v3102_v14, 0.0  ;;  %7823 = vmatmul.mubr.f32.gmra.mrb[24].mxu1 %v10701_v53  ;;  %v10781_v14 = vld [vmem:[#allocation3 + $0x80] sm:$0xff] }
 0x396   : > { %v10714_v17 = vmax.f32 %v3101_v58, 0.0  ;;  %v7747_v48 = vpop.f32.mrb[26].mxu0  ;;  %v3812_v58 = vld [vmem:[#allocation9 + $0x178] sm:$0xff] }
 0x397   : > { %3210 = vst [vmem:[#allocation3 + $0x141] sm:$0xff] %v10711_v16  ;;  %v3104_v19 = vadd.f32 %v7747_v48, %v10632_v18  ;;  %v3009_v20 = vpop.f32.mrb[27].mxu0  ;;  %v10784_v48 = vld [vmem:[#allocation3 + $0x90] sm:$0xff] }
 0x398   : > { %3209 = vst [vmem:[#allocation3 + $0x139] sm:$0xff] %v10714_v17  ;;  %v3103_v29 = vadd.f32 %v10632_v18, %v3009_v20  ;;  %7825 = vmatprep.mubr.f32.mxu1 %v10714_v17  ;;  %v10787_v20 = vld [vmem:[#allocation3 + $0x98] sm:$0xff] }
 0x399   : > { %v10721_v21 = vmax.f32 %v3104_v19, 0.0  ;;  %7826 = vmatmul.mubr.f32.gmra.mrb[26].mxu1 %v10711_v16  ;;  %v8854_v19 = vpack.c.bf16 %v3812_v58, %v3811_v15  ;;  %v4107_v15 = vld [vmem:[#allocation9 + $0x1a0] sm:$0xff]  ;;  %v4108_v58 = vld [vmem:[#allocation9 + $0x1a8] sm:$0xff] }
 0x39a   : > { %v10724_v39 = vmax.f32 %v3103_v29, 0.0  ;;  %v7750_v25 = vpop.f32.mrb[28].mxu0  ;;  %v4103_v29 = vld [vmem:[#allocation9 + $0x180] sm:$0xff] }
 0x39b   : > { %3212 = vst [vmem:[#allocation3 + $0x159] sm:$0xff] %v10721_v21  ;;  %v3106_v27 = vadd.f32 %v7750_v25, %v10632_v18  ;;  %v3019_v28 = vpop.f32.mrb[29].mxu0  ;;  %v4104_v25 = vld [vmem:[#allocation9 + $0x188] sm:$0xff] }
 0x39c   : > { %3211 = vst [vmem:[#allocation3 + $0x151] sm:$0xff] %v10724_v39  ;;  %v3105_v30 = vadd.f32 %v10632_v18, %v3019_v28  ;;  %7828 = vmatprep.mubr.f32.mxu1 %v10724_v39  ;;  %v8858_v28 = vpack.c.bf16 %v4104_v25, %v4103_v29  ;;  %v8866_v29 = vpack.c.bf16 %v4108_v58, %v4107_v15  ;;  %v10847_v25 = vld [vmem:[#allocation3 + $0x22] sm:$0xff]  ;;  %v10859_v58 = vld [vmem:[#allocation3 + $0x52] sm:$0xff] }
 0x39d   : > { %v10731_v31 = vmax.f32 %v3106_v27, 0.0  ;;  %7829 = vmatmul.mubr.f32.gmra.mrb[28].mxu1 %v10721_v21  ;;  %v10790_v27 = vld [vmem:[#allocation3 + $0xa8] sm:$0xff]  ;;  %11395 = vst [vmem:[#allocation17_spill] sm:$0xff] %v10847_v25  ;;  %11399 = vst [vmem:[#allocation21_spill] sm:$0xff] %v10859_v58 }
 0x39e   : > { %v10734_v32 = vmax.f32 %v3105_v30, 0.0  ;;  %v7753_v35 = vpop.f32.mrb[30].mxu0  ;;  %v10793_v30 = vld [vmem:[#allocation3 + $0xb0] sm:$0xff] }
 0x39f   : > { %3214 = vst [vmem:[#allocation3 + $0x171] sm:$0xff] %v10731_v31  ;;  %v10738_v41 = vadd.f32 %v7753_v35, %v10632_v18  ;;  %v3029_v36 = vpop.f32.mrb[31].mxu0  ;;  %v10796_v35 = vld [vmem:[#allocation3 + $0xc0] sm:$0xff] }
 0x3a0   : > { %3213 = vst [vmem:[#allocation3 + $0x169] sm:$0xff] %v10734_v32  ;;  %v10742_v37 = vadd.f32 %v10632_v18, %v3029_v36  ;;  %7831 = vmatprep.mubr.f32.mxu1 %v10734_v32  ;;  %v3801_v18 = vld [vmem:[#allocation9 + $0x120] sm:$0xff]  ;;  %v10799_v36 = vld [vmem:[#allocation3 + $0xc8] sm:$0xff] }
 0x3a1   : > { %11392 = vst [vmem:[#allocation14_spill] sm:$0xff] %v10738_v41  ;;  %v11268_v26 = vmax.f32 %v10738_v41, 0.0  ;;  %7832 = vmatmul.mubr.f32.gmra.mrb[30].mxu1 %v10731_v31  ;;  %v8834_v49 = vpack.c.bf16 %v3802_v9, %v3801_v18  ;;  %v10814_v18 = vld [vmem:[#allocation3 + $0x108] sm:$0xff]  ;;  %v10817_v9 = vld [vmem:[#allocation3 + $0x110] sm:$0xff] }
 0x3a2   : > { %v11269_v38 = vmax.f32 %v10742_v37, 0.0  ;;  %7866 = vmatprep.mubr.f32.mxu1 %v3217_v59  ;;  %v10802_v59 = vld [vmem:[#allocation3 + $0xd8] sm:$0xff] }
 0x3a3   : > { %3216 = vst [vmem:[#allocation3 + $0x189] sm:$0xff] %v11268_v26  ;;  %v10832_v0 = vld [vmem:[#allocation3 + $0x150] sm:$0xff]  ;;  %v10835_v2 = vld [vmem:[#allocation3 + $0x158] sm:$0xff]  ;;  %v4109_v26 = vld [vmem:[#allocation9 + $0x1b0] sm:$0xff] }
 0x3a4   : > { %3215 = vst [vmem:[#allocation3 + $0x181] sm:$0xff] %v11269_v38  ;;  %v4110_v38 = vld [vmem:[#allocation9 + $0x1b8] sm:$0xff]  ;;  %v10850_v41 = vld [vmem:[#allocation3 + $0x32] sm:$0xff] }
 0x3a5   : > { %7867 = vmatmul.mubr.f32.vlgmr.msra.gmra.mrb[0].mxu1 %v10621_v61  ;;  %v8838_v61 = vpack.c.bf16 %v3804_v44, %v3803_v40  ;;  %v10823_v40 = vld [vmem:[#allocation3 + $0x128] sm:$0xff]  ;;  %v10826_v44 = vld [vmem:[#allocation3 + $0x138] sm:$0xff]  ;;  %11396 = vst [vmem:[#allocation18_spill] sm:$0xff] %v10850_v41 }
 0x3a6   : > { %7869 = vmatprep.mubr.f32.mxu1 %v10753_v10  ;;  %8829 = vmatpush3.bf16.msra.mxu1 %v10626_v12  ;;  %v10766_v12 = vld [vmem:[#allocation3 + $0x48] sm:$0xff] }
 0x3a7   : > { %8831 = vmatprep.subr.bf16.mxu1 %v8830_v4  ;;  %v10841_v34 = vld [vmem:[#allocation3 + $0x170] sm:$0xff] }
 0x3a8   : > { %11394 = vst [vmem:[#allocation16_spill] sm:$0xff] %v10841_v34 }
 0x3a9   : > { %7870 = vmatmul.mubr.f32.gmra.mrb[2].mxu1 %v10757_v22 }
 0x3aa   : > { %7872 = vmatprep.mubr.f32.mxu1 %v10760_v55  ;;  %8833 = vmatpush3.bf16.msra.mxu1 %v8830_v4  ;;  %v10811_v4 = vld [vmem:[#allocation3 + $0xf8] sm:$0xff] }
 0x3ab   : > { %8835 = vmatprep.subr.bf16.mxu1 %v8834_v49 }
 0x3ad   : > { %7873 = vmatmul.mubr.f32.gmra.mrb[4].mxu1 %v10763_v56 }
 0x3ae   : > { %7875 = vmatprep.mubr.f32.mxu1 %v10766_v12  ;;  %8837 = vmatpush3.bf16.msra.mxu1 %v8834_v49  ;;  %v10820_v49 = vld [vmem:[#allocation3 + $0x120] sm:$0xff] }
 0x3af   : > { %8839 = vmatprep.subr.bf16.mxu1 %v8838_v61 }
 0x3b1   : > { %7876 = vmatmul.mubr.f32.gmra.mrb[6].mxu1 %v10769_v6 }
 0x3b2   : > { %7878 = vmatprep.mubr.f32.mxu1 %v10772_v45  ;;  %8841 = vmatpush3.bf16.msra.mxu1 %v8838_v61  ;;  %v10829_v61 = vld [vmem:[#allocation3 + $0x140] sm:$0xff] }
 0x3b3   : > { %8843 = vmatprep.subr.bf16.mxu1 %v8842_v3 }
 0x3b5   : > { %7879 = vmatmul.mubr.f32.gmra.mrb[8].mxu1 %v10775_v47 }
 0x3b6   : > { %7881 = vmatprep.mubr.f32.mxu1 %v10778_v57  ;;  %8845 = vmatpush3.bf16.msra.mxu1 %v8842_v3  ;;  %v10838_v3 = vld [vmem:[#allocation3 + $0x168] sm:$0xff] }
 0x3b7   : > { %8847 = vmatprep.subr.bf16.mxu1 %v8846_v51  ;;  %11393 = vst [vmem:[#allocation15_spill] sm:$0xff] %v10838_v3 }
 0x3b9   : > { %7882 = vmatmul.mubr.f32.gmra.mrb[10].mxu1 %v10781_v14 }
 0x3ba   : > { %7884 = vmatprep.mubr.f32.mxu1 %v10784_v48  ;;  %8849 = vmatpush3.bf16.msra.mxu1 %v8846_v51  ;;  %v4105_v51 = vld [vmem:[#allocation9 + $0x190] sm:$0xff] }
 0x3bb   : > { %8851 = vmatprep.subr.bf16.mxu1 %v8850_v33 }
 0x3bd   : > { %7885 = vmatmul.mubr.f32.gmra.mrb[12].mxu1 %v10787_v20 }
 0x3be   : > { %7887 = vmatprep.mubr.f32.mxu1 %v10790_v27  ;;  %8853 = vmatpush3.bf16.msra.mxu1 %v8850_v33  ;;  %v8862_v33 = vpack.c.bf16 %v4106_v13, %v4105_v51  ;;  %v10853_v51 = vld [vmem:[#allocation3 + $0x3a] sm:$0xff]  ;;  %v4111_v13 = vld [vmem:[#allocation9 + $0x1c0] sm:$0xff] }
 0x3bf   : > { %8855 = vmatprep.subr.bf16.mxu1 %v8854_v19  ;;  %11397 = vst [vmem:[#allocation19_spill] sm:$0xff] %v10853_v51 }
 0x3c1   : > { %7888 = vmatmul.mubr.f32.gmra.mrb[14].mxu1 %v10793_v30 }
 0x3c2   : > { %7890 = vmatprep.mubr.f32.mxu1 %v10796_v35  ;;  %8857 = vmatpush3.bf16.msra.mxu1 %v8854_v19  ;;  %v10844_v19 = vld [vmem:[#allocation3 + $0x1a] sm:$0xff] }
 0x3c3   : > { %8859 = vmatprep.subr.bf16.mxu1 %v8858_v28 }
 0x3c5   : > { %7891 = vmatmul.mubr.f32.gmra.mrb[16].mxu1 %v10799_v36 }
 0x3c6   : > { %7893 = vmatprep.mubr.f32.mxu1 %v10802_v59 }
 0x3c9   : > { %7894 = vmatmul.mubr.f32.gmra.mrb[18].mxu1 %v10805_v63 }
 0x3ca   : > { %7896 = vmatprep.mubr.f32.mxu1 %v10808_v1 }
 0x3cd   : > { %7897 = vmatmul.mubr.f32.gmra.mrb[20].mxu1 %v10811_v4 }
 0x3ce   : > { %7899 = vmatprep.mubr.f32.mxu1 %v10814_v18 }
 0x3d1   : > { %7900 = vmatmul.mubr.f32.gmra.mrb[22].mxu1 %v10817_v9 }
 0x3d2   : > { %7902 = vmatprep.mubr.f32.mxu1 %v10820_v49 }
 0x3d5   : > { %7903 = vmatmul.mubr.f32.gmra.mrb[24].mxu1 %v10823_v40 }
 0x3d6   : > { %7905 = vmatprep.mubr.f32.mxu1 %v10826_v44 }
 0x3d9   : > { %7906 = vmatmul.mubr.f32.gmra.mrb[26].mxu1 %v10829_v61 }
 0x3da   : > { %7908 = vmatprep.mubr.f32.mxu1 %v10832_v0 }
 0x3dd   : > { %7909 = vmatmul.mubr.f32.gmra.mrb[28].mxu1 %v10835_v2 }
 0x3de   : > { %7911 = vmatprep.mubr.f32.mxu1 %v10838_v3 }
 0x3e1   : > { %7912 = vmatmul.mubr.f32.gmra.mrb[30].mxu1 %v10841_v34 }
 0x3e2   : > { %7946 = vmatprep.mubr.f32.mxu1 %v3764_v11  ;;  %v8870_v11 = vpack.c.bf16 %v4110_v38, %v4109_v26  ;;  %v10862_v26 = vld [vmem:[#allocation3 + $0x62] sm:$0xff] }
 0x3e3   : > { %11400 = vst [vmem:[#allocation22_spill] sm:$0xff] %v10862_v26 }
 0x3e5   : > { %7947 = vmatmul.mubr.f32.vlgmr.msra.gmra.mrb[0].mxu1 %v3765_v42  ;;  %v4112_v42 = vld [vmem:[#allocation9 + $0x1c8] sm:$0xff] }
 0x3e6   : > { %7949 = vmatprep.mubr.f32.mxu1 %v10844_v19  ;;  %8861 = vmatpush3.bf16.msra.mxu1 %v8858_v28  ;;  %v10856_v28 = vld [vmem:[#allocation3 + $0x4a] sm:$0xff]  ;;  %v8874_v15 = vpack.c.bf16 %v4112_v42, %v4111_v13  ;;  %v10871_v42 = vld [vmem:[#allocation3 + $0x82] sm:$0xff] }
 0x3e7   : > { %8863 = vmatprep.subr.bf16.mxu1 %v8862_v33  ;;  %11398 = vst [vmem:[#allocation20_spill] sm:$0xff] %v10856_v28 }
 0x3e9   : > { %7950 = vmatmul.mubr.f32.gmra.mrb[2].mxu1 %v10847_v25  ;;  %v4113_v25 = vld [vmem:[#allocation9 + $0x1d0] sm:$0xff] }
 0x3ea   : > { %7952 = vmatprep.mubr.f32.mxu1 %v10850_v41  ;;  %8865 = vmatpush3.bf16.msra.mxu1 %v8862_v33  ;;  %v4114_v41 = vld [vmem:[#allocation9 + $0x1d8] sm:$0xff] }
 0x3eb   : > { %8867 = vmatprep.subr.bf16.mxu1 %v8866_v29  ;;  %v8878_v38 = vpack.c.bf16 %v4114_v41, %v4113_v25  ;;  %v10865_v33 = vld [vmem:[#allocation3 + $0x6a] sm:$0xff]  ;;  %v10874_v41 = vld [vmem:[#allocation3 + $0x92] sm:$0xff] }
 0x3ec   : > { %11401 = vst [vmem:[#allocation23_spill] sm:$0xff] %v10865_v33 }
 0x3ed   : > { %7953 = vmatmul.mubr.f32.gmra.mrb[4].mxu1 %v10853_v51  ;;  %v4115_v51 = vld [vmem:[#allocation9 + $0x1e0] sm:$0xff] }
 0x3ee   : > { %7955 = vmatprep.mubr.f32.mxu1 %v10856_v28  ;;  %8869 = vmatpush3.bf16.msra.mxu1 %v8866_v29  ;;  %v4116_v28 = vld [vmem:[#allocation9 + $0x1e8] sm:$0xff] }
 0x3ef   : > { %8871 = vmatprep.subr.bf16.mxu1 %v8870_v11  ;;  %v10868_v29 = vld [vmem:[#allocation3 + $0x7a] sm:$0xff]  ;;  %v8882_v13 = vpack.c.bf16 %v4116_v28, %v4115_v51  ;;  %v10880_v51 = vld [vmem:[#allocation3 + $0xaa] sm:$0xff] }
 0x3f0   : > { %11402 = vst [vmem:[#allocation24_spill] sm:$0xff] %v10868_v29  ;;  %11403 = vst [vmem:[#allocation25_spill] sm:$0xff] %v10880_v51 }
 0x3f1   : > { %7956 = vmatmul.mubr.f32.gmra.mrb[6].mxu1 %v10859_v58  ;;  %v4117_v58 = vld [vmem:[#allocation9 + $0x1f0] sm:$0xff] }
 0x3f2   : > { %7958 = vmatprep.mubr.f32.mxu1 %v10862_v26  ;;  %8873 = vmatpush3.bf16.msra.mxu1 %v8870_v11  ;;  %v4118_v26 = vld [vmem:[#allocation9 + $0x1f8] sm:$0xff]  ;;  %v10877_v11 = vld [vmem:[#allocation3 + $0x9a] sm:$0xff] }
 0x3f3   : > { %8875 = vmatprep.subr.bf16.mxu1 %v8874_v15  ;;  %v8886_v25 = vpack.c.bf16 %v4118_v26, %v4117_v58  ;;  %v10889_v58 = vld [vmem:[#allocation3 + $0xca] sm:$0xff]  ;;  %v10892_v26 = vld [vmem:[#allocation3 + $0xda] sm:$0xff] }
 0x3f4   : > { %11406 = vst [vmem:[#allocation28_spill] sm:$0xff] %v10889_v58  ;;  %11407 = vst [vmem:[#allocation29_spill] sm:$0xff] %v10892_v26 }
 0x3f5   : > { %7959 = vmatmul.mubr.f32.gmra.mrb[8].mxu1 %v10865_v33  ;;  %v4409_v33 = vld [vmem:[#allocation9 + $0x200] sm:$0xff] }
 0x3f6   : > { %7961 = vmatprep.mubr.f32.mxu1 %v10868_v29  ;;  %8877 = vmatpush3.bf16.msra.mxu1 %v8874_v15  ;;  %v4410_v29 = vld [vmem:[#allocation9 + $0x208] sm:$0xff] }
 0x3f7   : > { %8879 = vmatprep.subr.bf16.mxu1 %v8878_v38  ;;  %v8890_v28 = vpack.c.bf16 %v4410_v29, %v4409_v33  ;;  %v10883_v15 = vld [vmem:[#allocation3 + $0xb2] sm:$0xff]  ;;  %v10901_v29 = vld [vmem:[#allocation3 + $0xfa] sm:$0xff] }
 0x3f8   : > { %11404 = vst [vmem:[#allocation26_spill] sm:$0xff] %v10883_v15  ;;  %v10898_v33 = vld [vmem:[#allocation3 + $0xf2] sm:$0xff]  ;;  %11410 = vst [vmem:[#allocation32_spill] sm:$0xff] %v10901_v29 }
 0x3f9   : > { %7962 = vmatmul.mubr.f32.gmra.mrb[10].mxu1 %v10871_v42  ;;  %11409 = vst [vmem:[#allocation31_spill] sm:$0xff] %v10898_v33 }
 0x3fa   : > { %7964 = vmatprep.mubr.f32.mxu1 %v10874_v41  ;;  %8881 = vmatpush3.bf16.msra.mxu1 %v8878_v38  ;;  %v10886_v38 = vld [vmem:[#allocation3 + $0xc2] sm:$0xff] }
 0x3fb   : > { %8883 = vmatprep.subr.bf16.mxu1 %v8882_v13  ;;  %11405 = vst [vmem:[#allocation27_spill] sm:$0xff] %v10886_v38 }
 0x3fd   : > { %7965 = vmatmul.mubr.f32.gmra.mrb[12].mxu1 %v10877_v11 }
 0x3fe   : > { %7967 = vmatprep.mubr.f32.mxu1 %v10880_v51  ;;  %8885 = vmatpush3.bf16.msra.mxu1 %v8882_v13  ;;  %v10895_v13 = vld [vmem:[#allocation3 + $0xe2] sm:$0xff]  ;;  %v4414_v51 = vld [vmem:[#allocation9 + $0x228] sm:$0xff] }
 0x3ff   : > { %8887 = vmatprep.subr.bf16.mxu1 %v8886_v25  ;;  %11408 = vst [vmem:[#allocation30_spill] sm:$0xff] %v10895_v13 }
 0x401   : > { %7968 = vmatmul.mubr.f32.gmra.mrb[14].mxu1 %v10883_v15  ;;  %v4413_v15 = vld [vmem:[#allocation9 + $0x220] sm:$0xff] }
 0x402   : > { %7970 = vmatprep.mubr.f32.mxu1 %v10886_v38  ;;  %8889 = vmatpush3.bf16.msra.mxu1 %v8886_v25  ;;  %v10904_v25 = vld [vmem:[#allocation3 + $0x10a] sm:$0xff]  ;;  %v4411_v38 = vld [vmem:[#allocation9 + $0x210] sm:$0xff] }
 0x403   : > { %8891 = vmatprep.subr.bf16.mxu1 %v8890_v28  ;;  %11411 = vst [vmem:[#allocation33_spill] sm:$0xff] %v10904_v25 }
 0x405   : > { %7971 = vmatmul.mubr.f32.gmra.mrb[16].mxu1 %v10889_v58  ;;  %v10907_v58 = vld [vmem:[#allocation3 + $0x112] sm:$0xff] }
 0x406   : > { %7973 = vmatprep.mubr.f32.mxu1 %v10892_v26  ;;  %11412 = vst [vmem:[#allocation34_spill] sm:$0xff] %v10907_v58  ;;  %v10910_v26 = vld [vmem:[#allocation3 + $0x122] sm:$0xff] }
 0x407   : > { %11413 = vst [vmem:[#allocation35_spill] sm:$0xff] %v10910_v26 }
 0x409   : > { %7974 = vmatmul.mubr.f32.gmra.mrb[18].mxu1 %v10895_v13  ;;  %v10913_v13 = vld [vmem:[#allocation3 + $0x12a] sm:$0xff] }
 0x40a   : > { %7976 = vmatprep.mubr.f32.mxu1 %v10898_v33  ;;  %11414 = vst [vmem:[#allocation36_spill] sm:$0xff] %v10913_v13  ;;  %v10916_v33 = vld [vmem:[#allocation3 + $0x13a] sm:$0xff] }
 0x40b   : > { %11415 = vst [vmem:[#allocation37_spill] sm:$0xff] %v10916_v33 }
 0x40d   : > { %7977 = vmatmul.mubr.f32.gmra.mrb[20].mxu1 %v10901_v29  ;;  %v10919_v29 = vld [vmem:[#allocation3 + $0x142] sm:$0xff] }
 0x40e   : > { %7979 = vmatprep.mubr.f32.mxu1 %v10904_v25  ;;  %11416 = vst [vmem:[#allocation38_spill] sm:$0xff] %v10919_v29  ;;  %v10922_v25 = vld [vmem:[#allocation3 + $0x152] sm:$0xff] }
 0x40f   : > { %11417 = vst [vmem:[#allocation39_spill] sm:$0xff] %v10922_v25 }
 0x411   : > { %7980 = vmatmul.mubr.f32.gmra.mrb[22].mxu1 %v10907_v58  ;;  %v10925_v58 = vld [vmem:[#allocation3 + $0x15a] sm:$0xff] }
 0x412   : > { %7982 = vmatprep.mubr.f32.mxu1 %v10910_v26  ;;  %11418 = vst [vmem:[#allocation40_spill] sm:$0xff] %v10925_v58  ;;  %v10928_v26 = vld [vmem:[#allocation3 + $0x16a] sm:$0xff] }
 0x413   : > { %11419 = vst [vmem:[#allocation41_spill] sm:$0xff] %v10928_v26 }
 0x415   : > { %7983 = vmatmul.mubr.f32.gmra.mrb[24].mxu1 %v10913_v13  ;;  %v10931_v13 = vld [vmem:[#allocation3 + $0x172] sm:$0xff] }
 0x416   : > { %7985 = vmatprep.mubr.f32.mxu1 %v10916_v33  ;;  %11420 = vst [vmem:[#allocation42_spill] sm:$0xff] %v10931_v13  ;;  %v4412_v33 = vld [vmem:[#allocation9 + $0x218] sm:$0xff] }
 0x419   : > { %7986 = vmatmul.mubr.f32.gmra.mrb[26].mxu1 %v10919_v29  ;;  %v8894_v29 = vpack.c.bf16 %v4412_v33, %v4411_v38  ;;  %v4418_v38 = vld [vmem:[#allocation9 + $0x248] sm:$0xff]  ;;  %v4421_v33 = vld [vmem:[#allocation9 + $0x260] sm:$0xff] }
 0x41a   : > { %7988 = vmatprep.mubr.f32.mxu1 %v10922_v25  ;;  %v4415_v25 = vld [vmem:[#allocation9 + $0x230] sm:$0xff] }
 0x41d   : > { %7989 = vmatmul.mubr.f32.gmra.mrb[28].mxu1 %v10925_v58  ;;  %v8898_v58 = vpack.c.bf16 %v4414_v51, %v4413_v15  ;;  %v4420_v51 = vld [vmem:[#allocation9 + $0x258] sm:$0xff] }
 0x41e   : > { %7991 = vmatprep.mubr.f32.mxu1 %v10928_v26  ;;  %v4416_v26 = vld [vmem:[#allocation9 + $0x238] sm:$0xff] }
 0x421   : > { %7992 = vmatmul.mubr.f32.gmra.mrb[30].mxu1 %v10931_v13  ;;  %v8902_v13 = vpack.c.bf16 %v4416_v26, %v4415_v25  ;;  %v4422_v26 = vld [vmem:[#allocation9 + $0x268] sm:$0xff]  ;;  %v4424_v25 = vld [vmem:[#allocation9 + $0x278] sm:$0xff] }
 0x422   : > { %8026 = vmatprep.mubr.f32.mxu1 %v10753_v10  ;;  %v4417_v10 = vld [vmem:[#allocation9 + $0x240] sm:$0xff] }
 0x425   : > { %8027 = vmatmul.mubr.f32.vlgmr.msra.gmra.mrb[0].mxu1 %v10757_v22  ;;  %v8906_v22 = vpack.c.bf16 %v4418_v38, %v4417_v10  ;;  %v4715_v10 = vld [vmem:[#allocation9 + $0x280] sm:$0xff]  ;;  %v4716_v38 = vld [vmem:[#allocation9 + $0x288] sm:$0xff] }
 0x426   : > { %8029 = vmatprep.mubr.f32.mxu1 %v10760_v55  ;;  %8893 = vmatpush3.bf16.msra.mxu1 %v8890_v28  ;;  %v4419_v28 = vld [vmem:[#allocation9 + $0x250] sm:$0xff] }
 0x427   : > { %8895 = vmatprep.subr.bf16.mxu1 %v8894_v29  ;;  %v8910_v15 = vpack.c.bf16 %v4420_v51, %v4419_v28  ;;  %v10964_v28 = vld [vmem:[#allocation3 + $0x180] sm:$0xff]  ;;  %v10967_v51 = vld [vmem:[#allocation3 + $0x188] sm:$0xff] }
 0x428   : > { %11421 = vst [vmem:[#allocation43_spill] sm:$0xff] %v10964_v28  ;;  %11422 = vst [vmem:[#allocation44_spill] sm:$0xff] %v10967_v51 }
 0x429   : > { %8030 = vmatmul.mubr.f32.gmra.mrb[2].mxu1 %v10763_v56 }
 0x42a   : > { %8032 = vmatprep.mubr.f32.mxu1 %v10766_v12  ;;  %8897 = vmatpush3.bf16.msra.mxu1 %v8894_v29  ;;  %v4423_v29 = vld [vmem:[#allocation9 + $0x270] sm:$0xff] }
 0x42b   : > { %8899 = vmatprep.subr.bf16.mxu1 %v8898_v58 }
 0x42d   : > { %8033 = vmatmul.mubr.f32.gmra.mrb[4].mxu1 %v10769_v6 }
 0x42e   : > { %8035 = vmatprep.mubr.f32.mxu1 %v10772_v45  ;;  %8901 = vmatpush3.bf16.msra.mxu1 %v8898_v58  ;;  %v8914_v58 = vpack.c.bf16 %v4422_v26, %v4421_v33  ;;  %v4718_v33 = vld [vmem:[#allocation9 + $0x298] sm:$0xff]  ;;  %v4376_v26 = vld [vmem:[#allocation3 + $0x19] sm:$0xff] }
 0x42f   : > { %8903 = vmatprep.subr.bf16.mxu1 %v8902_v13 }
 0x431   : > { %8036 = vmatmul.mubr.f32.gmra.mrb[6].mxu1 %v10775_v47 }
 0x432   : > { %8038 = vmatprep.mubr.f32.mxu1 %v10778_v57  ;;  %8905 = vmatpush3.bf16.msra.mxu1 %v8902_v13  ;;  %v8918_v13 = vpack.c.bf16 %v4424_v25, %v4423_v29  ;;  %v4377_v29 = vld [vmem:[#allocation3 + $0x21] sm:$0xff]  ;;  %v4719_v25 = vld [vmem:[#allocation9 + $0x2a0] sm:$0xff] }
 0x433   : > { %8907 = vmatprep.subr.bf16.mxu1 %v8906_v22 }
 0x435   : > { %8039 = vmatmul.mubr.f32.gmra.mrb[8].mxu1 %v10781_v14 }
 0x436   : > { %8041 = vmatprep.mubr.f32.mxu1 %v10784_v48  ;;  %8909 = vmatpush3.bf16.msra.mxu1 %v8906_v22  ;;  %v8922_v22 = vpack.c.bf16 %v4716_v38, %v4715_v10  ;;  %v10970_v10 = vld [vmem:[#allocation3 + $0x31] sm:$0xff] }
 0x437   : > { %8911 = vmatprep.subr.bf16.mxu1 %v8910_v15 }
 0x439   : > { %8042 = vmatmul.mubr.f32.gmra.mrb[10].mxu1 %v10787_v20 }
 0x43a   : > { %8044 = vmatprep.mubr.f32.mxu1 %v10790_v27  ;;  %8913 = vmatpush3.bf16.msra.mxu1 %v8910_v15  ;;  %v4717_v15 = vld [vmem:[#allocation9 + $0x290] sm:$0xff] }
 0x43b   : > { %8915 = vmatprep.subr.bf16.mxu1 %v8914_v58 }
 0x43d   : > { %8045 = vmatmul.mubr.f32.gmra.mrb[12].mxu1 %v10793_v30 }
 0x43e   : > { %8047 = vmatprep.mubr.f32.mxu1 %v10796_v35  ;;  %8917 = vmatpush3.bf16.msra.mxu1 %v8914_v58  ;;  %v8926_v58 = vpack.c.bf16 %v4718_v33, %v4717_v15  ;;  %v10979_v33 = vld [vmem:[#allocation3 + $0x51] sm:$0xff] }
 0x43f   : > { %8919 = vmatprep.subr.bf16.mxu1 %v8918_v13  ;;  %11425 = vst [vmem:[#allocation47_spill] sm:$0xff] %v10979_v33 }
 0x441   : > { %8048 = vmatmul.mubr.f32.gmra.mrb[14].mxu1 %v10799_v36 }
 0x442   : > { %8050 = vmatprep.mubr.f32.mxu1 %v10802_v59  ;;  %8921 = vmatpush3.bf16.msra.mxu1 %v8918_v13  ;;  %v4720_v13 = vld [vmem:[#allocation9 + $0x2a8] sm:$0xff] }
 0x443   : > { %8923 = vmatprep.subr.bf16.mxu1 %v8922_v22  ;;  %v8930_v38 = vpack.c.bf16 %v4720_v13, %v4719_v25  ;;  %v10985_v13 = vld [vmem:[#allocation3 + $0x69] sm:$0xff] }
 0x444   : > { %11427 = vst [vmem:[#allocation49_spill] sm:$0xff] %v10985_v13 }
 0x445   : > { %8051 = vmatmul.mubr.f32.gmra.mrb[16].mxu1 %v10805_v63 }
 0x446   : > { %8053 = vmatprep.mubr.f32.mxu1 %v10808_v1 }
 0x449   : > { %8054 = vmatmul.mubr.f32.gmra.mrb[18].mxu1 %v10811_v4 }
 0x44a   : > { %8056 = vmatprep.mubr.f32.mxu1 %v10814_v18 }
 0x44d   : > { %8057 = vmatmul.mubr.f32.gmra.mrb[20].mxu1 %v10817_v9 }
 0x44e   : > { %8059 = vmatprep.mubr.f32.mxu1 %v10820_v49 }
 0x451   : > { %8060 = vmatmul.mubr.f32.gmra.mrb[22].mxu1 %v10823_v40 }
 0x452   : > { %8062 = vmatprep.mubr.f32.mxu1 %v10826_v44 }
 0x455   : > { %8063 = vmatmul.mubr.f32.gmra.mrb[24].mxu1 %v10829_v61 }
 0x456   : > { %8065 = vmatprep.mubr.f32.mxu1 %v10832_v0 }
 0x459   : > { %8066 = vmatmul.mubr.f32.gmra.mrb[26].mxu1 %v10835_v2 }
 0x45a   : > { %8068 = vmatprep.mubr.f32.mxu1 %v10838_v3  ;;  %v4722_v3 = vld [vmem:[#allocation9 + $0x2b8] sm:$0xff] }
 0x45d   : > { %8069 = vmatmul.mubr.f32.gmra.mrb[28].mxu1 %v10841_v34  ;;  %v4721_v34 = vld [vmem:[#allocation9 + $0x2b0] sm:$0xff] }
 0x45e   : > { %8071 = vmatprep.mubr.f32.mxu1 %v10964_v28  ;;  %v10973_v28 = vld [vmem:[#allocation3 + $0x39] sm:$0xff]  ;;  %v8934_v15 = vpack.c.bf16 %v4722_v3, %v4721_v34 }
 0x45f   : > { %11423 = vst [vmem:[#allocation45_spill] sm:$0xff] %v10973_v28  ;;  %v10988_v3 = vld [vmem:[#allocation3 + $0x79] sm:$0xff] }
 0x461   : > { %8072 = vmatmul.mubr.f32.gmra.mrb[30].mxu1 %v10967_v51  ;;  %v10976_v51 = vld [vmem:[#allocation3 + $0x49] sm:$0xff] }
 0x462   : > { %8106 = vmatprep.mubr.f32.mxu1 %v4376_v26  ;;  %11424 = vst [vmem:[#allocation46_spill] sm:$0xff] %v10976_v51  ;;  %v4723_v26 = vld [vmem:[#allocation9 + $0x2c0] sm:$0xff] }
 0x465   : > { %8107 = vmatmul.mubr.f32.vlgmr.msra.gmra.mrb[0].mxu1 %v4377_v29  ;;  %v4724_v29 = vld [vmem:[#allocation9 + $0x2c8] sm:$0xff] }
 0x466   : > { %8109 = vmatprep.mubr.f32.mxu1 %v10970_v10  ;;  %8925 = vmatpush3.bf16.msra.mxu1 %v8922_v22  ;;  %v10982_v22 = vld [vmem:[#allocation3 + $0x61] sm:$0xff]  ;;  %v8938_v25 = vpack.c.bf16 %v4724_v29, %v4723_v26  ;;  %v10995_v26 = vld [vmem:[#allocation3 + $0x99] sm:$0xff] }
 0x467   : > { %8927 = vmatprep.subr.bf16.mxu1 %v8926_v58  ;;  %11426 = vst [vmem:[#allocation48_spill] sm:$0xff] %v10982_v22  ;;  %v4729_v29 = vld [vmem:[#allocation9 + $0x2f0] sm:$0xff] }
 0x469   : > { %8110 = vmatmul.mubr.f32.gmra.mrb[2].mxu1 %v10973_v28  ;;  %v4725_v28 = vld [vmem:[#allocation9 + $0x2d0] sm:$0xff] }
 0x46a   : > { %8112 = vmatprep.mubr.f32.mxu1 %v10976_v51  ;;  %8929 = vmatpush3.bf16.msra.mxu1 %v8926_v58  ;;  %v4726_v51 = vld [vmem:[#allocation9 + $0x2d8] sm:$0xff] }
 0x46b   : > { %8931 = vmatprep.subr.bf16.mxu1 %v8930_v38  ;;  %v8942_v34 = vpack.c.bf16 %v4726_v51, %v4725_v28  ;;  %v10991_v58 = vld [vmem:[#allocation3 + $0x81] sm:$0xff]  ;;  %v5022_v51 = vld [vmem:[#allocation9 + $0x300] sm:$0xff] }
 0x46d   : > { %8113 = vmatmul.mubr.f32.gmra.mrb[4].mxu1 %v10979_v33  ;;  %v4727_v33 = vld [vmem:[#allocation9 + $0x2e0] sm:$0xff] }
 0x46e   : > { %8115 = vmatprep.mubr.f32.mxu1 %v10982_v22  ;;  %8933 = vmatpush3.bf16.msra.mxu1 %v8930_v38  ;;  %v4728_v22 = vld [vmem:[#allocation9 + $0x2e8] sm:$0xff] }
 0x46f   : > { %8935 = vmatprep.subr.bf16.mxu1 %v8934_v15  ;;  %v8946_v38 = vpack.c.bf16 %v4728_v22, %v4727_v33  ;;  %v5032_v22 = vld [vmem:[#allocation9 + $0x350] sm:$0xff] }
 0x471   : > { %8116 = vmatmul.mubr.f32.gmra.mrb[6].mxu1 %v10985_v13  ;;  %v4730_v13 = vld [vmem:[#allocation9 + $0x2f8] sm:$0xff] }
 0x472   : > { %8118 = vmatprep.mubr.f32.mxu1 %v10988_v3  ;;  %8937 = vmatpush3.bf16.msra.mxu1 %v8934_v15  ;;  %v8950_v28 = vpack.c.bf16 %v4730_v13, %v4729_v29  ;;  %v5023_v15 = vld [vmem:[#allocation9 + $0x308] sm:$0xff]  ;;  %v5034_v29 = vld [vmem:[#allocation9 + $0x360] sm:$0xff] }
 0x473   : > { %8939 = vmatprep.subr.bf16.mxu1 %v8938_v25  ;;  %v11437_v13 = vld [vmem:[#allocation23_spill] sm:$0xff] }
 0x475   : > { %8119 = vmatmul.mubr.f32.gmra.mrb[8].mxu1 %v10991_v58 }
 0x476   : > { %8121 = vmatprep.mubr.f32.mxu1 %v10646_v24  ;;  %8941 = vmatpush3.bf16.msra.mxu1 %v8938_v25  ;;  %v8954_v24 = vpack.c.bf16 %v5023_v15, %v5022_v51  ;;  %v5033_v25 = vld [vmem:[#allocation9 + $0x358] sm:$0xff]  ;;  %v5036_v15 = vld [vmem:[#allocation9 + $0x370] sm:$0xff] }
 0x477   : > { %8943 = vmatprep.subr.bf16.mxu1 %v8942_v34 }
 0x479   : > { %8122 = vmatmul.mubr.f32.gmra.mrb[10].mxu1 %v10995_v26 }
 0x47a   : > { %8124 = vmatprep.mubr.f32.mxu1 %v10654_v50  ;;  %8945 = vmatpush3.bf16.msra.mxu1 %v8942_v34  ;;  %v5024_v50 = vld [vmem:[#allocation9 + $0x310] sm:$0xff] }
 0x47b   : > { %8947 = vmatprep.subr.bf16.mxu1 %v8946_v38  ;;  %v11438_v34 = vld [vmem:[#allocation24_spill] sm:$0xff] }
 0x47d   : > { %8125 = vmatmul.mubr.f32.gmra.mrb[12].mxu1 %v10652_v5  ;;  %v11428_v5 = vmax.f32 %v10742_v37, 0.0  ;;  %v11435_v37 = vld [vmem:[#allocation21_spill] sm:$0xff] }
 0x47e   : > { %8127 = vmatprep.mubr.f32.mxu1 %v10664_v54  ;;  %8949 = vmatpush3.bf16.msra.mxu1 %v8946_v38  ;;  %v11429_v54 = vld [vmem:[#allocation14_spill] sm:$0xff]  ;;  %v8974_v38 = vpack.c.bf16 %v5033_v25, %v5032_v22  ;;  %v5330_v22 = vld [vmem:[#allocation9 + $0x390] sm:$0xff]  ;;  %v5331_v25 = vld [vmem:[#allocation9 + $0x398] sm:$0xff] }
 0x47f   : > { %8951 = vmatprep.subr.bf16.mxu1 %v8950_v28 }
 0x481   : > { %8128 = vmatmul.mubr.f32.gmra.mrb[14].mxu1 %v10661_v23  ;;  %v5025_v23 = vld [vmem:[#allocation9 + $0x318] sm:$0xff] }
 0x482   : > { %8130 = vmatprep.mubr.f32.mxu1 %v10674_v62  ;;  %8953 = vmatpush3.bf16.msra.mxu1 %v8950_v28  ;;  %v8958_v62 = vpack.c.bf16 %v5025_v23, %v5024_v50  ;;  %v5035_v28 = vld [vmem:[#allocation9 + $0x368] sm:$0xff]  ;;  %v5328_v23 = vld [vmem:[#allocation9 + $0x380] sm:$0xff] }
 0x483   : > { %8955 = vmatprep.subr.bf16.mxu1 %v8954_v24  ;;  %v8978_v51 = vpack.c.bf16 %v5035_v28, %v5034_v29  ;;  %v5334_v28 = vld [vmem:[#allocation9 + $0x3b0] sm:$0xff] }
 0x485   : > { %8131 = vmatmul.mubr.f32.gmra.mrb[16].mxu1 %v10671_v60  ;;  %v11430_v60 = vmax.f32 %v11429_v54, 0.0  ;;  %v5329_v54 = vld [vmem:[#allocation9 + $0x388] sm:$0xff] }
 0x486   : > { %8133 = vmatprep.mubr.f32.mxu1 %v10684_v8  ;;  %v5027_v8 = vld [vmem:[#allocation9 + $0x328] sm:$0xff] }
 0x489   : > { %8134 = vmatmul.mubr.f32.gmra.mrb[18].mxu1 %v10681_v7  ;;  %v5026_v7 = vld [vmem:[#allocation9 + $0x320] sm:$0xff] }
 0x48a   : > { %8136 = vmatprep.mubr.f32.mxu1 %v10694_v43  ;;  %v11432_v43 = vld [vmem:[#allocation18_spill] sm:$0xff] }
 0x48d   : > { %8137 = vmatmul.mubr.f32.gmra.mrb[20].mxu1 %v10691_v52  ;;  %v11431_v52 = vld [vmem:[#allocation17_spill] sm:$0xff] }
 0x48e   : > { %8139 = vmatprep.mubr.f32.mxu1 %v10704_v46  ;;  %v5028_v46 = vld [vmem:[#allocation9 + $0x330] sm:$0xff] }
 0x491   : > { %8140 = vmatmul.mubr.f32.gmra.mrb[22].mxu1 %v10701_v53  ;;  %v8962_v53 = vpack.c.bf16 %v5027_v8, %v5026_v7  ;;  %v11443_v7 = vld [vmem:[#allocation29_spill] sm:$0xff]  ;;  %v11445_v8 = vld [vmem:[#allocation31_spill] sm:$0xff] }
 0x492   : > { %8142 = vmatprep.mubr.f32.mxu1 %v10714_v17  ;;  %v11433_v17 = vld [vmem:[#allocation19_spill] sm:$0xff] }
 0x495   : > { %8143 = vmatmul.mubr.f32.gmra.mrb[24].mxu1 %v10711_v16  ;;  %v5029_v16 = vld [vmem:[#allocation9 + $0x338] sm:$0xff] }
 0x496   : > { %8145 = vmatprep.mubr.f32.mxu1 %v10724_v39  ;;  %v8966_v39 = vpack.c.bf16 %v5029_v16, %v5028_v46  ;;  %v11449_v46 = vld [vmem:[#allocation35_spill] sm:$0xff]  ;;  %v11450_v16 = vld [vmem:[#allocation36_spill] sm:$0xff] }
 0x499   : > { %8146 = vmatmul.mubr.f32.gmra.mrb[26].mxu1 %v10721_v21  ;;  %v11434_v21 = vld [vmem:[#allocation20_spill] sm:$0xff] }
 0x49a   : > { %8148 = vmatprep.mubr.f32.mxu1 %v10734_v32  ;;  %v5031_v32 = vld [vmem:[#allocation9 + $0x348] sm:$0xff] }
 0x49d   : > { %8149 = vmatmul.mubr.f32.gmra.mrb[28].mxu1 %v10731_v31  ;;  %v5030_v31 = vld [vmem:[#allocation9 + $0x340] sm:$0xff] }
 0x49e   : > { %8151 = vmatprep.mubr.f32.mxu1 %v11428_v5  ;;  %v8970_v33 = vpack.c.bf16 %v5031_v32, %v5030_v31  ;;  %v11439_v5 = vld [vmem:[#allocation25_spill] sm:$0xff]  ;;  %v11454_v31 = vld [vmem:[#allocation40_spill] sm:$0xff] }
 0x49f   : > { %v11455_v32 = vld [vmem:[#allocation41_spill] sm:$0xff] }
 0x4a1   : > { %8152 = vmatmul.mubr.f32.gmra.mrb[30].mxu1 %v11430_v60  ;;  %v11440_v60 = vld [vmem:[#allocation26_spill] sm:$0xff] }
 0x4a2   : > { %8186 = vmatprep.mubr.f32.mxu1 %v10844_v19  ;;  %v11436_v19 = vld [vmem:[#allocation22_spill] sm:$0xff] }
 0x4a5   : > { %8187 = vmatmul.mubr.f32.vlgmr.msra.gmra.mrb[0].mxu1 %v11431_v52  ;;  %v11446_v52 = vld [vmem:[#allocation32_spill] sm:$0xff] }
 0x4a6   : > { %8189 = vmatprep.mubr.f32.mxu1 %v11432_v43  ;;  %8957 = vmatpush3.bf16.msra.mxu1 %v8954_v24  ;;  %v5037_v24 = vld [vmem:[#allocation9 + $0x378] sm:$0xff] }
 0x4a7   : > { %8959 = vmatprep.subr.bf16.mxu1 %v8958_v62  ;;  %v8982_v50 = vpack.c.bf16 %v5037_v24, %v5036_v15  ;;  %v11447_v43 = vld [vmem:[#allocation33_spill] sm:$0xff]  ;;  %v5337_v24 = vld [vmem:[#allocation9 + $0x3c8] sm:$0xff] }
 0x4a9   : > { %8190 = vmatmul.mubr.f32.gmra.mrb[2].mxu1 %v11433_v17  ;;  %v11451_v17 = vld [vmem:[#allocation37_spill] sm:$0xff] }
 0x4aa   : > { %8192 = vmatprep.mubr.f32.mxu1 %v11434_v21  ;;  %8961 = vmatpush3.bf16.msra.mxu1 %v8958_v62  ;;  %v11441_v62 = vld [vmem:[#allocation27_spill] sm:$0xff]  ;;  %v11452_v21 = vld [vmem:[#allocation38_spill] sm:$0xff] }
 0x4ab   : > { %8963 = vmatprep.subr.bf16.mxu1 %v8962_v53 }
 0x4ad   : > { %8193 = vmatmul.mubr.f32.gmra.mrb[4].mxu1 %v11435_v37  ;;  %v11456_v37 = vld [vmem:[#allocation42_spill] sm:$0xff] }
 0x4ae   : > { %8195 = vmatprep.mubr.f32.mxu1 %v11436_v19  ;;  %8965 = vmatpush3.bf16.msra.mxu1 %v8962_v53  ;;  %v11448_v53 = vld [vmem:[#allocation34_spill] sm:$0xff]  ;;  %v11050_v19 = vld [vmem:[#allocation3 + $0x182] sm:$0xff] }
 0x4af   : > { %8967 = vmatprep.subr.bf16.mxu1 %v8966_v39 }
 0x4b1   : > { %8196 = vmatmul.mubr.f32.gmra.mrb[6].mxu1 %v11437_v13  ;;  %v8990_v13 = vpack.c.bf16 %v5331_v25, %v5330_v22  ;;  %v5309_v22 = vld [vmem:[#allocation3 + $0xd9] sm:$0xff]  ;;  %v5311_v25 = vld [vmem:[#allocation3 + $0xf1] sm:$0xff] }
 0x4b2   : > { %8198 = vmatprep.mubr.f32.mxu1 %v11438_v34  ;;  %8969 = vmatpush3.bf16.msra.mxu1 %v8966_v39  ;;  %v11453_v39 = vld [vmem:[#allocation39_spill] sm:$0xff]  ;;  %v5332_v34 = vld [vmem:[#allocation9 + $0x3a0] sm:$0xff] }
 0x4b3   : > { %8971 = vmatprep.subr.bf16.mxu1 %v8970_v33 }
 0x4b5   : > { %8199 = vmatmul.mubr.f32.gmra.mrb[8].mxu1 %v10871_v42  ;;  %v8986_v42 = vpack.c.bf16 %v5329_v54, %v5328_v23  ;;  %v5343_v23 = vld [vmem:[#allocation9 + $0x3f8] sm:$0xff]  ;;  %v5635_v54 = vld [vmem:[#allocation9 + $0x408] sm:$0xff] }
 0x4b6   : > { %8201 = vmatprep.mubr.f32.mxu1 %v10874_v41  ;;  %8973 = vmatpush3.bf16.msra.mxu1 %v8970_v33  ;;  %v11442_v41 = vld [vmem:[#allocation28_spill] sm:$0xff]  ;;  %v11053_v33 = vld [vmem:[#allocation3 + $0x18a] sm:$0xff] }
 0x4b7   : > { %8975 = vmatprep.subr.bf16.mxu1 %v8974_v38 }
 0x4b9   : > { %8202 = vmatmul.mubr.f32.gmra.mrb[10].mxu1 %v10877_v11  ;;  %v11444_v11 = vld [vmem:[#allocation30_spill] sm:$0xff] }
 0x4ba   : > { %8204 = vmatprep.mubr.f32.mxu1 %v11439_v5  ;;  %8977 = vmatpush3.bf16.msra.mxu1 %v8974_v38  ;;  %v5333_v38 = vld [vmem:[#allocation9 + $0x3a8] sm:$0xff]  ;;  %v5339_v5 = vld [vmem:[#allocation9 + $0x3d8] sm:$0xff] }
 0x4bb   : > { %8979 = vmatprep.subr.bf16.mxu1 %v8978_v51  ;;  %v8994_v29 = vpack.c.bf16 %v5333_v38, %v5332_v34  ;;  %v5313_v34 = vld [vmem:[#allocation3 + $0x109] sm:$0xff]  ;;  %v5314_v38 = vld [vmem:[#allocation3 + $0x111] sm:$0xff] }
 0x4bd   : > { %8205 = vmatmul.mubr.f32.gmra.mrb[12].mxu1 %v11440_v60  ;;  %v11463_v60 = vld [vmem:[#allocation47_spill] sm:$0xff] }
 0x4be   : > { %8207 = vmatprep.mubr.f32.mxu1 %v11441_v62  ;;  %8981 = vmatpush3.bf16.msra.mxu1 %v8978_v51  ;;  %v5335_v51 = vld [vmem:[#allocation9 + $0x3b8] sm:$0xff]  ;;  %v11464_v62 = vld [vmem:[#allocation48_spill] sm:$0xff] }
 0x4bf   : > { %8983 = vmatprep.subr.bf16.mxu1 %v8982_v50  ;;  %v8998_v15 = vpack.c.bf16 %v5335_v51, %v5334_v28  ;;  %v5316_v28 = vld [vmem:[#allocation3 + $0x129] sm:$0xff]  ;;  %v5317_v51 = vld [vmem:[#allocation3 + $0x139] sm:$0xff] }
 0x4c1   : > { %8208 = vmatmul.mubr.f32.gmra.mrb[14].mxu1 %v11442_v41  ;;  %v5643_v41 = vld [vmem:[#allocation9 + $0x448] sm:$0xff] }
 0x4c2   : > { %8210 = vmatprep.mubr.f32.mxu1 %v11443_v7  ;;  %8985 = vmatpush3.bf16.msra.mxu1 %v8982_v50  ;;  %v5341_v50 = vld [vmem:[#allocation9 + $0x3e8] sm:$0xff]  ;;  %v11465_v7 = vld [vmem:[#allocation49_spill] sm:$0xff] }
 0x4c3   : > { %8987 = vmatprep.subr.bf16.mxu1 %v8986_v42 }
 0x4c5   : > { %8211 = vmatmul.mubr.f32.gmra.mrb[16].mxu1 %v11444_v11 }
 0x4c6   : > { %8213 = vmatprep.mubr.f32.mxu1 %v11445_v8  ;;  %v5644_v8 = vld [vmem:[#allocation9 + $0x450] sm:$0xff] }
 0x4c9   : > { %8214 = vmatmul.mubr.f32.gmra.mrb[18].mxu1 %v11446_v52  ;;  %v5645_v52 = vld [vmem:[#allocation9 + $0x458] sm:$0xff] }
 0x4ca   : > { %8216 = vmatprep.mubr.f32.mxu1 %v11447_v43  ;;  %v5303_v43 = vld [vmem:[#allocation3 + $0x91] sm:$0xff] }
 0x4cd   : > { %8217 = vmatmul.mubr.f32.gmra.mrb[20].mxu1 %v11448_v53  ;;  %v9038_v53 = vpack.c.bf16 %v5645_v52, %v5644_v8  ;;  %v11100_v8 = vld [vmem:[%s11225_s4] ss:$0 sm:$0xff] }
 0x4ce   : > { %8219 = vmatprep.mubr.f32.mxu1 %v11449_v46  ;;  %v5646_v46 = vld [vmem:[#allocation9 + $0x460] sm:$0xff] }
 0x4d1   : > { %8220 = vmatmul.mubr.f32.gmra.mrb[22].mxu1 %v11450_v16  ;;  %v5647_v16 = vld [vmem:[#allocation9 + $0x468] sm:$0xff] }
 0x4d2   : > { %8222 = vmatprep.mubr.f32.mxu1 %v11451_v17  ;;  %v5305_v17 = vld [vmem:[#allocation3 + $0xa9] sm:$0xff] }
 0x4d5   : > { %8223 = vmatmul.mubr.f32.gmra.mrb[24].mxu1 %v11452_v21  ;;  %v5306_v21 = vld [vmem:[#allocation3 + $0xb1] sm:$0xff] }
 0x4d6   : > { %8225 = vmatprep.mubr.f32.mxu1 %v11453_v39  ;;  %v5648_v39 = vld [vmem:[#allocation9 + $0x470] sm:$0xff] }
 0x4d9   : > { %8226 = vmatmul.mubr.f32.gmra.mrb[26].mxu1 %v11454_v31  ;;  %v5649_v31 = vld [vmem:[#allocation9 + $0x478] sm:$0xff] }
 0x4da   : > { %8228 = vmatprep.mubr.f32.mxu1 %v11455_v32  ;;  %v5307_v32 = vld [vmem:[#allocation3 + $0xc1] sm:$0xff] }
 0x4dd   : > { %8229 = vmatmul.mubr.f32.gmra.mrb[28].mxu1 %v11456_v37  ;;  %v5308_v37 = vld [vmem:[#allocation3 + $0xc9] sm:$0xff] }
 0x4de   : > { %8231 = vmatprep.mubr.f32.mxu1 %v11050_v19 }
 0x4e1   : > { %8232 = vmatmul.mubr.f32.gmra.mrb[30].mxu1 %v11053_v33 }
 0x4e2   : > { %8266 = vmatprep.mubr.f32.mxu1 %v10760_v55  ;;  %v5336_v55 = vld [vmem:[#allocation9 + $0x3c0] sm:$0xff] }
 0x4e5   : > { %8267 = vmatmul.mubr.f32.vlgmr.msra.gmra.mrb[0].mxu1 %v10763_v56  ;;  %v9002_v56 = vpack.c.bf16 %v5337_v24, %v5336_v55  ;;  %v5319_v55 = vld [vmem:[#allocation3 + $0x151] sm:$0xff]  ;;  %v5320_v24 = vld [vmem:[#allocation3 + $0x159] sm:$0xff] }
 0x4e6   : > { %8269 = vmatprep.mubr.f32.mxu1 %v10766_v12  ;;  %8989 = vmatpush3.bf16.msra.mxu1 %v8986_v42  ;;  %v5338_v12 = vld [vmem:[#allocation9 + $0x3d0] sm:$0xff] }
 0x4e7   : > { %8991 = vmatprep.subr.bf16.mxu1 %v8990_v13 }
 0x4e9   : > { %8270 = vmatmul.mubr.f32.gmra.mrb[2].mxu1 %v10769_v6  ;;  %v9006_v6 = vpack.c.bf16 %v5339_v5, %v5338_v12  ;;  %v5322_v12 = vld [vmem:[#allocation3 + $0x171] sm:$0xff]  ;;  %v5323_v5 = vld [vmem:[#allocation3 + $0x181] sm:$0xff] }
 0x4ea   : > { %8272 = vmatprep.mubr.f32.mxu1 %v10772_v45  ;;  %8993 = vmatpush3.bf16.msra.mxu1 %v8990_v13  ;;  %v5340_v45 = vld [vmem:[#allocation9 + $0x3e0] sm:$0xff]  ;;  %v5312_v13 = vld [vmem:[#allocation3 + $0xf9] sm:$0xff] }
 0x4eb   : > { %8995 = vmatprep.subr.bf16.mxu1 %v8994_v29 }
 0x4ed   : > { %8273 = vmatmul.mubr.f32.gmra.mrb[4].mxu1 %v10775_v47  ;;  %v9010_v47 = vpack.c.bf16 %v5341_v50, %v5340_v45  ;;  %v5324_v45 = vld [vmem:[#allocation3 + $0x189] sm:$0xff]  ;;  %v5326_v50 = vld [vmem:[#allocation3 + $0x1a1] sm:$0xff] }
 0x4ee   : > { %8275 = vmatprep.mubr.f32.mxu1 %v10778_v57  ;;  %8997 = vmatpush3.bf16.msra.mxu1 %v8994_v29  ;;  %v5342_v57 = vld [vmem:[#allocation9 + $0x3f0] sm:$0xff] }
 0x4ef   : > { %8999 = vmatprep.subr.bf16.mxu1 %v8998_v15  ;;  %v5315_v29 = vld [vmem:[#allocation3 + $0x121] sm:$0xff] }
 0x4f1   : > { %8276 = vmatmul.mubr.f32.gmra.mrb[6].mxu1 %v10781_v14  ;;  %v9014_v14 = vpack.c.bf16 %v5343_v23, %v5342_v57  ;;  %v5602_v57 = vld [vmem:[#allocation3 + $0x3a] sm:$0xff]  ;;  %v5603_v23 = vld [vmem:[#allocation3 + $0x4a] sm:$0xff] }
 0x4f2   : > { %8278 = vmatprep.mubr.f32.mxu1 %v10784_v48  ;;  %9001 = vmatpush3.bf16.msra.mxu1 %v8998_v15  ;;  %v5634_v48 = vld [vmem:[#allocation9 + $0x400] sm:$0xff]  ;;  %v5318_v15 = vld [vmem:[#allocation3 + $0x141] sm:$0xff] }
 0x4f3   : > { %9003 = vmatprep.subr.bf16.mxu1 %v9002_v56 }
 0x4f5   : > { %8279 = vmatmul.mubr.f32.gmra.mrb[8].mxu1 %v10787_v20  ;;  %v9018_v20 = vpack.c.bf16 %v5635_v54, %v5634_v48  ;;  %v5605_v48 = vld [vmem:[#allocation3 + $0x62] sm:$0xff]  ;;  %v5606_v54 = vld [vmem:[#allocation3 + $0x6a] sm:$0xff] }
 0x4f6   : > { %8281 = vmatprep.mubr.f32.mxu1 %v10790_v27  ;;  %9005 = vmatpush3.bf16.msra.mxu1 %v9002_v56  ;;  %v11457_v27 = vld [vmem:[#allocation15_spill] sm:$0xff]  ;;  %v5321_v56 = vld [vmem:[#allocation3 + $0x169] sm:$0xff] }
 0x4f7   : > { %9007 = vmatprep.subr.bf16.mxu1 %v9006_v6 }
 0x4f9   : > { %8282 = vmatmul.mubr.f32.gmra.mrb[10].mxu1 %v10793_v30  ;;  %v11458_v30 = vld [vmem:[#allocation16_spill] sm:$0xff] }
 0x4fa   : > { %8284 = vmatprep.mubr.f32.mxu1 %v10796_v35  ;;  %9009 = vmatpush3.bf16.msra.mxu1 %v9006_v6  ;;  %v11459_v35 = vld [vmem:[#allocation43_spill] sm:$0xff] }
 0x4fb   : > { %9011 = vmatprep.subr.bf16.mxu1 %v9010_v47  ;;  %v5325_v6 = vld [vmem:[#allocation3 + $0x199] sm:$0xff] }
 0x4fd   : > { %8285 = vmatmul.mubr.f32.gmra.mrb[12].mxu1 %v10799_v36  ;;  %v5019_v36 = vld [vmem:[#allocation3 + $0x198] sm:$0xff] }
 0x4fe   : > { %8287 = vmatprep.mubr.f32.mxu1 %v10802_v59  ;;  %9013 = vmatpush3.bf16.msra.mxu1 %v9010_v47  ;;  %v11460_v59 = vld [vmem:[#allocation44_spill] sm:$0xff]  ;;  %v5601_v47 = vld [vmem:[#allocation3 + $0x32] sm:$0xff] }
 0x4ff   : > { %9015 = vmatprep.subr.bf16.mxu1 %v9014_v14 }
 0x501   : > { %8288 = vmatmul.mubr.f32.gmra.mrb[14].mxu1 %v10805_v63  ;;  %v5636_v63 = vld [vmem:[#allocation9 + $0x410] sm:$0xff] }
 0x502   : > { %8290 = vmatprep.mubr.f32.mxu1 %v10808_v1  ;;  %9017 = vmatpush3.bf16.msra.mxu1 %v9014_v14  ;;  %v5637_v1 = vld [vmem:[#allocation9 + $0x418] sm:$0xff]  ;;  %v5604_v14 = vld [vmem:[#allocation3 + $0x52] sm:$0xff] }
 0x503   : > { %9019 = vmatprep.subr.bf16.mxu1 %v9018_v20 }
 0x505   : > { %8291 = vmatmul.mubr.f32.gmra.mrb[16].mxu1 %v10811_v4  ;;  %v9637_v4 = vld [vmem:[#allocation2 + $0x8] sm:$0xff] }
 0x506   : > { %8293 = vmatprep.mubr.f32.mxu1 %v10814_v18  ;;  %v9022_v18 = vpack.c.bf16 %v5637_v1, %v5636_v63  ;;  %v5613_v63 = vld [vmem:[#allocation3 + $0xc2] sm:$0xff]  ;;  %v5614_v1 = vld [vmem:[#allocation3 + $0xca] sm:$0xff] }
 0x509   : > { %8294 = vmatmul.mubr.f32.gmra.mrb[18].mxu1 %v10817_v9  ;;  %v5638_v9 = vld [vmem:[#allocation9 + $0x420] sm:$0xff] }
 0x50a   : > { %8296 = vmatprep.mubr.f32.mxu1 %v10820_v49  ;;  %v5639_v49 = vld [vmem:[#allocation9 + $0x428] sm:$0xff] }
 0x50d   : > { %8297 = vmatmul.mubr.f32.gmra.mrb[20].mxu1 %v10823_v40  ;;  %v11461_v40 = vld [vmem:[#allocation45_spill] sm:$0xff] }
 0x50e   : > { %8299 = vmatprep.mubr.f32.mxu1 %v10826_v44  ;;  %v11462_v44 = vld [vmem:[#allocation46_spill] sm:$0xff] }
 0x511   : > { %8300 = vmatmul.mubr.f32.gmra.mrb[22].mxu1 %v10829_v61  ;;  %v9026_v61 = vpack.c.bf16 %v5639_v49, %v5638_v9  ;;  %v5617_v9 = vld [vmem:[#allocation3 + $0xf2] sm:$0xff]  ;;  %v5618_v49 = vld [vmem:[#allocation3 + $0xfa] sm:$0xff] }
 0x512   : > { %8302 = vmatprep.mubr.f32.mxu1 %v10832_v0  ;;  %v5640_v0 = vld [vmem:[#allocation9 + $0x430] sm:$0xff] }
 0x515   : > { %8303 = vmatmul.mubr.f32.gmra.mrb[24].mxu1 %v10835_v2  ;;  %v5641_v2 = vld [vmem:[#allocation9 + $0x438] sm:$0xff] }
 0x516   : > { %8305 = vmatprep.mubr.f32.mxu1 %v11457_v27  ;;  %v9030_v42 = vpack.c.bf16 %v5641_v2, %v5640_v0  ;;  %v5608_v27 = vld [vmem:[#allocation3 + $0x82] sm:$0xff]  ;;  %v5622_v0 = vld [vmem:[#allocation3 + $0x12a] sm:$0xff]  ;;  %v5623_v2 = vld [vmem:[#allocation3 + $0x13a] sm:$0xff] }
 0x519   : > { %8306 = vmatmul.mubr.f32.gmra.mrb[26].mxu1 %v11458_v30  ;;  %v5609_v30 = vld [vmem:[#allocation3 + $0x92] sm:$0xff] }
 0x51a   : > { %8308 = vmatprep.mubr.f32.mxu1 %v11459_v35  ;;  %v5610_v35 = vld [vmem:[#allocation3 + $0x9a] sm:$0xff] }
 0x51d   : > { %8309 = vmatmul.mubr.f32.gmra.mrb[28].mxu1 %v11460_v59  ;;  %v5612_v59 = vld [vmem:[#allocation3 + $0xb2] sm:$0xff] }
 0x51e   : > { %8311 = vmatprep.mubr.f32.mxu1 %v5019_v36  ;;  %v5611_v36 = vld [vmem:[#allocation3 + $0xaa] sm:$0xff] }
 0x521   : > { %8312 = vmatmul.mubr.f32.gmra.mrb[30].mxu1 %v9637_v4  ;;  %v5615_v4 = vld [vmem:[#allocation3 + $0xda] sm:$0xff] }
 0x522   : > { %8346 = vmatprep.mubr.f32.mxu1 %v10970_v10  ;;  %v5642_v10 = vld [vmem:[#allocation9 + $0x440] sm:$0xff] }
 0x523   : > { %v9034_v11 = vpack.c.bf16 %v5643_v41, %v5642_v10  ;;  %v5627_v10 = vld [vmem:[#allocation3 + $0x16a] sm:$0xff]  ;;  %v5628_v41 = vld [vmem:[#allocation3 + $0x172] sm:$0xff] }
 0x525   : > { %8347 = vmatmul.mubr.f32.vlgmr.msra.gmra.mrb[0].mxu1 %v11461_v40  ;;  %v5619_v40 = vld [vmem:[#allocation3 + $0x10a] sm:$0xff] }
 0x526   : > { %8349 = vmatprep.mubr.f32.mxu1 %v11462_v44  ;;  %9021 = vmatpush3.bf16.msra.mxu1 %v9018_v20  ;;  %v5607_v20 = vld [vmem:[#allocation3 + $0x7a] sm:$0xff]  ;;  %v5620_v44 = vld [vmem:[#allocation3 + $0x112] sm:$0xff] }
 0x527   : > { %9023 = vmatprep.subr.bf16.mxu1 %v9022_v18 }
 0x529   : > { %8350 = vmatmul.mubr.f32.gmra.mrb[2].mxu1 %v11463_v60  ;;  %v5624_v60 = vld [vmem:[#allocation3 + $0x142] sm:$0xff] }
 0x52a   : > { %8352 = vmatprep.mubr.f32.mxu1 %v11464_v62  ;;  %9025 = vmatpush3.bf16.msra.mxu1 %v9022_v18  ;;  %v5616_v18 = vld [vmem:[#allocation3 + $0xe2] sm:$0xff]  ;;  %v5625_v62 = vld [vmem:[#allocation3 + $0x152] sm:$0xff] }
 0x52b   : > { %9027 = vmatprep.subr.bf16.mxu1 %v9026_v61 }
 0x52d   : > { %8353 = vmatmul.mubr.f32.gmra.mrb[4].mxu1 %v11465_v7  ;;  %v5631_v7 = vld [vmem:[#allocation3 + $0x19a] sm:$0xff] }
 0x52e   : > { %8355 = vmatprep.mubr.f32.mxu1 %v10988_v3  ;;  %9029 = vmatpush3.bf16.msra.mxu1 %v9026_v61  ;;  %v9042_v3 = vpack.c.bf16 %v5647_v16, %v5646_v46  ;;  %v5621_v61 = vld [vmem:[#allocation3 + $0x122] sm:$0xff]  ;;  %v9638_v16 = vld [vmem:[#allocation2 + $0x21] sm:$0xff] }
 0x52f   : > { %9031 = vmatprep.subr.bf16.mxu1 %v9030_v42 }
 0x531   : > { %8356 = vmatmul.mubr.f32.gmra.mrb[6].mxu1 %v10991_v58  ;;  %v9046_v58 = vpack.c.bf16 %v5649_v31, %v5648_v39 }
 0x532   : > { %8358 = vmatprep.mubr.f32.mxu1 %v5303_v43  ;;  %9033 = vmatpush3.bf16.msra.mxu1 %v9030_v42  ;;  %v5626_v42 = vld [vmem:[#allocation3 + $0x15a] sm:$0xff] }
 0x533   : > { %9035 = vmatprep.subr.bf16.mxu1 %v9034_v11 }
 0x535   : > { %8359 = vmatmul.mubr.f32.gmra.mrb[8].mxu1 %v10995_v26  ;;  %v5310_v26 = vld [vmem:[#allocation3 + $0xe1] sm:$0xff] }
 0x536   : > { %8361 = vmatprep.mubr.f32.mxu1 %v5305_v17  ;;  %9037 = vmatpush3.bf16.msra.mxu1 %v9034_v11  ;;  %v5632_v11 = vld [vmem:[#allocation3 + $0x1a2] sm:$0xff] }
 0x537   : > { %9039 = vmatprep.subr.bf16.mxu1 %v9038_v53  ;;  %v9639_v17 = vld [vmem:[#allocation2 + $0x19] sm:$0xff] }
 0x539   : > { %8362 = vmatmul.mubr.f32.gmra.mrb[10].mxu1 %v5306_v21 }
 0x53a   : > { %8364 = vmatprep.mubr.f32.mxu1 %v5307_v32  ;;  %9041 = vmatpush3.bf16.msra.mxu1 %v9038_v53 }
 0x53b   : > { %9043 = vmatprep.subr.bf16.mxu1 %v9042_v3 }
 0x53d   : > { %8365 = vmatmul.mubr.f32.gmra.mrb[12].mxu1 %v5308_v37  ;;  %v9640_v37 = vld [vmem:[#allocation2 + $0x39] sm:$0xff] }
 0x53e   : > { %8367 = vmatprep.mubr.f32.mxu1 %v5309_v22  ;;  %9045 = vmatpush3.bf16.msra.mxu1 %v9042_v3 }
 0x53f   : > { %9047 = vmatprep.subr.bf16.mxu1 %v9046_v58 }
 0x541   : > { %8368 = vmatmul.mubr.f32.gmra.mrb[14].mxu1 %v5310_v26  ;;  %v9641_v26 = vld [vmem:[#allocation2 + $0x31] sm:$0xff] }
 0x542   : > { %8370 = vmatprep.mubr.f32.mxu1 %v5311_v25  ;;  %9049 = vmatpush3.bf16.msra.mxu1 %v9046_v58 }
 0x545   : > { %8371 = vmatmul.mubr.f32.gmra.mrb[16].mxu1 %v5312_v13 }
 0x546   : > { %8373 = vmatprep.mubr.f32.mxu1 %v5313_v34 }
 0x549   : > { %8374 = vmatmul.mubr.f32.gmra.mrb[18].mxu1 %v5314_v38 }
 0x54a   : > { %8376 = vmatprep.mubr.f32.mxu1 %v5315_v29 }
 0x54d   : > { %8377 = vmatmul.mubr.f32.gmra.mrb[20].mxu1 %v5316_v28 }
 0x54e   : > { %8379 = vmatprep.mubr.f32.mxu1 %v5317_v51 }
 0x551   : > { %8380 = vmatmul.mubr.f32.gmra.mrb[22].mxu1 %v5318_v15  ;;  %v9642_v15 = vld [vmem:[#allocation2 + $0x51] sm:$0xff] }
 0x552   : > { %8382 = vmatprep.mubr.f32.mxu1 %v5319_v55 }
 0x555   : > { %8383 = vmatmul.mubr.f32.gmra.mrb[24].mxu1 %v5320_v24  ;;  %v9643_v24 = vld [vmem:[#allocation2 + $0x49] sm:$0xff] }
 0x556   : > { %8385 = vmatprep.mubr.f32.mxu1 %v5321_v56 }
 0x559   : > { %8386 = vmatmul.mubr.f32.gmra.mrb[26].mxu1 %v5322_v12 }
 0x55a   : > { %8388 = vmatprep.mubr.f32.mxu1 %v5323_v5 }
 0x55d   : > { %8389 = vmatmul.mubr.f32.gmra.mrb[28].mxu1 %v5324_v45 }
 0x55e   : > { %8391 = vmatprep.mubr.f32.mxu1 %v5325_v6 }
 0x561   : > { %8392 = vmatmul.mubr.f32.gmra.mrb[30].mxu1 %v5326_v50 }
 0x562   : > { %8426 = vmatprep.mubr.f32.mxu1 %v5601_v47 }
 0x565   : > { %8427 = vmatmul.mubr.f32.vlgmr.msra.gmra.mrb[0].mxu1 %v5602_v57  ;;  %v9644_v57 = vld [vmem:[#allocation2 + $0x69] sm:$0xff] }
 0x566   : > { %8429 = vmatprep.mubr.f32.mxu1 %v5603_v23 }
 0x569   : > { %8430 = vmatmul.mubr.f32.gmra.mrb[2].mxu1 %v5604_v14  ;;  %v9645_v14 = vld [vmem:[#allocation2 + $0x61] sm:$0xff] }
 0x56a   : > { %8432 = vmatprep.mubr.f32.mxu1 %v5605_v48 }
 0x56d   : > { %8433 = vmatmul.mubr.f32.gmra.mrb[4].mxu1 %v5606_v54 }
 0x56e   : > { %8435 = vmatprep.mubr.f32.mxu1 %v5607_v20 }
 0x571   : > { %8436 = vmatmul.mubr.f32.gmra.mrb[6].mxu1 %v5608_v27 }
 0x572   : > { %8438 = vmatprep.mubr.f32.mxu1 %v5609_v30 }
 0x575   : > { %8439 = vmatmul.mubr.f32.gmra.mrb[8].mxu1 %v5610_v35 }
 0x576   : > { %8441 = vmatprep.mubr.f32.mxu1 %v5611_v36 }
 0x579   : > { %8442 = vmatmul.mubr.f32.gmra.mrb[10].mxu1 %v5612_v59  ;;  %v9646_v59 = vld [vmem:[#allocation2 + $0x81] sm:$0xff] }
 0x57a   : > { %8444 = vmatprep.mubr.f32.mxu1 %v5613_v63 }
 0x57d   : > { %8445 = vmatmul.mubr.f32.gmra.mrb[12].mxu1 %v5614_v1  ;;  %v9647_v1 = vld [vmem:[#allocation2 + $0x79] sm:$0xff] }
 0x57e   : > { %8447 = vmatprep.mubr.f32.mxu1 %v5615_v4 }
 0x581   : > { %8448 = vmatmul.mubr.f32.gmra.mrb[14].mxu1 %v5616_v18 }
 0x582   : > { %8450 = vmatprep.mubr.f32.mxu1 %v5617_v9 }
 0x585   : > { %8451 = vmatmul.mubr.f32.gmra.mrb[16].mxu1 %v5618_v49 }
 0x586   : > { %8453 = vmatprep.mubr.f32.mxu1 %v5619_v40 }
 0x589   : > { %8454 = vmatmul.mubr.f32.gmra.mrb[18].mxu1 %v5620_v44 }
 0x58a   : > { %8456 = vmatprep.mubr.f32.mxu1 %v5621_v61 }
 0x58d   : > { %8457 = vmatmul.mubr.f32.gmra.mrb[20].mxu1 %v5622_v0  ;;  %v9648_v0 = vld [vmem:[#allocation2 + $0x99] sm:$0xff] }
 0x58e   : > { %8459 = vmatprep.mubr.f32.mxu1 %v5623_v2 }
 0x591   : > { %8460 = vmatmul.mubr.f32.gmra.mrb[22].mxu1 %v5624_v60  ;;  %v9649_v60 = vld [vmem:[#allocation2 + $0x91] sm:$0xff] }
 0x592   : > { %8462 = vmatprep.mubr.f32.mxu1 %v5625_v62 }
 0x595   : > { %8463 = vmatmul.mubr.f32.gmra.mrb[24].mxu1 %v5626_v42 }
 0x596   : > { %8465 = vmatprep.mubr.f32.mxu1 %v5627_v10 }
 0x599   : > { %8466 = vmatmul.mubr.f32.gmra.mrb[26].mxu1 %v5628_v41 }
 0x59a   : > { %8468 = vmatprep.mubr.f32.mxu1 %v11050_v19 }
 0x59d   : > { %8469 = vmatmul.mubr.f32.gmra.mrb[28].mxu1 %v11053_v33 }
 0x59e   : > { %8471 = vmatprep.mubr.f32.mxu1 %v5631_v7 }
 0x5a1   : > { %8472 = vmatmul.mubr.f32.gmra.mrb[30].mxu1 %v5632_v11 }
 0x638   : > { %v8428_v52 = vpop.f32.mrb[0].mxu1 }
 0x639   : > { %v5915_v43 = vadd.f32 %v8428_v52, %v11100_v8  ;;  %v5716_v53 = vpop.f32.mrb[1].mxu1 }
 0x63a   : > { %v5914_v46 = vadd.f32 %v11100_v8, %v5716_v53 }
 0x63b   : > { %v5947_v19 = vadd.f32 %v9638_v16, %v5915_v43  ;;  %v9650_v43 = vld [vmem:[#allocation2 + $0xb1] sm:$0xff] }
 0x63c   : > { %v5946_v3 = vadd.f32 %v9639_v17, %v5914_v46  ;;  %v8431_v33 = vpop.f32.mrb[2].mxu1  ;;  %v9651_v46 = vld [vmem:[#allocation2 + $0xa9] sm:$0xff] }
 0x63d   : > { %v5979_v21 = vmax.f32 %v5947_v19, 0.0  ;;  %v5917_v39 = vadd.f32 %v8431_v33, %v11100_v8  ;;  %v5726_v31 = vpop.f32.mrb[3].mxu1 }
 0x63e   : > { %v5978_v32 = vmax.f32 %v5946_v3, 0.0  ;;  %v5916_v58 = vadd.f32 %v11100_v8, %v5726_v31  ;;  %v9652_v31 = vld [vmem:[#allocation2 + $0xc9] sm:$0xff] }
 0x63f   : > { %6011 = vst [vmem:[%s11108_s10 + $0x8] sm:$0xff] %v5979_v21  ;;  %v5949_v22 = vadd.f32 %v9640_v37, %v5917_v39 }
 0x640   : > { %6010 = vst [vmem:[%s11108_s10] sm:$0xff] %v5978_v32  ;;  %v5948_v25 = vadd.f32 %v9641_v26, %v5916_v58  ;;  %v8434_v13 = vpop.f32.mrb[4].mxu1  ;;  %v9653_v58 = vld [vmem:[#allocation2 + $0xc1] sm:$0xff] }
 0x641   : > { %v5981_v34 = vmax.f32 %v5949_v22, 0.0  ;;  %v5919_v38 = vadd.f32 %v8434_v13, %v11100_v8  ;;  %v5736_v29 = vpop.f32.mrb[5].mxu1 }
 0x642   : > { %v5980_v28 = vmax.f32 %v5948_v25, 0.0  ;;  %v5918_v51 = vadd.f32 %v11100_v8, %v5736_v29  ;;  %v9654_v29 = vld [vmem:[#allocation2 + $0xe1] sm:$0xff] }
 0x643   : > { %6013 = vst [vmem:[%s11108_s10 + $0x18] sm:$0xff] %v5981_v34  ;;  %v5951_v55 = vadd.f32 %v9642_v15, %v5919_v38 }
 0x644   : > { %6012 = vst [vmem:[%s11108_s10 + $0x10] sm:$0xff] %v5980_v28  ;;  %v5950_v56 = vadd.f32 %v9643_v24, %v5918_v51  ;;  %v8437_v12 = vpop.f32.mrb[6].mxu1  ;;  %v9655_v51 = vld [vmem:[#allocation2 + $0xd9] sm:$0xff] }
 0x645   : > { %v5983_v5 = vmax.f32 %v5951_v55, 0.0  ;;  %v5921_v6 = vadd.f32 %v8437_v12, %v11100_v8  ;;  %v5746_v45 = vpop.f32.mrb[7].mxu1 }
 0x646   : > { %v5982_v50 = vmax.f32 %v5950_v56, 0.0  ;;  %v5920_v47 = vadd.f32 %v11100_v8, %v5746_v45  ;;  %v9656_v45 = vld [vmem:[#allocation2 + $0xf9] sm:$0xff] }
 0x647   : > { %6015 = vst [vmem:[%s11108_s10 + $0x28] sm:$0xff] %v5983_v5  ;;  %v5953_v23 = vadd.f32 %v9644_v57, %v5921_v6 }
 0x648   : > { %6014 = vst [vmem:[%s11108_s10 + $0x20] sm:$0xff] %v5982_v50  ;;  %v5952_v48 = vadd.f32 %v9645_v14, %v5920_v47  ;;  %v8440_v54 = vpop.f32.mrb[8].mxu1  ;;  %v9657_v47 = vld [vmem:[#allocation2 + $0xf1] sm:$0xff] }
 0x649   : > { %v5985_v20 = vmax.f32 %v5953_v23, 0.0  ;;  %v5923_v27 = vadd.f32 %v8440_v54, %v11100_v8  ;;  %v5756_v30 = vpop.f32.mrb[9].mxu1 }
 0x64a   : > { %v5984_v35 = vmax.f32 %v5952_v48, 0.0  ;;  %v5922_v36 = vadd.f32 %v11100_v8, %v5756_v30  ;;  %v9658_v30 = vld [vmem:[#allocation2 + $0x111] sm:$0xff] }
 0x64b   : > { %6017 = vst [vmem:[%s11108_s10 + $0x38] sm:$0xff] %v5985_v20  ;;  %v5955_v63 = vadd.f32 %v9646_v59, %v5923_v27 }
 0x64c   : > { %6016 = vst [vmem:[%s11108_s10 + $0x30] sm:$0xff] %v5984_v35  ;;  %v5954_v4 = vadd.f32 %v9647_v1, %v5922_v36  ;;  %v8443_v18 = vpop.f32.mrb[10].mxu1  ;;  %v9659_v36 = vld [vmem:[#allocation2 + $0x109] sm:$0xff] }
 0x64d   : > { %v5987_v9 = vmax.f32 %v5955_v63, 0.0  ;;  %v5925_v49 = vadd.f32 %v8443_v18, %v11100_v8  ;;  %v5766_v40 = vpop.f32.mrb[11].mxu1 }
 0x64e   : > { %v5986_v44 = vmax.f32 %v5954_v4, 0.0  ;;  %v5924_v61 = vadd.f32 %v11100_v8, %v5766_v40  ;;  %v9660_v40 = vld [vmem:[#allocation2 + $0x129] sm:$0xff] }
 0x64f   : > { %6019 = vst [vmem:[%s11108_s10 + $0x48] sm:$0xff] %v5987_v9  ;;  %v5957_v2 = vadd.f32 %v9648_v0, %v5925_v49 }
 0x650   : > { %6018 = vst [vmem:[%s11108_s10 + $0x40] sm:$0xff] %v5986_v44  ;;  %v5956_v62 = vadd.f32 %v9649_v60, %v5924_v61  ;;  %v8446_v42 = vpop.f32.mrb[12].mxu1  ;;  %v9661_v61 = vld [vmem:[#allocation2 + $0x121] sm:$0xff] }
 0x651   : > { %v5989_v10 = vmax.f32 %v5957_v2, 0.0  ;;  %v5927_v41 = vadd.f32 %v8446_v42, %v11100_v8  ;;  %v5776_v7 = vpop.f32.mrb[13].mxu1 }
 0x652   : > { %v5988_v11 = vmax.f32 %v5956_v62, 0.0  ;;  %v5926_v52 = vadd.f32 %v11100_v8, %v5776_v7  ;;  %v9662_v7 = vld [vmem:[#allocation2 + $0x141] sm:$0xff] }
 0x653   : > { %6021 = vst [vmem:[%s11108_s10 + $0x58] sm:$0xff] %v5989_v10  ;;  %v5959_v53 = vadd.f32 %v9650_v43, %v5927_v41 }
 0x654   : > { %6020 = vst [vmem:[%s11108_s10 + $0x50] sm:$0xff] %v5988_v11  ;;  %v5958_v16 = vadd.f32 %v9651_v46, %v5926_v52  ;;  %v8449_v19 = vpop.f32.mrb[14].mxu1  ;;  %v9663_v52 = vld [vmem:[#allocation2 + $0x139] sm:$0xff] }
 0x655   : > { %v5991_v17 = vmax.f32 %v5959_v53, 0.0  ;;  %v5929_v3 = vadd.f32 %v8449_v19, %v11100_v8  ;;  %v5786_v33 = vpop.f32.mrb[15].mxu1 }
 0x656   : > { %v5990_v21 = vmax.f32 %v5958_v16, 0.0  ;;  %v5928_v39 = vadd.f32 %v11100_v8, %v5786_v33  ;;  %v9664_v33 = vld [vmem:[#allocation2 + $0x159] sm:$0xff] }
 0x657   : > { %6023 = vst [vmem:[%s11108_s10 + $0x68] sm:$0xff] %v5991_v17  ;;  %v5961_v32 = vadd.f32 %v9652_v31, %v5929_v3 }
 0x658   : > { %6022 = vst [vmem:[%s11108_s10 + $0x60] sm:$0xff] %v5990_v21  ;;  %v5960_v37 = vadd.f32 %v9653_v58, %v5928_v39  ;;  %v8452_v22 = vpop.f32.mrb[16].mxu1  ;;  %v9665_v39 = vld [vmem:[#allocation2 + $0x151] sm:$0xff] }
 0x659   : > { %v5993_v26 = vmax.f32 %v5961_v32, 0.0  ;;  %v5931_v25 = vadd.f32 %v8452_v22, %v11100_v8  ;;  %v5796_v13 = vpop.f32.mrb[17].mxu1 }
 0x65a   : > { %v5992_v34 = vmax.f32 %v5960_v37, 0.0  ;;  %v5930_v38 = vadd.f32 %v11100_v8, %v5796_v13  ;;  %v9666_v13 = vld [vmem:[#allocation2 + $0x171] sm:$0xff] }
 0x65b   : > { %6025 = vst [vmem:[%s11108_s10 + $0x78] sm:$0xff] %v5993_v26  ;;  %v5963_v28 = vadd.f32 %v9654_v29, %v5931_v25 }
 0x65c   : > { %6024 = vst [vmem:[%s11108_s10 + $0x70] sm:$0xff] %v5992_v34  ;;  %v5962_v15 = vadd.f32 %v9655_v51, %v5930_v38  ;;  %v8455_v55 = vpop.f32.mrb[18].mxu1  ;;  %v9667_v38 = vld [vmem:[#allocation2 + $0x169] sm:$0xff] }
 0x65d   : > { %v5995_v24 = vmax.f32 %v5963_v28, 0.0  ;;  %v5933_v56 = vadd.f32 %v8455_v55, %v11100_v8  ;;  %v5806_v12 = vpop.f32.mrb[19].mxu1 }
 0x65e   : > { %v5994_v5 = vmax.f32 %v5962_v15, 0.0  ;;  %v5932_v6 = vadd.f32 %v11100_v8, %v5806_v12  ;;  %v9668_v12 = vld [vmem:[#allocation2 + $0x189] sm:$0xff] }
 0x65f   : > { %6027 = vst [vmem:[%s11108_s10 + $0x88] sm:$0xff] %v5995_v24  ;;  %v5965_v50 = vadd.f32 %v9656_v45, %v5933_v56 }
 0x660   : > { %6026 = vst [vmem:[%s11108_s10 + $0x80] sm:$0xff] %v5994_v5  ;;  %v5964_v57 = vadd.f32 %v9657_v47, %v5932_v6  ;;  %v8458_v23 = vpop.f32.mrb[20].mxu1  ;;  %v9669_v6 = vld [vmem:[#allocation2 + $0x181] sm:$0xff] }
 0x661   : > { %v5997_v14 = vmax.f32 %v5965_v50, 0.0  ;;  %v5935_v48 = vadd.f32 %v8458_v23, %v11100_v8  ;;  %v5816_v54 = vpop.f32.mrb[21].mxu1 }
 0x662   : > { %v5996_v20 = vmax.f32 %v5964_v57, 0.0  ;;  %v5934_v27 = vadd.f32 %v11100_v8, %v5816_v54 }
 0x663   : > { %6029 = vst [vmem:[%s11108_s10 + $0x98] sm:$0xff] %v5997_v14  ;;  %v5967_v35 = vadd.f32 %v9658_v30, %v5935_v48 }
 0x664   : > { %6028 = vst [vmem:[%s11108_s10 + $0x90] sm:$0xff] %v5996_v20  ;;  %v5966_v59 = vadd.f32 %v9659_v36, %v5934_v27  ;;  %v8461_v63 = vpop.f32.mrb[22].mxu1 }
 0x665   : > { %v5999_v1 = vmax.f32 %v5967_v35, 0.0  ;;  %v5937_v4 = vadd.f32 %v8461_v63, %v11100_v8  ;;  %v5826_v18 = vpop.f32.mrb[23].mxu1 }
 0x666   : > { %v5998_v9 = vmax.f32 %v5966_v59, 0.0  ;;  %v5936_v49 = vadd.f32 %v11100_v8, %v5826_v18 }
 0x667   : > { %6031 = vst [vmem:[%s11108_s10 + $0xa8] sm:$0xff] %v5999_v1  ;;  %v5969_v44 = vadd.f32 %v9660_v40, %v5937_v4 }
 0x668   : > { %6030 = vst [vmem:[%s11108_s10 + $0xa0] sm:$0xff] %v5998_v9  ;;  %v5968_v0 = vadd.f32 %v9661_v61, %v5936_v49  ;;  %v8464_v2 = vpop.f32.mrb[24].mxu1 }
 0x669   : > { %v6001_v60 = vmax.f32 %v5969_v44, 0.0  ;;  %v5939_v62 = vadd.f32 %v8464_v2, %v11100_v8  ;;  %v5836_v42 = vpop.f32.mrb[25].mxu1 }
 0x66a   : > { %v6000_v10 = vmax.f32 %v5968_v0, 0.0  ;;  %v5938_v41 = vadd.f32 %v11100_v8, %v5836_v42 }
 0x66b   : > { %6033 = vst [vmem:[%s11108_s10 + $0xb8] sm:$0xff] %v6001_v60  ;;  %v5971_v11 = vadd.f32 %v9662_v7, %v5939_v62 }
 0x66c   : > { %6032 = vst [vmem:[%s11108_s10 + $0xb0] sm:$0xff] %v6000_v10  ;;  %v5970_v43 = vadd.f32 %v9663_v52, %v5938_v41  ;;  %v8467_v53 = vpop.f32.mrb[26].mxu1 }
 0x66d   : > { %v6003_v46 = vmax.f32 %v5971_v11, 0.0  ;;  %v5941_v16 = vadd.f32 %v8467_v53, %v11100_v8  ;;  %v5846_v19 = vpop.f32.mrb[27].mxu1 }
 0x66e   : > { %v6002_v17 = vmax.f32 %v5970_v43, 0.0  ;;  %v5940_v3 = vadd.f32 %v11100_v8, %v5846_v19 }
 0x66f   : > { %6035 = vst [vmem:[%s11108_s10 + $0xc8] sm:$0xff] %v6003_v46  ;;  %v5973_v21 = vadd.f32 %v9664_v33, %v5941_v16 }
 0x670   : > { %6034 = vst [vmem:[%s11108_s10 + $0xc0] sm:$0xff] %v6002_v17  ;;  %v5972_v31 = vadd.f32 %v9665_v39, %v5940_v3  ;;  %v8470_v32 = vpop.f32.mrb[28].mxu1 }
 0x671   : > { %v6005_v58 = vmax.f32 %v5973_v21, 0.0  ;;  %v5943_v37 = vadd.f32 %v8470_v32, %v11100_v8  ;;  %v5856_v22 = vpop.f32.mrb[29].mxu1 }
 0x672   : > { %v6004_v26 = vmax.f32 %v5972_v31, 0.0  ;;  %v5942_v25 = vadd.f32 %v11100_v8, %v5856_v22 }
 0x673   : > { %6037 = vst [vmem:[%s11108_s10 + $0xd8] sm:$0xff] %v6005_v58  ;;  %v5975_v34 = vadd.f32 %v9666_v13, %v5943_v37 }
 0x674   : > { %6036 = vst [vmem:[%s11108_s10 + $0xd0] sm:$0xff] %v6004_v26  ;;  %v5974_v29 = vadd.f32 %v9667_v38, %v5942_v25  ;;  %v8473_v28 = vpop.f32.mrb[30].mxu1 }
 0x675   : > { %v6007_v51 = vmax.f32 %v5975_v34, 0.0  ;;  %v5945_v15 = vadd.f32 %v8473_v28, %v11100_v8  ;;  %v5866_v55 = vpop.f32.mrb[31].mxu1 }
 0x676   : > { %v6006_v24 = vmax.f32 %v5974_v29, 0.0  ;;  %v5944_v56 = vadd.f32 %v11100_v8, %v5866_v55 }
 0x677   : > { %6039 = vst [vmem:[%s11108_s10 + $0xe8] sm:$0xff] %v6007_v51  ;;  %v5977_v5 = vadd.f32 %v9668_v12, %v5945_v15 }
 0x678   : > { %6038 = vst [vmem:[%s11108_s10 + $0xe0] sm:$0xff] %v6006_v24  ;;  %v5976_v45 = vadd.f32 %v9669_v6, %v5944_v56 }
 0x679   : > { %v6009_v50 = vmax.f32 %v5977_v5, 0.0 }
 0x67a   : > { %v6008_v8 = vmax.f32 %v5976_v45, 0.0 }
 0x67b   : > { %6041 = vst [vmem:[%s11108_s10 + $0xf8] sm:$0xff] %v6009_v50 }
 0x67c   : > { %6040 = vst [vmem:[%s11108_s10 + $0xf0] sm:$0xff] %v6008_v8 }
 0x67d   : > { %9769 = shalt.err (!%p9766_p1)
}
 0x67e   : > { %s9770_s12 = scalar_lea.hbm %s11173_s11, 4096  ;;  %s9774_s15 = scalar_lea.hbm %s11226_s5, 8192 }
 0x67f   : > { %p9771_p13 = scmp.ne.s32.totalorder %s11173_s11, %s9770_s12  ;;  %p9775_p4 = scmp.lt.u32.totalorder %s11173_s11, %s11226_s5 }
 0x680   : > { %p9776_p5 = scmp.lt.u32.totalorder %s9774_s15, %s9770_s12  ;;  %p9778_p11 = scmp.lt.u32.totalorder %s9770_s12, %s11173_s11 }
 0x681   : > { %p9772_p6 = pnand %p9771_p13, %p11466_p0 }
 0x682   : > { %p9777_p8 = por %p9776_p5, %p9775_p4 }
 0x683   : > { %p9773_p10 = pneg %p9772_p6 }
 0x684   : > { %p9779_p2 = por %p9778_p11, %p9777_p8 }
 0x686   : > { %p9780_p3 = pnand %p9779_p2, %p9773_p10 }
 0x688   : > { %9783 = shalt.err (!%p9780_p3)
}
 0x689   : > { %s9835_s28 = smov 128   ;;  %s9836_s9 = smov 8  }
 0x68a   : > { %9572 = dma.vmem_to_hbm [thread:$0]  (%p11466_p0), %s11175_s13, 4096, %s11173_s11, %s6043_s22, %s9835_s28, %s9835_s28, %s9836_s9  }
 0x68b PF: > { %s6071_s30 = sand.u32 1, %s9814_s18   ;;  %p11467_p7 = scmp.ne.s32.totalorder %s11307_s25, 0 }
 0x68c   : > { %p11468_p9 = scmp.ge.s32.totalorder %s9826_s21, 2  ;;  %s6072_s17 = scalar_lea.sflag [#allocation6], %s6071_s30 }
 0x68e   : > { %p9586_p12 = pnand %p11468_p9, %p11467_p7 }
 0x690   : > { %9809 = dma.done.wait (!%p9586_p12), %s6072_s17, 4096  }
 0x691   : > { %9811 = vsyncadd (!%p9586_p12), %s6072_s17, 4294963200  ;;  %p19_p1 = scmp.ge.s32.totalorder %s9983_s29, 4   ;;  %s11469_s18 = smov %s9818_s19 }
 0x692   : > { %s11470_s19 = smov %s9822_s20  ;;  %s11471_s20 = smov %s9999_s27 }
 0x693   : > { %s11472_s21 = smov %s9983_s29  ;;  %21 = sbr.rel (!%p19_p1) target bundleno = 6 (0x6), region = 115 }
 0x69a   :  { %6077 = vsyncpa [#allocation5], 1 }
 0x69b   :  { %6079 = vsyncpa [#allocation5 + $0x1], 1 }
 0x69c   :  { %6080 = vsyncpa [#allocation8], 1 }
 0x69d   :  { %6081 = vsyncpa [#allocation6], 1 }
 0x69e   :  { %6083 = vsyncpa [#allocation6 + $0x1], 1 }

</bundles_post_ra>
